<compile_context>
chip_gen: v7x
topology: tpu7x:2x2x1
jax: 0.10.0
libtpu: 0.0.40
codegen_flags: <defaults>
</compile_context>

<pallas_src>
import functools

import jax
import jax.numpy as jnp
from jax.experimental import pallas as pl
from jax.experimental.pallas import tpu as pltpu

LANE = 128      # channel dims padded to a multiple of the 128-lane width
DEF_TM = 256    # row tile for the flattened (N*H*W) dimension


def _round_up(x, m):
    return (x + m - 1) // m * m


def _pad_axis(a, axis, new_size):
    pad = new_size - a.shape[axis]
    if pad == 0:
        return a
    widths = [(0, 0)] * a.ndim
    widths[axis] = (0, pad)
    return jnp.pad(a, widths)


# ----------------------------- Pallas kernels ------------------------------

def _mm_bn_kernel(x_ref, w_ref, s_ref, b_ref, o_ref, *, relu):
    """(tm, K) @ (K, N) with f32 scale/bias (+ReLU) epilogue."""
    acc = jnp.dot(x_ref[...], w_ref[...], preferred_element_type=jnp.float32)
    y = acc * s_ref[...] + b_ref[...]
    if relu:
        y = jnp.maximum(y, 0.0)
    o_ref[...] = y.astype(o_ref.dtype)


def _conv3_downsample_kernel(h2_ref, w3_ref, s3_ref, b3_ref,
                             xd_ref, wd_ref, sd_ref, bd_ref, o_ref):
    """Fused conv3(1x1)+bn3 and downsample(1x1 conv+bn) + residual add."""
    acc = jnp.dot(h2_ref[...], w3_ref[...], preferred_element_type=jnp.float32)
    y = acc * s3_ref[...] + b3_ref[...]
    accd = jnp.dot(xd_ref[...], wd_ref[...], preferred_element_type=jnp.float32)
    y = y + accd * sd_ref[...] + bd_ref[...]
    o_ref[...] = y.astype(o_ref.dtype)


def _conv3_identity_kernel(h2_ref, w3_ref, s3_ref, b3_ref, id_ref, o_ref):
    """Fused conv3(1x1)+bn3 + identity residual add."""
    acc = jnp.dot(h2_ref[...], w3_ref[...], preferred_element_type=jnp.float32)
    y = acc * s3_ref[...] + b3_ref[...] + id_ref[...].astype(jnp.float32)
    o_ref[...] = y.astype(o_ref.dtype)


def _conv2_kernel(hp_ref, w2_ref, s_ref, b_ref, o_ref, *, H, W, d, Cp):
    """3x3 conv (stride 1, dilation d, padding d) + bn + relu, one image.

    hp_ref: (1, H+2d, W+2d, Cp)  spatially padded NHWC activations (bf16)
    w2_ref: (9*Cp, Cp)           taps stacked (kh, kw) row-major (bf16)
    o_ref : (1, H, W, Cp)
    """
    acc = jnp.zeros((H * W, Cp), jnp.float32)
    for kh in range(3):
        for kw in range(3):
            t = kh * 3 + kw
            win = hp_ref[0, kh * d: kh * d + H, kw * d: kw * d + W, :]
            wt = w2_ref[t * Cp:(t + 1) * Cp, :]
            acc = acc + jnp.dot(win.reshape(H * W, Cp), wt,
                                preferred_element_type=jnp.float32)
    y = jnp.maximum(acc * s_ref[...] + b_ref[...], 0.0)
    o_ref[0] = y.reshape(H, W, Cp).astype(o_ref.dtype)


# ------------------------------ wrappers ------------------------------------

def _matmul_bn(x, w, scale, bias, *, relu, out_dtype, tm=DEF_TM):
    """Row-tiled fused (x @ w) * scale + bias [ReLU]. K, N multiples of 128."""
    M, K = x.shape
    N = w.shape[1]
    tm = min(tm, _round_up(M, 8))
    Mp = _round_up(M, tm)
    xp = _pad_axis(x, 0, Mp)
    s2 = scale.reshape(1, N).astype(jnp.float32)
    b2 = bias.reshape(1, N).astype(jnp.float32)
    out = pl.pallas_call(
        functools.partial(_mm_bn_kernel, relu=relu),
        out_shape=jax.ShapeDtypeStruct((Mp, N), out_dtype),
        grid=(Mp // tm,),
        in_specs=[
            pl.BlockSpec((tm, K), lambda i: (i, 0)),
            pl.BlockSpec((K, N), lambda i: (0, 0)),
            pl.BlockSpec((1, N), lambda i: (0, 0)),
            pl.BlockSpec((1, N), lambda i: (0, 0)),
        ],
        out_specs=pl.BlockSpec((tm, N), lambda i: (i, 0)),
        compiler_params=pltpu.CompilerParams(
            dimension_semantics=("parallel",)),
    )(xp, w, s2, b2)
    return out[:M] if Mp != M else out


def _conv2_bn_relu(h1, w2_taps, s2, b2, *, dilation, out_dtype):
    """3x3 stride-1 conv (padding=dilation) + BN + ReLU; one image per step."""
    N, H, W, Cp = h1.shape
    d = dilation
    hp = jnp.pad(h1, ((0, 0), (d, d), (d, d), (0, 0)))
    Hp, Wp = H + 2 * d, W + 2 * d
    s2r = s2.reshape(1, Cp).astype(jnp.float32)
    b2r = b2.reshape(1, Cp).astype(jnp.float32)
    kernel = functools.partial(_conv2_kernel, H=H, W=W, d=d, Cp=Cp)
    return pl.pallas_call(
        kernel,
        out_shape=jax.ShapeDtypeStruct((N, H, W, Cp), out_dtype),
        grid=(N,),
        in_specs=[
            pl.BlockSpec((1, Hp, Wp, Cp), lambda n: (n, 0, 0, 0)),
            pl.BlockSpec((9 * Cp, Cp), lambda n: (0, 0)),
            pl.BlockSpec((1, Cp), lambda n: (0, 0)),
            pl.BlockSpec((1, Cp), lambda n: (0, 0)),
        ],
        out_specs=pl.BlockSpec((1, H, W, Cp), lambda n: (n, 0, 0, 0)),
        compiler_params=pltpu.CompilerParams(
            dimension_semantics=("parallel",)),
    )(hp, w2_taps, s2r, b2r)


def _conv3_residual(h2, w3, s3, b3, residual, wd=None, sd=None, bd=None,
                    *, out_dtype=jnp.float32, tm=DEF_TM):
    """Fused conv3(1x1)+bn3 with either downsample(conv+bn) or identity add."""
    M, K3 = h2.shape
    N = w3.shape[1]
    tm = min(tm, _round_up(M, 8))
    Mp = _round_up(M, tm)
    h2p = _pad_axis(h2, 0, Mp)
    resp = _pad_axis(residual, 0, Mp)
    s3r = s3.reshape(1, N).astype(jnp.float32)
    b3r = b3.reshape(1, N).astype(jnp.float32)
    cparams = pltpu.CompilerParams(dimension_semantics=("parallel",))
    out_shape = jax.ShapeDtypeStruct((Mp, N), out_dtype)
    if wd is not None:
        Kd = wd.shape[0]
        sdr = sd.reshape(1, N).astype(jnp.float32)
        bdr = bd.reshape(1, N).astype(jnp.float32)
        out = pl.pallas_call(
            _conv3_downsample_kernel,
            out_shape=out_shape,
            grid=(Mp // tm,),
            in_specs=[
                pl.BlockSpec((tm, K3), lambda i: (i, 0)),
                pl.BlockSpec((K3, N), lambda i: (0, 0)),
                pl.BlockSpec((1, N), lambda i: (0, 0)),
                pl.BlockSpec((1, N), lambda i: (0, 0)),
                pl.BlockSpec((tm, Kd), lambda i: (i, 0)),
                pl.BlockSpec((Kd, N), lambda i: (0, 0)),
                pl.BlockSpec((1, N), lambda i: (0, 0)),
                pl.BlockSpec((1, N), lambda i: (0, 0)),
            ],
            out_specs=pl.BlockSpec((tm, N), lambda i: (i, 0)),
            compiler_params=cparams,
        )(h2p, w3, s3r, b3r, resp, wd, sdr, bdr)
    else:
        out = pl.pallas_call(
            _conv3_identity_kernel,
            out_shape=out_shape,
            grid=(Mp // tm,),
            in_specs=[
                pl.BlockSpec((tm, K3), lambda i: (i, 0)),
                pl.BlockSpec((K3, N), lambda i: (0, 0)),
                pl.BlockSpec((1, N), lambda i: (0, 0)),
                pl.BlockSpec((1, N), lambda i: (0, 0)),
                pl.BlockSpec((tm, N), lambda i: (i, 0)),
            ],
            out_specs=pl.BlockSpec((tm, N), lambda i: (i, 0)),
            compiler_params=cparams,
        )(h2p, w3, s3r, b3r, resp)
    return out[:M] if Mp != M else out


# ------------------------------ Bottleneck ---------------------------------

def bottleneck_forward(x_nchw, params, *, stride, dilation):
    """Forward pass identical to PyTorch Bottleneck.forward (eval-mode BN)."""
    x = jnp.transpose(x_nchw, (0, 2, 3, 1))  # NHWC, f32
    N, H, W, Cin = x.shape
    Cb = params["w1"].shape[1]
    Cout = params["w3"].shape[1]
    Cin_p = _round_up(Cin, LANE)
    Cb_p = _round_up(Cb, LANE)
    Cout_p = _round_up(Cout, LANE)
    cdt = jnp.bfloat16  # MXU input dtype

    # lane-dense (channel-padded) bf16 activations / weights
    xp = _pad_axis(x, 3, Cin_p).astype(cdt)

    w1 = _pad_axis(_pad_axis(params["w1"], 0, Cin_p), 1, Cb_p).astype(cdt)
    s1 = _pad_axis(params["s1"], 0, Cb_p)
    b1 = _pad_axis(params["b1"], 0, Cb_p)

    # conv2 weight (Cout, Cin, 3, 3) -> taps stacked (kh, kw) row-major
    w2 = jnp.transpose(params["w2"], (2, 3, 1, 0))          # (3,3,Cin,Cout)
    w2 = _pad_axis(_pad_axis(w2, 2, Cb_p), 3, Cb_p)
    w2 = w2.reshape(9 * Cb_p, Cb_p).astype(cdt)
    s2 = _pad_axis(params["s2"], 0, Cb_p)
    b2 = _pad_axis(params["b2"], 0, Cb_p)

    w3 = _pad_axis(_pad_axis(params["w3"], 0, Cb_p), 1, Cout_p).astype(cdt)
    s3 = _pad_axis(params["s3"], 0, Cout_p)
    b3 = _pad_axis(params["b3"], 0, Cout_p)

    # conv1 (1x1) + bn1 + relu
    h1 = _matmul_bn(xp.reshape(-1, Cin_p), w1, s1, b1, relu=True,
                    out_dtype=cdt)
    h1 = h1.reshape(N, H, W, Cb_p)

    # conv2 (3x3, padding=dilation, dilation) + bn2 + relu.  The kernel
    # computes the stride-1 output; a strided conv equals that subsampled.
    h2 = _conv2_bn_relu(h1, w2, s2, b2, dilation=dilation, out_dtype=cdt)
    if stride > 1:
        # TODO(synk): fold the stride into the conv2 kernel's window reads
        # instead of computing the dense output and subsampling it.
        h2 = h2[:, ::stride, ::stride, :]
    _, Ho, Wo, _ = h2.shape
    h2 = h2.reshape(-1, Cb_p)

    # conv3 (1x1) + bn3 + residual (downsample/identity fused into the kernel)
    if "wd" in params:
        wd = _pad_axis(_pad_axis(params["wd"], 0, Cin_p), 1, Cout_p).astype(cdt)
        sd = _pad_axis(params["sd"], 0, Cout_p)
        bd = _pad_axis(params["bd"], 0, Cout_p)
        xd = xp[:, ::stride, ::stride, :].reshape(-1, Cin_p)
        out = _conv3_residual(h2, w3, s3, b3, xd, wd, sd, bd,
                              out_dtype=jnp.float32)
    else:
        assert Cin == Cout and stride == 1, (
            "identity residual requires matching channels and stride 1")
        identity = _pad_axis(x, 3, Cout_p).reshape(-1, Cout_p)  # f32 skip path
        out = _conv3_residual(h2, w3, s3, b3, identity,
                              out_dtype=jnp.float32)

    out = out.reshape(N, Ho, Wo, Cout_p)[:, :, :, :Cout]
    return jnp.transpose(out, (0, 3, 1, 2))  # back to NCHW


# --------------------------- parameter creation -----------------------------

def _bn_fold(key, c, eps=1e-5):
    k1, k2, k3, k4 = jax.random.split(key, 4)
    gamma = jax.random.uniform(k1, (c,), minval=0.5, maxval=1.5)
    beta = 0.1 * jax.random.normal(k2, (c,))
    mean = 0.1 * jax.random.normal(k3, (c,))
    var = jax.random.uniform(k4, (c,), minval=0.5, maxval=1.5)
    scale = gamma / jnp.sqrt(var + eps)
    bias = beta - mean * scale
    return scale.astype(jnp.float32), bias.astype(jnp.float32)


def make_params(key, in_ch, bott_ch, out_ch, stride=1, full_residual=False):
    keys = jax.random.split(key, 8)
    params = {}
    params["w1"] = 0.1 * jax.random.normal(keys[0], (in_ch, bott_ch), jnp.float32)
    params["s1"], params["b1"] = _bn_fold(keys[1], bott_ch)
    # conv2 weight in PyTorch layout (Cout, Cin, 3, 3), groups=1
    params["w2"] = 0.1 * jax.random.normal(keys[2], (bott_ch, bott_ch, 3, 3),
                                           jnp.float32)
    params["s2"], params["b2"] = _bn_fold(keys[3], bott_ch)
    params["w3"] = 0.1 * jax.random.normal(keys[4], (bott_ch, out_ch), jnp.float32)
    params["s3"], params["b3"] = _bn_fold(keys[5], out_ch)
    # NOTE: stride != 1 added to the downsample condition so the residual
    # branch always matches the main branch spatially.
    if in_ch != out_ch or full_residual or stride != 1:
        params["wd"] = 0.1 * jax.random.normal(keys[6], (in_ch, out_ch),
                                               jnp.float32)
        params["sd"], params["bd"] = _bn_fold(keys[7], out_ch)
    return params


# ------------------------------ reference -----------------------------------

def bottleneck_reference(x_nchw, params, *, stride, dilation):
    """Pure-JAX f32 reference using lax.conv_general_dilated (validation)."""
    x = jnp.transpose(x_nchw, (0, 2, 3, 1))
    h1 = jnp.maximum(x @ params["w1"] * params["s1"] + params["b1"], 0.0)
    w2_hwio = jnp.transpose(params["w2"], (2, 3, 1, 0))
    h2 = jax.lax.conv_general_dilated(
        h1, w2_hwio,
        window_strides=(stride, stride),
        padding=((dilation, dilation), (dilation, dilation)),
        rhs_dilation=(dilation, dilation),
        dimension_numbers=("NHWC", "HWIO", "NHWC"))
    h2 = jnp.maximum(h2 * params["s2"] + params["b2"], 0.0)
    h3 = h2 @ params["w3"] * params["s3"] + params["b3"]
    if "wd" in params:
        xd = x[:, ::stride, ::stride, :]
        identity = xd @ params["wd"] * params["sd"] + params["bd"]
    else:
        identity = x
    out = h3 + identity
    return jnp.transpose(out, (0, 3, 1, 2))


# --------------------------------- main --------------------------------------

if __name__ == "__main__":
    key = jax.random.PRNGKey(0)
    k_x, k_p = jax.random.split(key)

    # Small shapes consistent with the module: batch=2, in=4, bottleneck=8,
    # out=16, spatial=16x16, stride=1, dilation=1, num_groups=1.
    B, Cin, H, W = 2, 4, 16, 16
    Cb, Cout = 8, 16
    stride, dilation = 1, 1

    x = jax.random.normal(k_x, (B, Cin, H, W), jnp.float32)
    params = make_params(k_p, Cin, Cb, Cout, stride=stride)

    fwd = jax.jit(functools.partial(bottleneck_forward,
                                    stride=stride, dilation=dilation))
    out = jax.block_until_ready(fwd(x, params))

    ref = bottleneck_reference(x, params, stride=stride, dilation=dilation)
    assert out.shape == ref.shape == (B, Cout, H // stride, W // stride)
    max_err = float(jnp.max(jnp.abs(out - ref)))
    assert jnp.allclose(out, ref, rtol=5e-2, atol=5e-2), max_err

    print("KERNEL_OK")
</pallas_src>

<mosaic_0001>
module attributes {stable_mosaic.version = 11 : i64} {
  func.func @_mm_bn_kernel(%arg0: i32, %arg1: memref<256x128xbf16, #tpu.memory_space<vmem>>, %arg2: memref<128x128xbf16, #tpu.memory_space<vmem>>, %arg3: memref<1x128xf32, #tpu.memory_space<vmem>>, %arg4: memref<1x128xf32, #tpu.memory_space<vmem>>, %arg5: memref<256x128xbf16, #tpu.memory_space<vmem>>) attributes {dimension_semantics = [#tpu.dimension_semantics<parallel>], iteration_bounds = array<i64: 2>, scalar_prefetch = 0 : i64, scratch_operands = 0 : i64, tpu.core_type = #tpu.core_type<tc>, window_params = [{transform_indices = @transform_0, window_bounds = array<i64: 256, 128>}, {pipeline_mode = #tpu.pipeline_mode<synchronous>, transform_indices = @transform_1, window_bounds = array<i64: 128, 128>}, {pipeline_mode = #tpu.pipeline_mode<synchronous>, transform_indices = @transform_2, window_bounds = array<i64: 1, 128>}, {pipeline_mode = #tpu.pipeline_mode<synchronous>, transform_indices = @transform_3, window_bounds = array<i64: 1, 128>}, {transform_indices = @transform_4, window_bounds = array<i64: 256, 128>}]} {
    %c0 = arith.constant 0 : index
    %c0_0 = arith.constant 0 : index
    %0 = vector.load %arg1[%c0, %c0_0] : memref<256x128xbf16, #tpu.memory_space<vmem>>, vector<256x128xbf16>
    %c0_1 = arith.constant 0 : index
    %c0_2 = arith.constant 0 : index
    %1 = vector.load %arg2[%c0_1, %c0_2] : memref<128x128xbf16, #tpu.memory_space<vmem>>, vector<128x128xbf16>
    %cst = arith.constant dense<0.000000e+00> : vector<256x128xf32>
    %2 = tpu.matmul %0, %1, %cst {dimension_numbers = #tpu.dot_dimension_numbers<[1], [0], [0], [1], [0, 0, 1, 1], [], []>} : vector<256x128xbf16>, vector<128x128xbf16>, vector<256x128xf32> -> vector<256x128xf32>
    %c0_3 = arith.constant 0 : index
    %c0_4 = arith.constant 0 : index
    %3 = vector.load %arg3[%c0_3, %c0_4] : memref<1x128xf32, #tpu.memory_space<vmem>>, vector<1x128xf32>
    %4 = vector.broadcast %3 : vector<1x128xf32> to vector<256x128xf32>
    %5 = arith.mulf %2, %4 : vector<256x128xf32>
    %c0_5 = arith.constant 0 : index
    %c0_6 = arith.constant 0 : index
    %6 = vector.load %arg4[%c0_5, %c0_6] : memref<1x128xf32, #tpu.memory_space<vmem>>, vector<1x128xf32>
    %7 = vector.broadcast %6 : vector<1x128xf32> to vector<256x128xf32>
    %8 = arith.addf %5, %7 : vector<256x128xf32>
    %cst_7 = arith.constant 0.000000e+00 : f32
    %9 = vector.broadcast %cst_7 : f32 to vector<256x128xf32>
    %10 = arith.maximumf %8, %9 : vector<256x128xf32>
    %11 = arith.truncf %10 : vector<256x128xf32> to vector<256x128xbf16>
    %c0_8 = arith.constant 0 : index
    %c0_9 = arith.constant 0 : index
    %12 = vector.load %arg5[%c0_8, %c0_9] : memref<256x128xbf16, #tpu.memory_space<vmem>>, vector<256x128xbf16>
    tpu.vector_store %arg5[%c0_8, %c0_9], %11 {strides = array<i32>} : memref<256x128xbf16, #tpu.memory_space<vmem>>, vector<256x128xbf16>,
    return
  }
  func.func @transform_0(%arg0: i32) -> (i32, i32) {
    %c0_i32 = arith.constant 0 : i32
    %c0_i32_0 = arith.constant 0 : i32
    return %arg0, %c0_i32 : i32, i32
  }
  func.func @transform_1(%arg0: i32) -> (i32, i32) {
    %c0_i32 = arith.constant 0 : i32
    %c0_i32_0 = arith.constant 0 : i32
    %c0_i32_1 = arith.constant 0 : i32
    return %c0_i32, %c0_i32_0 : i32, i32
  }
  func.func @transform_2(%arg0: i32) -> (i32, i32) {
    %c0_i32 = arith.constant 0 : i32
    %c0_i32_0 = arith.constant 0 : i32
    %c0_i32_1 = arith.constant 0 : i32
    return %c0_i32, %c0_i32_0 : i32, i32
  }
  func.func @transform_3(%arg0: i32) -> (i32, i32) {
    %c0_i32 = arith.constant 0 : i32
    %c0_i32_0 = arith.constant 0 : i32
    %c0_i32_1 = arith.constant 0 : i32
    return %c0_i32, %c0_i32_0 : i32, i32
  }
  func.func @transform_4(%arg0: i32) -> (i32, i32) {
    %c0_i32 = arith.constant 0 : i32
    %c0_i32_0 = arith.constant 0 : i32
    return %arg0, %c0_i32 : i32, i32
  }
}

module attributes {stable_mosaic.version = 11 : i64} {
  func.func @_conv2_kernel(%arg0: i32, %arg1: memref<1x18x18x128xbf16, #tpu.memory_space<vmem>>, %arg2: memref<1152x128xbf16, #tpu.memory_space<vmem>>, %arg3: memref<1x128xf32, #tpu.memory_space<vmem>>, %arg4: memref<1x128xf32, #tpu.memory_space<vmem>>, %arg5: memref<1x16x16x128xbf16, #tpu.memory_space<vmem>>) attributes {dimension_semantics = [#tpu.dimension_semantics<parallel>], iteration_bounds = array<i64: 2>, scalar_prefetch = 0 : i64, scratch_operands = 0 : i64, tpu.core_type = #tpu.core_type<tc>, window_params = [{transform_indices = @transform_0, window_bounds = array<i64: 1, 18, 18, 128>}, {pipeline_mode = #tpu.pipeline_mode<synchronous>, transform_indices = @transform_1, window_bounds = array<i64: 1152, 128>}, {pipeline_mode = #tpu.pipeline_mode<synchronous>, transform_indices = @transform_2, window_bounds = array<i64: 1, 128>}, {pipeline_mode = #tpu.pipeline_mode<synchronous>, transform_indices = @transform_3, window_bounds = array<i64: 1, 128>}, {transform_indices = @transform_4, window_bounds = array<i64: 1, 16, 16, 128>}]} {
    %cst = arith.constant 0.000000e+00 : f32
    %0 = vector.broadcast %cst : f32 to vector<256x128xf32>
    %c0 = arith.constant 0 : index
    %c0_0 = arith.constant 0 : index
    %c0_1 = arith.constant 0 : index
    %c0_2 = arith.constant 0 : index
    %1 = vector.load %arg1[%c0, %c0_0, %c0_1, %c0_2] : memref<1x18x18x128xbf16, #tpu.memory_space<vmem>>, vector<1x16x16x128xbf16>
    %2 = vector.shape_cast %1 : vector<1x16x16x128xbf16> to vector<16x16x128xbf16>
    %c0_3 = arith.constant 0 : index
    %c0_4 = arith.constant 0 : index
    %3 = vector.load %arg2[%c0_3, %c0_4] : memref<1152x128xbf16, #tpu.memory_space<vmem>>, vector<128x128xbf16>
    %4 = vector.shape_cast %2 : vector<16x16x128xbf16> to vector<256x128xbf16>
    %cst_5 = arith.constant dense<0.000000e+00> : vector<256x128xf32>
    %5 = tpu.matmul %4, %3, %cst_5 {dimension_numbers = #tpu.dot_dimension_numbers<[1], [0], [0], [1], [0, 0, 1, 1], [], []>} : vector<256x128xbf16>, vector<128x128xbf16>, vector<256x128xf32> -> vector<256x128xf32>
    %6 = arith.addf %0, %5 : vector<256x128xf32>
    %c0_6 = arith.constant 0 : index
    %c0_7 = arith.constant 0 : index
    %c1 = arith.constant 1 : index
    %c0_8 = arith.constant 0 : index
    %7 = vector.load %arg1[%c0_6, %c0_7, %c1, %c0_8] : memref<1x18x18x128xbf16, #tpu.memory_space<vmem>>, vector<1x16x16x128xbf16>
    %8 = vector.shape_cast %7 : vector<1x16x16x128xbf16> to vector<16x16x128xbf16>
    %c128 = arith.constant 128 : index
    %c0_9 = arith.constant 0 : index
    %9 = vector.load %arg2[%c128, %c0_9] : memref<1152x128xbf16, #tpu.memory_space<vmem>>, vector<128x128xbf16>
    %10 = vector.shape_cast %8 : vector<16x16x128xbf16> to vector<256x128xbf16>
    %cst_10 = arith.constant dense<0.000000e+00> : vector<256x128xf32>
    %11 = tpu.matmul %10, %9, %cst_10 {dimension_numbers = #tpu.dot_dimension_numbers<[1], [0], [0], [1], [0, 0, 1, 1], [], []>} : vector<256x128xbf16>, vector<128x128xbf16>, vector<256x128xf32> -> vector<256x128xf32>
    %12 = arith.addf %6, %11 : vector<256x128xf32>
    %c0_11 = arith.constant 0 : index
    %c0_12 = arith.constant 0 : index
    %c2 = arith.constant 2 : index
    %c0_13 = arith.constant 0 : index
    %13 = vector.load %arg1[%c0_11, %c0_12, %c2, %c0_13] : memref<1x18x18x128xbf16, #tpu.memory_space<vmem>>, vector<1x16x16x128xbf16>
    %14 = vector.shape_cast %13 : vector<1x16x16x128xbf16> to vector<16x16x128xbf16>
    %c256 = arith.constant 256 : index
    %c0_14 = arith.constant 0 : index
    %15 = vector.load %arg2[%c256, %c0_14] : memref<1152x128xbf16, #tpu.memory_space<vmem>>, vector<128x128xbf16>
    %16 = vector.shape_cast %14 : vector<16x16x128xbf16> to vector<256x128xbf16>
    %cst_15 = arith.constant dense<0.000000e+00> : vector<256x128xf32>
    %17 = tpu.matmul %16, %15, %cst_15 {dimension_numbers = #tpu.dot_dimension_numbers<[1], [0], [0], [1], [0, 0, 1, 1], [], []>} : vector<256x128xbf16>, vector<128x128xbf16>, vector<256x128xf32> -> vector<256x128xf32>
    %18 = arith.addf %12, %17 : vector<256x128xf32>
    %c0_16 = arith.constant 0 : index
    %c1_17 = arith.constant 1 : index
    %c0_18 = arith.constant 0 : index
    %c0_19 = arith.constant 0 : index
    %19 = vector.load %arg1[%c0_16, %c1_17, %c0_18, %c0_19] : memref<1x18x18x128xbf16, #tpu.memory_space<vmem>>, vector<1x16x16x128xbf16>
    %20 = vector.shape_cast %19 : vector<1x16x16x128xbf16> to vector<16x16x128xbf16>
    %c384 = arith.constant 384 : index
    %c0_20 = arith.constant 0 : index
    %21 = vector.load %arg2[%c384, %c0_20] : memref<1152x128xbf16, #tpu.memory_space<vmem>>, vector<128x128xbf16>
    %22 = vector.shape_cast %20 : vector<16x16x128xbf16> to vector<256x128xbf16>
    %cst_21 = arith.constant dense<0.000000e+00> : vector<256x128xf32>
    %23 = tpu.matmul %22, %21, %cst_21 {dimension_numbers = #tpu.dot_dimension_numbers<[1], [0], [0], [1], [0, 0, 1, 1], [], []>} : vector<256x128xbf16>, vector<128x128xbf16>, vector<256x128xf32> -> vector<256x128xf32>
    %24 = arith.addf %18, %23 : vector<256x128xf32>
    %c0_22 = arith.constant 0 : index
    %c1_23 = arith.constant 1 : index
    %c1_24 = arith.constant 1 : index
    %c0_25 = arith.constant 0 : index
    %25 = vector.load %arg1[%c0_22, %c1_23, %c1_24, %c0_25] : memref<1x18x18x128xbf16, #tpu.memory_space<vmem>>, vector<1x16x16x128xbf16>
    %26 = vector.shape_cast %25 : vector<1x16x16x128xbf16> to vector<16x16x128xbf16>
    %c512 = arith.constant 512 : index
    %c0_26 = arith.constant 0 : index
    %27 = vector.load %arg2[%c512, %c0_26] : memref<1152x128xbf16, #tpu.memory_space<vmem>>, vector<128x128xbf16>
    %28 = vector.shape_cast %26 : vector<16x16x128xbf16> to vector<256x128xbf16>
    %cst_27 = arith.constant dense<0.000000e+00> : vector<256x128xf32>
    %29 = tpu.matmul %28, %27, %cst_27 {dimension_numbers = #tpu.dot_dimension_numbers<[1], [0], [0], [1], [0, 0, 1, 1], [], []>} : vector<256x128xbf16>, vector<128x128xbf16>, vector<256x128xf32> -> vector<256x128xf32>
    %30 = arith.addf %24, %29 : vector<256x128xf32>
    %c0_28 = arith.constant 0 : index
    %c1_29 = arith.constant 1 : index
    %c2_30 = arith.constant 2 : index
    %c0_31 = arith.constant 0 : index
    %31 = vector.load %arg1[%c0_28, %c1_29, %c2_30, %c0_31] : memref<1x18x18x128xbf16, #tpu.memory_space<vmem>>, vector<1x16x16x128xbf16>
    %32 = vector.shape_cast %31 : vector<1x16x16x128xbf16> to vector<16x16x128xbf16>
    %c640 = arith.constant 640 : index
    %c0_32 = arith.constant 0 : index
    %33 = vector.load %arg2[%c640, %c0_32] : memref<1152x128xbf16, #tpu.memory_space<vmem>>, vector<128x128xbf16>
    %34 = vector.shape_cast %32 : vector<16x16x128xbf16> to vector<256x128xbf16>
    %cst_33 = arith.constant dense<0.000000e+00> : vector<256x128xf32>
    %35 = tpu.matmul %34, %33, %cst_33 {dimension_numbers = #tpu.dot_dimension_numbers<[1], [0], [0], [1], [0, 0, 1, 1], [], []>} : vector<256x128xbf16>, vector<128x128xbf16>, vector<256x128xf32> -> vector<256x128xf32>
    %36 = arith.addf %30, %35 : vector<256x128xf32>
    %c0_34 = arith.constant 0 : index
    %c2_35 = arith.constant 2 : index
    %c0_36 = arith.constant 0 : index
    %c0_37 = arith.constant 0 : index
    %37 = vector.load %arg1[%c0_34, %c2_35, %c0_36, %c0_37] : memref<1x18x18x128xbf16, #tpu.memory_space<vmem>>, vector<1x16x16x128xbf16>
    %38 = vector.shape_cast %37 : vector<1x16x16x128xbf16> to vector<16x16x128xbf16>
    %c768 = arith.constant 768 : index
    %c0_38 = arith.constant 0 : index
    %39 = vector.load %arg2[%c768, %c0_38] : memref<1152x128xbf16, #tpu.memory_space<vmem>>, vector<128x128xbf16>
    %40 = vector.shape_cast %38 : vector<16x16x128xbf16> to vector<256x128xbf16>
    %cst_39 = arith.constant dense<0.000000e+00> : vector<256x128xf32>
    %41 = tpu.matmul %40, %39, %cst_39 {dimension_numbers = #tpu.dot_dimension_numbers<[1], [0], [0], [1], [0, 0, 1, 1], [], []>} : vector<256x128xbf16>, vector<128x128xbf16>, vector<256x128xf32> -> vector<256x128xf32>
    %42 = arith.addf %36, %41 : vector<256x128xf32>
    %c0_40 = arith.constant 0 : index
    %c2_41 = arith.constant 2 : index
    %c1_42 = arith.constant 1 : index
    %c0_43 = arith.constant 0 : index
    %43 = vector.load %arg1[%c0_40, %c2_41, %c1_42, %c0_43] : memref<1x18x18x128xbf16, #tpu.memory_space<vmem>>, vector<1x16x16x128xbf16>
    %44 = vector.shape_cast %43 : vector<1x16x16x128xbf16> to vector<16x16x128xbf16>
    %c896 = arith.constant 896 : index
    %c0_44 = arith.constant 0 : index
    %45 = vector.load %arg2[%c896, %c0_44] : memref<1152x128xbf16, #tpu.memory_space<vmem>>, vector<128x128xbf16>
    %46 = vector.shape_cast %44 : vector<16x16x128xbf16> to vector<256x128xbf16>
    %cst_45 = arith.constant dense<0.000000e+00> : vector<256x128xf32>
    %47 = tpu.matmul %46, %45, %cst_45 {dimension_numbers = #tpu.dot_dimension_numbers<[1], [0], [0], [1], [0, 0, 1, 1], [], []>} : vector<256x128xbf16>, vector<128x128xbf16>, vector<256x128xf32> -> vector<256x128xf32>
    %48 = arith.addf %42, %47 : vector<256x128xf32>
    %c0_46 = arith.constant 0 : index
    %c2_47 = arith.constant 2 : index
    %c2_48 = arith.constant 2 : index
    %c0_49 = arith.constant 0 : index
    %49 = vector.load %arg1[%c0_46, %c2_47, %c2_48, %c0_49] : memref<1x18x18x128xbf16, #tpu.memory_space<vmem>>, vector<1x16x16x128xbf16>
    %50 = vector.shape_cast %49 : vector<1x16x16x128xbf16> to vector<16x16x128xbf16>
    %c1024 = arith.constant 1024 : index
    %c0_50 = arith.constant 0 : index
    %51 = vector.load %arg2[%c1024, %c0_50] : memref<1152x128xbf16, #tpu.memory_space<vmem>>, vector<128x128xbf16>
    %52 = vector.shape_cast %50 : vector<16x16x128xbf16> to vector<256x128xbf16>
    %cst_51 = arith.constant dense<0.000000e+00> : vector<256x128xf32>
    %53 = tpu.matmul %52, %51, %cst_51 {dimension_numbers = #tpu.dot_dimension_numbers<[1], [0], [0], [1], [0, 0, 1, 1], [], []>} : vector<256x128xbf16>, vector<128x128xbf16>, vector<256x128xf32> -> vector<256x128xf32>
    %54 = arith.addf %48, %53 : vector<256x128xf32>
    %c0_52 = arith.constant 0 : index
    %c0_53 = arith.constant 0 : index
    %55 = vector.load %arg3[%c0_52, %c0_53] : memref<1x128xf32, #tpu.memory_space<vmem>>, vector<1x128xf32>
    %56 = vector.broadcast %55 : vector<1x128xf32> to vector<256x128xf32>
    %57 = arith.mulf %54, %56 : vector<256x128xf32>
    %c0_54 = arith.constant 0 : index
    %c0_55 = arith.constant 0 : index
    %58 = vector.load %arg4[%c0_54, %c0_55] : memref<1x128xf32, #tpu.memory_space<vmem>>, vector<1x128xf32>
    %59 = vector.broadcast %58 : vector<1x128xf32> to vector<256x128xf32>
    %60 = arith.addf %57, %59 : vector<256x128xf32>
    %cst_56 = arith.constant 0.000000e+00 : f32
    %61 = vector.broadcast %cst_56 : f32 to vector<256x128xf32>
    %62 = arith.maximumf %60, %61 : vector<256x128xf32>
    %63 = vector.shape_cast %62 : vector<256x128xf32> to vector<16x16x128xf32>
    %64 = arith.truncf %63 : vector<16x16x128xf32> to vector<16x16x128xbf16>
    %c0_57 = arith.constant 0 : index
    %c0_58 = arith.constant 0 : index
    %c0_59 = arith.constant 0 : index
    %c0_60 = arith.constant 0 : index
    %65 = vector.load %arg5[%c0_57, %c0_58, %c0_59, %c0_60] : memref<1x16x16x128xbf16, #tpu.memory_space<vmem>>, vector<1x16x16x128xbf16>
    %66 = vector.shape_cast %65 : vector<1x16x16x128xbf16> to vector<16x16x128xbf16>
    %67 = vector.shape_cast %64 : vector<16x16x128xbf16> to vector<1x16x16x128xbf16>
    tpu.vector_store %arg5[%c0_57, %c0_58, %c0_59, %c0_60], %67 {strides = array<i32>} : memref<1x16x16x128xbf16, #tpu.memory_space<vmem>>, vector<1x16x16x128xbf16>,
    return
  }
  func.func @transform_0(%arg0: i32) -> (i32, i32, i32, i32) {
    %c0_i32 = arith.constant 0 : i32
    %c0_i32_0 = arith.constant 0 : i32
    %c0_i32_1 = arith.constant 0 : i32
    %c0_i32_2 = arith.constant 0 : i32
    return %arg0, %c0_i32, %c0_i32_0, %c0_i32_1 : i32, i32, i32, i32
  }
  func.func @transform_1(%arg0: i32) -> (i32, i32) {
    %c0_i32 = arith.constant 0 : i32
    %c0_i32_0 = arith.constant 0 : i32
    %c0_i32_1 = arith.constant 0 : i32
    return %c0_i32, %c0_i32_0 : i32, i32
  }
  func.func @transform_2(%arg0: i32) -> (i32, i32) {
    %c0_i32 = arith.constant 0 : i32
    %c0_i32_0 = arith.constant 0 : i32
    %c0_i32_1 = arith.constant 0 : i32
    return %c0_i32, %c0_i32_0 : i32, i32
  }
  func.func @transform_3(%arg0: i32) -> (i32, i32) {
    %c0_i32 = arith.constant 0 : i32
    %c0_i32_0 = arith.constant 0 : i32
    %c0_i32_1 = arith.constant 0 : i32
    return %c0_i32, %c0_i32_0 : i32, i32
  }
  func.func @transform_4(%arg0: i32) -> (i32, i32, i32, i32) {
    %c0_i32 = arith.constant 0 : i32
    %c0_i32_0 = arith.constant 0 : i32
    %c0_i32_1 = arith.constant 0 : i32
    %c0_i32_2 = arith.constant 0 : i32
    return %arg0, %c0_i32, %c0_i32_0, %c0_i32_1 : i32, i32, i32, i32
  }
}

module attributes {stable_mosaic.version = 11 : i64} {
  func.func @_conv3_downsample_kernel(%arg0: i32, %arg1: memref<256x128xbf16, #tpu.memory_space<vmem>>, %arg2: memref<128x128xbf16, #tpu.memory_space<vmem>>, %arg3: memref<1x128xf32, #tpu.memory_space<vmem>>, %arg4: memref<1x128xf32, #tpu.memory_space<vmem>>, %arg5: memref<256x128xbf16, #tpu.memory_space<vmem>>, %arg6: memref<128x128xbf16, #tpu.memory_space<vmem>>, %arg7: memref<1x128xf32, #tpu.memory_space<vmem>>, %arg8: memref<1x128xf32, #tpu.memory_space<vmem>>, %arg9: memref<256x128xf32, #tpu.memory_space<vmem>>) attributes {dimension_semantics = [#tpu.dimension_semantics<parallel>], iteration_bounds = array<i64: 2>, scalar_prefetch = 0 : i64, scratch_operands = 0 : i64, tpu.core_type = #tpu.core_type<tc>, window_params = [{transform_indices = @transform_0, window_bounds = array<i64: 256, 128>}, {pipeline_mode = #tpu.pipeline_mode<synchronous>, transform_indices = @transform_1, window_bounds = array<i64: 128, 128>}, {pipeline_mode = #tpu.pipeline_mode<synchronous>, transform_indices = @transform_2, window_bounds = array<i64: 1, 128>}, {pipeline_mode = #tpu.pipeline_mode<synchronous>, transform_indices = @transform_3, window_bounds = array<i64: 1, 128>}, {transform_indices = @transform_4, window_bounds = array<i64: 256, 128>}, {pipeline_mode = #tpu.pipeline_mode<synchronous>, transform_indices = @transform_5, window_bounds = array<i64: 128, 128>}, {pipeline_mode = #tpu.pipeline_mode<synchronous>, transform_indices = @transform_6, window_bounds = array<i64: 1, 128>}, {pipeline_mode = #tpu.pipeline_mode<synchronous>, transform_indices = @transform_7, window_bounds = array<i64: 1, 128>}, {transform_indices = @transform_8, window_bounds = array<i64: 256, 128>}]} {
    %c0 = arith.constant 0 : index
    %c0_0 = arith.constant 0 : index
    %0 = vector.load %arg1[%c0, %c0_0] : memref<256x128xbf16, #tpu.memory_space<vmem>>, vector<256x128xbf16>
    %c0_1 = arith.constant 0 : index
    %c0_2 = arith.constant 0 : index
    %1 = vector.load %arg2[%c0_1, %c0_2] : memref<128x128xbf16, #tpu.memory_space<vmem>>, vector<128x128xbf16>
    %cst = arith.constant dense<0.000000e+00> : vector<256x128xf32>
    %2 = tpu.matmul %0, %1, %cst {dimension_numbers = #tpu.dot_dimension_numbers<[1], [0], [0], [1], [0, 0, 1, 1], [], []>} : vector<256x128xbf16>, vector<128x128xbf16>, vector<256x128xf32> -> vector<256x128xf32>
    %c0_3 = arith.constant 0 : index
    %c0_4 = arith.constant 0 : index
    %3 = vector.load %arg3[%c0_3, %c0_4] : memref<1x128xf32, #tpu.memory_space<vmem>>, vector<1x128xf32>
    %4 = vector.broadcast %3 : vector<1x128xf32> to vector<256x128xf32>
    %5 = arith.mulf %2, %4 : vector<256x128xf32>
    %c0_5 = arith.constant 0 : index
    %c0_6 = arith.constant 0 : index
    %6 = vector.load %arg4[%c0_5, %c0_6] : memref<1x128xf32, #tpu.memory_space<vmem>>, vector<1x128xf32>
    %7 = vector.broadcast %6 : vector<1x128xf32> to vector<256x128xf32>
    %8 = arith.addf %5, %7 : vector<256x128xf32>
    %c0_7 = arith.constant 0 : index
    %c0_8 = arith.constant 0 : index
    %9 = vector.load %arg5[%c0_7, %c0_8] : memref<256x128xbf16, #tpu.memory_space<vmem>>, vector<256x128xbf16>
    %c0_9 = arith.constant 0 : index
    %c0_10 = arith.constant 0 : index
    %10 = vector.load %arg6[%c0_9, %c0_10] : memref<128x128xbf16, #tpu.memory_space<vmem>>, vector<128x128xbf16>
    %cst_11 = arith.constant dense<0.000000e+00> : vector<256x128xf32>
    %11 = tpu.matmul %9, %10, %cst_11 {dimension_numbers = #tpu.dot_dimension_numbers<[1], [0], [0], [1], [0, 0, 1, 1], [], []>} : vector<256x128xbf16>, vector<128x128xbf16>, vector<256x128xf32> -> vector<256x128xf32>
    %c0_12 = arith.constant 0 : index
    %c0_13 = arith.constant 0 : index
    %12 = vector.load %arg7[%c0_12, %c0_13] : memref<1x128xf32, #tpu.memory_space<vmem>>, vector<1x128xf32>
    %13 = vector.broadcast %12 : vector<1x128xf32> to vector<256x128xf32>
    %14 = arith.mulf %11, %13 : vector<256x128xf32>
    %15 = arith.addf %8, %14 : vector<256x128xf32>
    %c0_14 = arith.constant 0 : index
    %c0_15 = arith.constant 0 : index
    %16 = vector.load %arg8[%c0_14, %c0_15] : memref<1x128xf32, #tpu.memory_space<vmem>>, vector<1x128xf32>
    %17 = vector.broadcast %16 : vector<1x128xf32> to vector<256x128xf32>
    %18 = arith.addf %15, %17 : vector<256x128xf32>
    %c0_16 = arith.constant 0 : index
    %c0_17 = arith.constant 0 : index
    %19 = vector.load %arg9[%c0_16, %c0_17] : memref<256x128xf32, #tpu.memory_space<vmem>>, vector<256x128xf32>
    tpu.vector_store %arg9[%c0_16, %c0_17], %18 {strides = array<i32>} : memref<256x128xf32, #tpu.memory_space<vmem>>, vector<256x128xf32>,
    return
  }
  func.func @transform_0(%arg0: i32) -> (i32, i32) {
    %c0_i32 = arith.constant 0 : i32
    %c0_i32_0 = arith.constant 0 : i32
    return %arg0, %c0_i32 : i32, i32
  }
  func.func @transform_1(%arg0: i32) -> (i32, i32) {
    %c0_i32 = arith.constant 0 : i32
    %c0_i32_0 = arith.constant 0 : i32
    %c0_i32_1 = arith.constant 0 : i32
    return %c0_i32, %c0_i32_0 : i32, i32
  }
  func.func @transform_2(%arg0: i32) -> (i32, i32) {
    %c0_i32 = arith.constant 0 : i32
    %c0_i32_0 = arith.constant 0 : i32
    %c0_i32_1 = arith.constant 0 : i32
    return %c0_i32, %c0_i32_0 : i32, i32
  }
  func.func @transform_3(%arg0: i32) -> (i32, i32) {
    %c0_i32 = arith.constant 0 : i32
    %c0_i32_0 = arith.constant 0 : i32
    %c0_i32_1 = arith.constant 0 : i32
    return %c0_i32, %c0_i32_0 : i32, i32
  }
  func.func @transform_4(%arg0: i32) -> (i32, i32) {
    %c0_i32 = arith.constant 0 : i32
    %c0_i32_0 = arith.constant 0 : i32
    return %arg0, %c0_i32 : i32, i32
  }
  func.func @transform_5(%arg0: i32) -> (i32, i32) {
    %c0_i32 = arith.constant 0 : i32
    %c0_i32_0 = arith.constant 0 : i32
    %c0_i32_1 = arith.constant 0 : i32
    return %c0_i32, %c0_i32_0 : i32, i32
  }
  func.func @transform_6(%arg0: i32) -> (i32, i32) {
    %c0_i32 = arith.constant 0 : i32
    %c0_i32_0 = arith.constant 0 : i32
    %c0_i32_1 = arith.constant 0 : i32
    return %c0_i32, %c0_i32_0 : i32, i32
  }
  func.func @transform_7(%arg0: i32) -> (i32, i32) {
    %c0_i32 = arith.constant 0 : i32
    %c0_i32_0 = arith.constant 0 : i32
    %c0_i32_1 = arith.constant 0 : i32
    return %c0_i32, %c0_i32_0 : i32, i32
  }
  func.func @transform_8(%arg0: i32) -> (i32, i32) {
    %c0_i32 = arith.constant 0 : i32
    %c0_i32_0 = arith.constant 0 : i32
    return %arg0, %c0_i32 : i32, i32
  }
}

</mosaic_0001>

<bundles_post_ra>
// kernel: bottleneck_forward.3
= control target key start
LH: loop header
LB: loop body
LE: loop exit
PB: predicated region body
PF: predicated region fallthrough
CT: control target
= control target key end

     0   :  { %s1230_s15 = smov 0   ;;  %s1388_s0 = inlined_call_operand.vmem [shape: bf16[512,128], index: 0, kind: input, shape index: {}]   ;;  %s1389_s1 = inlined_call_operand.vmem [shape: bf16[128,128], index: 1, kind: input, shape index: {}]   ;;  %s1390_s2 = inlined_call_operand.vmem [shape: f32[1,128], index: 2, kind: input, shape index: {}]   ;;  %s1391_s3 = inlined_call_operand.vmem [shape: f32[1,128], index: 3, kind: input, shape index: {}]   ;;  %s1392_s4 = inlined_call_operand.vmem [shape: bf16[512,128], index: 4, kind: output, shape index: {}]  }
   0x1 LB: > { %s881_s16 = sadd.s32 4294967295, %s1203_s15   ;;  %p885_p0 = scmp.ge.s32.totalorder %s1203_s15, 1  ;;  %s1203_s15 = sphi %s1230_s15, %s14_s15  }
   0x2   : > { %p163_p1 = scmp.lt.s32.totalorder %s1203_s15, 3 }
   0x4   : > { %p164_p2 = pnand %p885_p0, %p163_p1 }
   0x5   : > { %v1173_v0 = vld [vmem:[%s1389_s1] sm:$0xff] (!%p164_p2)   ;;  %s886_s19 = sshll.u32 (!%p164_p2), %s881_s16, 5  ;;  %v1174_v1 = vld [vmem:[%s1389_s1 + $0x8] sm:$0xff] (!%p164_p2)   ;;  %v1175_v2 = vld [vmem:[%s1389_s1 + $0x10] sm:$0xff] (!%p164_p2)  }
   0x6   : > { %167 = sbr.rel (%p164_p2) target bundleno = 287 (0x11f), region = 36  ;;  %p190_p3 = scmp.lt.s32.totalorder (!%p164_p2), %s886_s19, 63  ;;  %1101 = vmatprep.subr.bf16.mxu0 (!%p164_p2), %v1173_v0  ;;  %1149 = vmatprep.subr.bf16.mxu1 (!%p164_p2), %v1173_v0  ;;  %v1176_v3 = vld [vmem:[%s1389_s1 + $0x18] sm:$0xff] (!%p164_p2)   ;;  %v1177_v6 = vld [vmem:[%s1389_s1 + $0x20] sm:$0xff] (!%p164_p2)   ;;  %v1178_v7 = vld [vmem:[%s1389_s1 + $0x28] sm:$0xff] (!%p164_p2)  }
   0x7   : > { %1102 = vmatpush3.bf16.msra.mxu0 (!%p164_p2), %v1173_v0  ;;  %1157 = vmatpush3.bf16.msra.mxu1 (!%p164_p2), %v1173_v0  ;;  %v1179_v8 = vld [vmem:[%s1389_s1 + $0x30] sm:$0xff] (!%p164_p2)   ;;  %v1180_v9 = vld [vmem:[%s1389_s1 + $0x38] sm:$0xff] (!%p164_p2)   ;;  %v1291_v24 = vld [vmem:[%s1390_s2] ss:$0 sm:$0xff] (!%p164_p2) }
   0x8   : > { %1103 = vmatprep.subr.bf16.mxu0 (!%p164_p2), %v1174_v1  ;;  %1150 = vmatprep.subr.bf16.mxu1 (!%p164_p2), %v1174_v1  ;;  %v1296_v26 = vld [vmem:[%s1391_s3] ss:$0 sm:$0xff] (!%p164_p2) }
   0xb   : > { %1104 = vmatpush3.bf16.msra.mxu0 (!%p164_p2), %v1174_v1  ;;  %1158 = vmatpush3.bf16.msra.mxu1 (!%p164_p2), %v1174_v1 }
   0xc   : > { %1105 = vmatprep.subr.bf16.mxu0 (!%p164_p2), %v1175_v2  ;;  %1151 = vmatprep.subr.bf16.mxu1 (!%p164_p2), %v1175_v2 }
   0xd   : > { %s1394_s19 = smov (!%p190_p3, %s886_s19), 63 }
   0xe   : > { %s887_s24 = sshll.u32 %s1394_s19, 2 }
   0xf   : > { %s1255_s27 = scalar_lea.vmem %s1388_s0, %s887_s24  ;;  %1106 = vmatpush3.bf16.msra.mxu0 %v1175_v2  ;;  %1159 = vmatpush3.bf16.msra.mxu1 %v1175_v2  ;;  %s1319_s20 = scalar_lea.vmem %s1392_s4, %s887_s24 }
  0x10   : > { %v1181_v4 = vld [vmem:[%s1255_s27] sm:$0xff]   ;;  %1107 = vmatprep.subr.bf16.mxu0 %v1176_v3  ;;  %1152 = vmatprep.subr.bf16.mxu1 %v1176_v3  ;;  %v1183_v10 = vld [vmem:[%s1255_s27 + $0x8] sm:$0xff]   ;;  %v1185_v12 = vld [vmem:[%s1255_s27 + $0x10] sm:$0xff]  }
  0x11   : > { %v1182_v5 = vld [vmem:[%s1255_s27 + $0x40] sm:$0xff]   ;;  %1117 = vmatprep.mubr.bf16.mxu0 %v1181_v4  ;;  %v1184_v11 = vld [vmem:[%s1255_s27 + $0x48] sm:$0xff]   ;;  %v1186_v13 = vld [vmem:[%s1255_s27 + $0x50] sm:$0xff]  }
  0x12   : > { %1133 = vmatprep.mubr.bf16.mxu1 %v1182_v5  ;;  %v1187_v14 = vld [vmem:[%s1255_s27 + $0x18] sm:$0xff]   ;;  %v1189_v16 = vld [vmem:[%s1255_s27 + $0x20] sm:$0xff]   ;;  %v1191_v18 = vld [vmem:[%s1255_s27 + $0x28] sm:$0xff]  }
  0x13   : > { %1108 = vmatpush3.bf16.msra.mxu0 %v1176_v3  ;;  %1160 = vmatpush3.bf16.msra.mxu1 %v1176_v3  ;;  %v1188_v15 = vld [vmem:[%s1255_s27 + $0x58] sm:$0xff]   ;;  %v1190_v17 = vld [vmem:[%s1255_s27 + $0x60] sm:$0xff]   ;;  %v1192_v19 = vld [vmem:[%s1255_s27 + $0x68] sm:$0xff]  }
  0x14   : > { %1109 = vmatprep.subr.bf16.mxu0 %v1177_v6  ;;  %1153 = vmatprep.subr.bf16.mxu1 %v1177_v6  ;;  %v1193_v20 = vld [vmem:[%s1255_s27 + $0x30] sm:$0xff]   ;;  %v1195_v22 = vld [vmem:[%s1255_s27 + $0x38] sm:$0xff]  }
  0x15   : > { %v1194_v21 = vld [vmem:[%s1255_s27 + $0x70] sm:$0xff]   ;;  %v1196_v23 = vld [vmem:[%s1255_s27 + $0x78] sm:$0xff]  }
  0x17   : > { %1110 = vmatpush3.bf16.msra.mxu0 %v1177_v6  ;;  %1161 = vmatpush3.bf16.msra.mxu1 %v1177_v6 }
  0x18   : > { %1111 = vmatprep.subr.bf16.mxu0 %v1178_v7  ;;  %1154 = vmatprep.subr.bf16.mxu1 %v1178_v7 }
  0x1b   : > { %1112 = vmatpush3.bf16.msra.mxu0 %v1178_v7  ;;  %1162 = vmatpush3.bf16.msra.mxu1 %v1178_v7 }
  0x1c   : > { %1113 = vmatprep.subr.bf16.mxu0 %v1179_v8  ;;  %1155 = vmatprep.subr.bf16.mxu1 %v1179_v8 }
  0x1f   : > { %1114 = vmatpush3.bf16.msra.mxu0 %v1179_v8  ;;  %1163 = vmatpush3.bf16.msra.mxu1 %v1179_v8 }
  0x20   : > { %1115 = vmatprep.subr.bf16.mxu0 %v1180_v9  ;;  %1156 = vmatprep.subr.bf16.mxu1 %v1180_v9 }
  0x23   : > { %1116 = vmatpush3.bf16.msra.mxu0 %v1180_v9  ;;  %1164 = vmatpush3.bf16.msra.mxu1 %v1180_v9 }
  0x26   : > { %1118 = vmatmul.mubr.bf16.vlgmr.msra.gmra.mrb[0].mxu0 %v1183_v10  ;;  %1134 = vmatmul.mubr.bf16.vlgmr.msra.gmra.mrb[0].mxu1 %v1184_v11 }
  0x27   : > { %1121 = vmatprep.mubr.bf16.mxu0 %v1185_v12  ;;  %1137 = vmatprep.mubr.bf16.mxu1 %v1186_v13 }
  0x2e   : > { %1122 = vmatmul.mubr.bf16.gmra.mrb[4].mxu0 %v1187_v14  ;;  %1138 = vmatmul.mubr.bf16.gmra.mrb[4].mxu1 %v1188_v15 }
  0x2f   : > { %1125 = vmatprep.mubr.bf16.mxu0 %v1189_v16  ;;  %1141 = vmatprep.mubr.bf16.mxu1 %v1190_v17 }
  0x36   : > { %1126 = vmatmul.mubr.bf16.gmra.mrb[8].mxu0 %v1191_v18  ;;  %1142 = vmatmul.mubr.bf16.gmra.mrb[8].mxu1 %v1192_v19 }
  0x37   : > { %1129 = vmatprep.mubr.bf16.mxu0 %v1193_v20  ;;  %1145 = vmatprep.mubr.bf16.mxu1 %v1194_v21 }
  0x3e   : > { %1130 = vmatmul.mubr.bf16.gmra.mrb[12].mxu0 %v1195_v22  ;;  %1146 = vmatmul.mubr.bf16.gmra.mrb[12].mxu1 %v1196_v23 }
  0xf9   : > { %v1119_v25 = vpop.f32.mrb[0].mxu0  ;;  %v1135_v27 = vpop.f32.mrb[0].mxu1 }
  0xfa   : > { %v564_v28 = vmul.f32 %v1119_v25, %v1291_v24  ;;  %v580_v29 = vmul.f32 %v1135_v27, %v1291_v24  ;;  %v428_v30 = vpop.f32.mrb[1].mxu0  ;;  %v492_v31 = vpop.f32.mrb[1].mxu1 }
  0xfb   : > { %v562_v32 = vmul.f32 %v1291_v24, %v428_v30  ;;  %v578_v33 = vmul.f32 %v1291_v24, %v492_v31  ;;  %v1120_v34 = vpop.f32.mrb[2].mxu0  ;;  %v1136_v35 = vpop.f32.mrb[2].mxu1 }
  0xfc   : > { %v603_v36 = vadd.f32 %v1296_v26, %v564_v28  ;;  %v619_v37 = vadd.f32 %v1296_v26, %v580_v29  ;;  %v565_v38 = vmul.f32 %v1120_v34, %v1291_v24  ;;  %v581_v39 = vmul.f32 %v1136_v35, %v1291_v24  ;;  %v431_v40 = vpop.f32.mrb[3].mxu0  ;;  %v495_v41 = vpop.f32.mrb[3].mxu1 }
  0xfd   : > { %v601_v42 = vadd.f32 %v1296_v26, %v562_v32  ;;  %v617_v43 = vadd.f32 %v1296_v26, %v578_v33  ;;  %v563_v44 = vmul.f32 %v1291_v24, %v431_v40  ;;  %v579_v45 = vmul.f32 %v1291_v24, %v495_v41 }
  0xfe   : > { %v604_v46 = vadd.f32 %v1296_v26, %v565_v38  ;;  %v620_v47 = vadd.f32 %v1296_v26, %v581_v39  ;;  %v635_v50 = vmax.f32 %v603_v36, 0.0  ;;  %v651_v51 = vmax.f32 %v619_v37, 0.0 }
  0xff   : > { %v602_v48 = vadd.f32 %v1296_v26, %v563_v44  ;;  %v618_v49 = vadd.f32 %v1296_v26, %v579_v45  ;;  %v633_v54 = vmax.f32 %v601_v42, 0.0  ;;  %v649_v55 = vmax.f32 %v617_v43, 0.0 }
 0x100   : > { %v636_v52 = vmax.f32 %v604_v46, 0.0  ;;  %v652_v53 = vmax.f32 %v620_v47, 0.0 }
 0x101   : > { %v634_v56 = vmax.f32 %v602_v48, 0.0  ;;  %v650_v57 = vmax.f32 %v618_v49, 0.0  ;;  %v1123_v58 = vpop.f32.mrb[4].mxu0  ;;  %v1139_v59 = vpop.f32.mrb[4].mxu1 }
 0x102   : > { %v990_v60 = vpack.c.bf16 %v636_v52, %v635_v50  ;;  %v1030_v61 = vpack.c.bf16 %v652_v53, %v651_v51  ;;  %v568_v62 = vmul.f32 %v1123_v58, %v1291_v24  ;;  %v584_v63 = vmul.f32 %v1139_v59, %v1291_v24  ;;  %v444_v0 = vpop.f32.mrb[5].mxu0  ;;  %v508_v1 = vpop.f32.mrb[5].mxu1 }
 0x103   : > { %v985_v2 = vpack.c.bf16 %v634_v56, %v633_v54  ;;  %v1025_v3 = vpack.c.bf16 %v650_v57, %v649_v55  ;;  %v566_v4 = vmul.f32 %v1291_v24, %v444_v0  ;;  %v582_v5 = vmul.f32 %v1291_v24, %v508_v1  ;;  %v1124_v6 = vpop.f32.mrb[6].mxu0  ;;  %v1140_v7 = vpop.f32.mrb[6].mxu1 }
 0x104   : > { %1062 = vst [vmem:[%s1319_s20 + $0x8] sm:$0xff] %v990_v60   ;;  %1070 = vst [vmem:[%s1319_s20 + $0x48] sm:$0xff] %v1030_v61   ;;  %v607_v8 = vadd.f32 %v1296_v26, %v568_v62  ;;  %v623_v9 = vadd.f32 %v1296_v26, %v584_v63  ;;  %v569_v10 = vmul.f32 %v1124_v6, %v1291_v24  ;;  %v447_v12 = vpop.f32.mrb[7].mxu0  ;;  %v511_v13 = vpop.f32.mrb[7].mxu1 }
 0x105   : > { %v585_v11 = vmul.f32 %v1140_v7, %v1291_v24  ;;  %986 = vst [vmem:[%s1319_s20] sm:$0xff] %v985_v2   ;;  %1069 = vst [vmem:[%s1319_s20 + $0x40] sm:$0xff] %v1025_v3   ;;  %v605_v14 = vadd.f32 %v1296_v26, %v566_v4  ;;  %v621_v15 = vadd.f32 %v1296_v26, %v582_v5 }
 0x106   : > { %v567_v16 = vmul.f32 %v1291_v24, %v447_v12  ;;  %v583_v17 = vmul.f32 %v1291_v24, %v511_v13  ;;  %v608_v18 = vadd.f32 %v1296_v26, %v569_v10  ;;  %v639_v22 = vmax.f32 %v607_v8, 0.0 }
 0x107   : > { %v624_v19 = vadd.f32 %v1296_v26, %v585_v11  ;;  %v655_v23 = vmax.f32 %v623_v9, 0.0  ;;  %v637_v28 = vmax.f32 %v605_v14, 0.0  ;;  %v653_v29 = vmax.f32 %v621_v15, 0.0 }
 0x108   : > { %v606_v20 = vadd.f32 %v1296_v26, %v567_v16  ;;  %v622_v21 = vadd.f32 %v1296_v26, %v583_v17  ;;  %v640_v25 = vmax.f32 %v608_v18, 0.0 }
 0x109   : > { %v656_v27 = vmax.f32 %v624_v19, 0.0  ;;  %v1127_v32 = vpop.f32.mrb[8].mxu0  ;;  %v1143_v33 = vpop.f32.mrb[8].mxu1 }
 0x10a   : > { %v638_v30 = vmax.f32 %v606_v20, 0.0  ;;  %v654_v31 = vmax.f32 %v622_v21, 0.0  ;;  %v1000_v34 = vpack.c.bf16 %v640_v25, %v639_v22  ;;  %v572_v36 = vmul.f32 %v1127_v32, %v1291_v24  ;;  %v460_v38 = vpop.f32.mrb[9].mxu0  ;;  %v524_v39 = vpop.f32.mrb[9].mxu1 }
 0x10b   : > { %v1040_v35 = vpack.c.bf16 %v656_v27, %v655_v23  ;;  %v588_v37 = vmul.f32 %v1143_v33, %v1291_v24  ;;  %v570_v42 = vmul.f32 %v1291_v24, %v460_v38  ;;  %v586_v43 = vmul.f32 %v1291_v24, %v524_v39  ;;  %v1128_v44 = vpop.f32.mrb[10].mxu0  ;;  %v1144_v45 = vpop.f32.mrb[10].mxu1 }
 0x10c   : > { %v995_v40 = vpack.c.bf16 %v638_v30, %v637_v28  ;;  %v1035_v41 = vpack.c.bf16 %v654_v31, %v653_v29  ;;  %1064 = vst [vmem:[%s1319_s20 + $0x18] sm:$0xff] %v1000_v34   ;;  %v611_v46 = vadd.f32 %v1296_v26, %v572_v36  ;;  %v573_v48 = vmul.f32 %v1128_v44, %v1291_v24  ;;  %v463_v50 = vpop.f32.mrb[11].mxu0  ;;  %v527_v51 = vpop.f32.mrb[11].mxu1 }
 0x10d   : > { %1072 = vst [vmem:[%s1319_s20 + $0x58] sm:$0xff] %v1040_v35   ;;  %v627_v47 = vadd.f32 %v1296_v26, %v588_v37  ;;  %v589_v49 = vmul.f32 %v1144_v45, %v1291_v24  ;;  %v609_v52 = vadd.f32 %v1296_v26, %v570_v42  ;;  %v625_v53 = vadd.f32 %v1296_v26, %v586_v43 }
 0x10e   : > { %1063 = vst [vmem:[%s1319_s20 + $0x10] sm:$0xff] %v995_v40   ;;  %1071 = vst [vmem:[%s1319_s20 + $0x50] sm:$0xff] %v1035_v41   ;;  %v571_v54 = vmul.f32 %v1291_v24, %v463_v50  ;;  %v587_v55 = vmul.f32 %v1291_v24, %v527_v51  ;;  %v612_v56 = vadd.f32 %v1296_v26, %v573_v48  ;;  %v643_v60 = vmax.f32 %v611_v46, 0.0 }
 0x10f   : > { %v628_v57 = vadd.f32 %v1296_v26, %v589_v49  ;;  %v659_v61 = vmax.f32 %v627_v47, 0.0  ;;  %v641_v0 = vmax.f32 %v609_v52, 0.0  ;;  %v657_v1 = vmax.f32 %v625_v53, 0.0 }
 0x110   : > { %v610_v58 = vadd.f32 %v1296_v26, %v571_v54  ;;  %v626_v59 = vadd.f32 %v1296_v26, %v587_v55  ;;  %v644_v62 = vmax.f32 %v612_v56, 0.0 }
 0x111   : > { %v660_v63 = vmax.f32 %v628_v57, 0.0  ;;  %v1131_v4 = vpop.f32.mrb[12].mxu0  ;;  %v1147_v5 = vpop.f32.mrb[12].mxu1 }
 0x112   : > { %v642_v2 = vmax.f32 %v610_v58, 0.0  ;;  %v658_v3 = vmax.f32 %v626_v59, 0.0  ;;  %v1010_v6 = vpack.c.bf16 %v644_v62, %v643_v60  ;;  %v576_v8 = vmul.f32 %v1131_v4, %v1291_v24  ;;  %v476_v10 = vpop.f32.mrb[13].mxu0  ;;  %v540_v11 = vpop.f32.mrb[13].mxu1 }
 0x113   : > { %v1050_v7 = vpack.c.bf16 %v660_v63, %v659_v61  ;;  %v592_v9 = vmul.f32 %v1147_v5, %v1291_v24  ;;  %v574_v14 = vmul.f32 %v1291_v24, %v476_v10  ;;  %v590_v15 = vmul.f32 %v1291_v24, %v540_v11  ;;  %v1132_v16 = vpop.f32.mrb[14].mxu0  ;;  %v1148_v17 = vpop.f32.mrb[14].mxu1 }
 0x114   : > { %v1005_v12 = vpack.c.bf16 %v642_v2, %v641_v0  ;;  %v1045_v13 = vpack.c.bf16 %v658_v3, %v657_v1  ;;  %1066 = vst [vmem:[%s1319_s20 + $0x28] sm:$0xff] %v1010_v6   ;;  %v615_v18 = vadd.f32 %v1296_v26, %v576_v8  ;;  %v577_v20 = vmul.f32 %v1132_v16, %v1291_v24  ;;  %v479_v22 = vpop.f32.mrb[15].mxu0  ;;  %v543_v23 = vpop.f32.mrb[15].mxu1 }
 0x115   : > { %1074 = vst [vmem:[%s1319_s20 + $0x68] sm:$0xff] %v1050_v7   ;;  %v631_v19 = vadd.f32 %v1296_v26, %v592_v9  ;;  %v593_v21 = vmul.f32 %v1148_v17, %v1291_v24  ;;  %v613_v25 = vadd.f32 %v1296_v26, %v574_v14  ;;  %v629_v27 = vadd.f32 %v1296_v26, %v590_v15 }
 0x116   : > { %1065 = vst [vmem:[%s1319_s20 + $0x20] sm:$0xff] %v1005_v12   ;;  %1073 = vst [vmem:[%s1319_s20 + $0x60] sm:$0xff] %v1045_v13   ;;  %v575_v28 = vmul.f32 %v1291_v24, %v479_v22  ;;  %v591_v29 = vmul.f32 %v1291_v24, %v543_v23  ;;  %v616_v30 = vadd.f32 %v1296_v26, %v577_v20  ;;  %v647_v34 = vmax.f32 %v615_v18, 0.0 }
 0x117   : > { %v632_v31 = vadd.f32 %v1296_v26, %v593_v21  ;;  %v663_v35 = vmax.f32 %v631_v19, 0.0  ;;  %v645_v38 = vmax.f32 %v613_v25, 0.0  ;;  %v661_v39 = vmax.f32 %v629_v27, 0.0 }
 0x118   : > { %v614_v32 = vadd.f32 %v1296_v26, %v575_v28  ;;  %v630_v33 = vadd.f32 %v1296_v26, %v591_v29  ;;  %v648_v36 = vmax.f32 %v616_v30, 0.0 }
 0x119   : > { %v664_v37 = vmax.f32 %v632_v31, 0.0 }
 0x11a   : > { %v646_v40 = vmax.f32 %v614_v32, 0.0  ;;  %v662_v24 = vmax.f32 %v630_v33, 0.0  ;;  %v1020_v41 = vpack.c.bf16 %v648_v36, %v647_v34 }
 0x11b   : > { %v1060_v42 = vpack.c.bf16 %v664_v37, %v663_v35 }
 0x11c   : > { %v1015_v43 = vpack.c.bf16 %v646_v40, %v645_v38  ;;  %v1055_v44 = vpack.c.bf16 %v662_v24, %v661_v39  ;;  %1068 = vst [vmem:[%s1319_s20 + $0x38] sm:$0xff] %v1020_v41  }
 0x11d   : > { %1076 = vst [vmem:[%s1319_s20 + $0x78] sm:$0xff] %v1060_v42  }
 0x11e   : > { %1067 = vst [vmem:[%s1319_s20 + $0x30] sm:$0xff] %v1015_v43   ;;  %1075 = vst [vmem:[%s1319_s20 + $0x70] sm:$0xff] %v1055_v44  }
 0x11f PF: > { %s14_s15 = sadd.s32 1, %s1203_s15  }
 0x120   : > { %p11_p4 = scmp.ge.s32.totalorder %s14_s15, 4  }
 0x122   :  { %13 = sbr.rel (!%p11_p4) target bundleno = 1 (0x1), region = 66 }

// kernel: bottleneck_forward.5
= control target key start
LH: loop header
LB: loop body
LE: loop exit
PB: predicated region body
PF: predicated region fallthrough
CT: control target
= control target key end

     0   :  { %s1644_s27 = smov 0   ;;  %s1934_s0 = inlined_call_operand.vmem [shape: bf16[512,128], index: 0, kind: input, shape index: {}]   ;;  %s1935_s1 = inlined_call_operand.vmem [shape: bf16[128,128], index: 1, kind: input, shape index: {}]   ;;  %s1936_s2 = inlined_call_operand.vmem [shape: f32[1,128], index: 2, kind: input, shape index: {}]   ;;  %s1937_s3 = inlined_call_operand.vmem [shape: f32[1,128], index: 3, kind: input, shape index: {}]   ;;  %s1938_s4 = inlined_call_operand.vmem [shape: bf16[512,128], index: 4, kind: input, shape index: {}]   ;;  %s1939_s5 = inlined_call_operand.vmem [shape: bf16[128,128], index: 5, kind: input, shape index: {}]   ;;  %s1940_s6 = inlined_call_operand.vmem [shape: f32[1,128], index: 6, kind: input, shape index: {}]   ;;  %s1941_s7 = inlined_call_operand.vmem [shape: f32[1,128], index: 7, kind: input, shape index: {}]   ;;  %s1942_s8 = inlined_call_operand.vmem [shape: f32[512,128], index: 8, kind: output, shape index: {}]  }
   0x1 LB: > { %s1326_s28 = sadd.s32 4294967295, %s1597_s27   ;;  %p1330_p0 = scmp.ge.s32.totalorder %s1597_s27, 1  ;;  %s1597_s27 = sphi %s1644_s27, %s18_s27  }
   0x2   : > { %p274_p1 = scmp.lt.s32.totalorder %s1597_s27, 3 }
   0x4   : > { %p275_p2 = pnand %p1330_p0, %p274_p1 }
   0x5   : > { %v1543_v0 = vld [vmem:[%s1935_s1] sm:$0xff] (!%p275_p2)   ;;  %s1331_s9 = sshll.u32 (!%p275_p2), %s1326_s28, 5  ;;  %v1545_v2 = vld [vmem:[%s1935_s1 + $0x8] sm:$0xff] (!%p275_p2)   ;;  %v1547_v4 = vld [vmem:[%s1935_s1 + $0x10] sm:$0xff] (!%p275_p2)  }
   0x6   : > { %278 = sbr.rel (%p275_p2) target bundleno = 318 (0x13e), region = 52  ;;  %v1544_v1 = vld [vmem:[%s1939_s5] sm:$0xff] (!%p275_p2)   ;;  %1439 = vmatprep.subr.bf16.mxu0 (!%p275_p2), %v1543_v0  ;;  %p314_p3 = scmp.lt.s32.totalorder (!%p275_p2), %s1331_s9, 63  ;;  %v1546_v3 = vld [vmem:[%s1939_s5 + $0x8] sm:$0xff] (!%p275_p2)   ;;  %v1548_v5 = vld [vmem:[%s1939_s5 + $0x10] sm:$0xff] (!%p275_p2)  }
   0x7   : > { %1487 = vmatprep.subr.bf16.mxu1 (!%p275_p2), %v1544_v1  ;;  %1440 = vmatpush3.bf16.msra.mxu0 (!%p275_p2), %v1543_v0  ;;  %v1549_v6 = vld [vmem:[%s1935_s1 + $0x18] sm:$0xff] (!%p275_p2)   ;;  %v1551_v8 = vld [vmem:[%s1935_s1 + $0x20] sm:$0xff] (!%p275_p2)   ;;  %v1553_v10 = vld [vmem:[%s1935_s1 + $0x28] sm:$0xff] (!%p275_p2)  }
   0x8   : > { %1488 = vmatpush3.bf16.msra.mxu1 (!%p275_p2), %v1544_v1  ;;  %1441 = vmatprep.subr.bf16.mxu0 (!%p275_p2), %v1545_v2  ;;  %v1550_v7 = vld [vmem:[%s1939_s5 + $0x18] sm:$0xff] (!%p275_p2)   ;;  %v1552_v9 = vld [vmem:[%s1939_s5 + $0x20] sm:$0xff] (!%p275_p2)   ;;  %v1554_v11 = vld [vmem:[%s1939_s5 + $0x28] sm:$0xff] (!%p275_p2)  }
   0x9   : > { %1489 = vmatprep.subr.bf16.mxu1 (!%p275_p2), %v1546_v3  ;;  %v1555_v14 = vld [vmem:[%s1935_s1 + $0x30] sm:$0xff] (!%p275_p2)   ;;  %v1557_v16 = vld [vmem:[%s1935_s1 + $0x38] sm:$0xff] (!%p275_p2)   ;;  %v1748_v48 = vld [vmem:[%s1936_s2] ss:$0 sm:$0xff] (!%p275_p2) }
   0xa   : > { %v1556_v15 = vld [vmem:[%s1939_s5 + $0x30] sm:$0xff] (!%p275_p2)   ;;  %v1558_v17 = vld [vmem:[%s1939_s5 + $0x38] sm:$0xff] (!%p275_p2)   ;;  %v1753_v49 = vld [vmem:[%s1940_s6] ss:$0 sm:$0xff] (!%p275_p2) }
   0xb   : > { %1442 = vmatpush3.bf16.msra.mxu0 (!%p275_p2), %v1545_v2  ;;  %v1758_v51 = vld [vmem:[%s1937_s3] ss:$0 sm:$0xff] (!%p275_p2) }
   0xc   : > { %1490 = vmatpush3.bf16.msra.mxu1 (!%p275_p2), %v1546_v3  ;;  %1443 = vmatprep.subr.bf16.mxu0 (!%p275_p2), %v1547_v4  ;;  %v1770_v0 = vld [vmem:[%s1941_s7] ss:$0 sm:$0xff] (!%p275_p2) }
   0xd   : > { %s1944_s9 = smov (!%p314_p3, %s1331_s9), 63  ;;  %1491 = vmatprep.subr.bf16.mxu1 %v1548_v5 }
   0xe   : > { %s1332_s24 = sshll.u32 %s1944_s9, 2 }
   0xf   : > { %1444 = vmatpush3.bf16.msra.mxu0 %v1547_v4  ;;  %s1688_s11 = scalar_lea.vmem %s1934_s0, %s1332_s24  ;;  %s1696_s16 = scalar_lea.vmem %s1938_s4, %s1332_s24 }
  0x10   : > { %1492 = vmatpush3.bf16.msra.mxu1 %v1548_v5  ;;  %1445 = vmatprep.subr.bf16.mxu0 %v1549_v6  ;;  %v1559_v12 = vld [vmem:[%s1688_s11] sm:$0xff]   ;;  %v1561_v18 = vld [vmem:[%s1688_s11 + $0x8] sm:$0xff]   ;;  %v1563_v20 = vld [vmem:[%s1688_s11 + $0x10] sm:$0xff]  }
  0x11   : > { %1493 = vmatprep.subr.bf16.mxu1 %v1550_v7  ;;  %v1560_v13 = vld [vmem:[%s1696_s16] sm:$0xff]   ;;  %1455 = vmatprep.mubr.bf16.mxu0 %v1559_v12  ;;  %v1562_v19 = vld [vmem:[%s1696_s16 + $0x8] sm:$0xff]   ;;  %v1564_v21 = vld [vmem:[%s1696_s16 + $0x10] sm:$0xff]  }
  0x12   : > { %1503 = vmatprep.mubr.bf16.mxu1 %v1560_v13  ;;  %v1565_v22 = vld [vmem:[%s1688_s11 + $0x18] sm:$0xff]   ;;  %v1567_v24 = vld [vmem:[%s1688_s11 + $0x20] sm:$0xff]   ;;  %v1569_v26 = vld [vmem:[%s1688_s11 + $0x28] sm:$0xff]  }
  0x13   : > { %1446 = vmatpush3.bf16.msra.mxu0 %v1549_v6  ;;  %v1566_v23 = vld [vmem:[%s1696_s16 + $0x18] sm:$0xff]   ;;  %v1568_v25 = vld [vmem:[%s1696_s16 + $0x20] sm:$0xff]   ;;  %v1570_v27 = vld [vmem:[%s1696_s16 + $0x28] sm:$0xff]  }
  0x14   : > { %1494 = vmatpush3.bf16.msra.mxu1 %v1550_v7  ;;  %1447 = vmatprep.subr.bf16.mxu0 %v1551_v8  ;;  %v1571_v28 = vld [vmem:[%s1688_s11 + $0x30] sm:$0xff]   ;;  %v1573_v30 = vld [vmem:[%s1688_s11 + $0x38] sm:$0xff]   ;;  %v1575_v32 = vld [vmem:[%s1688_s11 + $0x40] sm:$0xff]  }
  0x15   : > { %1495 = vmatprep.subr.bf16.mxu1 %v1552_v9  ;;  %v1572_v29 = vld [vmem:[%s1696_s16 + $0x30] sm:$0xff]   ;;  %v1574_v31 = vld [vmem:[%s1696_s16 + $0x38] sm:$0xff]   ;;  %v1576_v33 = vld [vmem:[%s1696_s16 + $0x40] sm:$0xff]  }
  0x16   : > { %v1577_v34 = vld [vmem:[%s1688_s11 + $0x48] sm:$0xff]   ;;  %v1579_v36 = vld [vmem:[%s1688_s11 + $0x50] sm:$0xff]   ;;  %v1581_v38 = vld [vmem:[%s1688_s11 + $0x58] sm:$0xff]  }
  0x17   : > { %1448 = vmatpush3.bf16.msra.mxu0 %v1551_v8  ;;  %v1578_v35 = vld [vmem:[%s1696_s16 + $0x48] sm:$0xff]   ;;  %v1580_v37 = vld [vmem:[%s1696_s16 + $0x50] sm:$0xff]   ;;  %v1582_v39 = vld [vmem:[%s1696_s16 + $0x58] sm:$0xff]  }
  0x18   : > { %1496 = vmatpush3.bf16.msra.mxu1 %v1552_v9  ;;  %1449 = vmatprep.subr.bf16.mxu0 %v1553_v10  ;;  %v1583_v40 = vld [vmem:[%s1688_s11 + $0x60] sm:$0xff]   ;;  %v1585_v42 = vld [vmem:[%s1688_s11 + $0x68] sm:$0xff]   ;;  %v1587_v44 = vld [vmem:[%s1688_s11 + $0x70] sm:$0xff]  }
  0x19   : > { %1497 = vmatprep.subr.bf16.mxu1 %v1554_v11  ;;  %v1584_v41 = vld [vmem:[%s1696_s16 + $0x60] sm:$0xff]   ;;  %v1586_v43 = vld [vmem:[%s1696_s16 + $0x68] sm:$0xff]   ;;  %v1588_v45 = vld [vmem:[%s1696_s16 + $0x70] sm:$0xff]  }
  0x1a   : > { %v1589_v46 = vld [vmem:[%s1688_s11 + $0x78] sm:$0xff]   ;;  %s1336_s11 = sshll.u32 %s1944_s9, 3 }
  0x1b   : > { %1450 = vmatpush3.bf16.msra.mxu0 %v1553_v10  ;;  %v1590_v47 = vld [vmem:[%s1696_s16 + $0x78] sm:$0xff]   ;;  %s1779_s17 = scalar_lea.vmem %s1942_s8, %s1336_s11 }
  0x1c   : > { %1498 = vmatpush3.bf16.msra.mxu1 %v1554_v11  ;;  %1451 = vmatprep.subr.bf16.mxu0 %v1555_v14 }
  0x1d   : > { %1499 = vmatprep.subr.bf16.mxu1 %v1556_v15 }
  0x1f   : > { %1452 = vmatpush3.bf16.msra.mxu0 %v1555_v14 }
  0x20   : > { %1500 = vmatpush3.bf16.msra.mxu1 %v1556_v15  ;;  %1453 = vmatprep.subr.bf16.mxu0 %v1557_v16 }
  0x21   : > { %1501 = vmatprep.subr.bf16.mxu1 %v1558_v17 }
  0x23   : > { %1454 = vmatpush3.bf16.msra.mxu0 %v1557_v16 }
  0x24   : > { %1502 = vmatpush3.bf16.msra.mxu1 %v1558_v17 }
  0x26   : > { %1456 = vmatmul.mubr.bf16.vlgmr.msra.gmra.mrb[0].mxu0 %v1561_v18 }
  0x27   : > { %1504 = vmatmul.mubr.bf16.vlgmr.msra.gmra.mrb[0].mxu1 %v1562_v19  ;;  %1459 = vmatprep.mubr.bf16.mxu0 %v1563_v20 }
  0x28   : > { %1507 = vmatprep.mubr.bf16.mxu1 %v1564_v21 }
  0x2e   : > { %1460 = vmatmul.mubr.bf16.gmra.mrb[4].mxu0 %v1565_v22 }
  0x2f   : > { %1508 = vmatmul.mubr.bf16.gmra.mrb[4].mxu1 %v1566_v23  ;;  %1463 = vmatprep.mubr.bf16.mxu0 %v1567_v24 }
  0x30   : > { %1511 = vmatprep.mubr.bf16.mxu1 %v1568_v25 }
  0x36   : > { %1464 = vmatmul.mubr.bf16.gmra.mrb[8].mxu0 %v1569_v26 }
  0x37   : > { %1512 = vmatmul.mubr.bf16.gmra.mrb[8].mxu1 %v1570_v27  ;;  %1467 = vmatprep.mubr.bf16.mxu0 %v1571_v28 }
  0x38   : > { %1515 = vmatprep.mubr.bf16.mxu1 %v1572_v29 }
  0x3e   : > { %1468 = vmatmul.mubr.bf16.gmra.mrb[12].mxu0 %v1573_v30 }
  0x3f   : > { %1516 = vmatmul.mubr.bf16.gmra.mrb[12].mxu1 %v1574_v31  ;;  %1471 = vmatprep.mubr.bf16.mxu0 %v1575_v32 }
  0x40   : > { %1519 = vmatprep.mubr.bf16.mxu1 %v1576_v33 }
  0x46   : > { %1472 = vmatmul.mubr.bf16.gmra.mrb[16].mxu0 %v1577_v34 }
  0x47   : > { %1520 = vmatmul.mubr.bf16.gmra.mrb[16].mxu1 %v1578_v35  ;;  %1475 = vmatprep.mubr.bf16.mxu0 %v1579_v36 }
  0x48   : > { %1523 = vmatprep.mubr.bf16.mxu1 %v1580_v37 }
  0x4e   : > { %1476 = vmatmul.mubr.bf16.gmra.mrb[20].mxu0 %v1581_v38 }
  0x4f   : > { %1524 = vmatmul.mubr.bf16.gmra.mrb[20].mxu1 %v1582_v39  ;;  %1479 = vmatprep.mubr.bf16.mxu0 %v1583_v40 }
  0x50   : > { %1527 = vmatprep.mubr.bf16.mxu1 %v1584_v41 }
  0x56   : > { %1480 = vmatmul.mubr.bf16.gmra.mrb[24].mxu0 %v1585_v42 }
  0x57   : > { %1528 = vmatmul.mubr.bf16.gmra.mrb[24].mxu1 %v1586_v43  ;;  %1483 = vmatprep.mubr.bf16.mxu0 %v1587_v44 }
  0x58   : > { %1531 = vmatprep.mubr.bf16.mxu1 %v1588_v45 }
  0x5e   : > { %1484 = vmatmul.mubr.bf16.gmra.mrb[28].mxu0 %v1589_v46 }
  0x5f   : > { %1532 = vmatmul.mubr.bf16.gmra.mrb[28].mxu1 %v1590_v47 }
  0xf9   : > { %v1457_v50 = vpop.f32.mrb[0].mxu0 }
  0xfa   : > { %v694_v52 = vmul.f32 %v1457_v50, %v1748_v48  ;;  %v1505_v53 = vpop.f32.mrb[0].mxu1  ;;  %v558_v54 = vpop.f32.mrb[1].mxu0 }
  0xfb   : > { %v1125_v55 = vmul.f32 %v1505_v53, %v1753_v49  ;;  %v692_v56 = vmul.f32 %v1748_v48, %v558_v54  ;;  %v989_v57 = vpop.f32.mrb[1].mxu1  ;;  %v1458_v58 = vpop.f32.mrb[2].mxu0 }
  0xfc   : > { %v733_v59 = vadd.f32 %v1758_v51, %v694_v52  ;;  %v1123_v60 = vmul.f32 %v1753_v49, %v989_v57  ;;  %v695_v61 = vmul.f32 %v1458_v58, %v1748_v48  ;;  %v1506_v62 = vpop.f32.mrb[2].mxu1  ;;  %v561_v63 = vpop.f32.mrb[3].mxu0 }
  0xfd   : > { %v731_v1 = vadd.f32 %v1758_v51, %v692_v56  ;;  %v693_v2 = vmul.f32 %v1748_v48, %v561_v63  ;;  %v992_v3 = vpop.f32.mrb[3].mxu1  ;;  %v1126_v6 = vmul.f32 %v1506_v62, %v1753_v49 }
  0xfe   : > { %v1157_v4 = vadd.f32 %v1125_v55, %v733_v59  ;;  %v734_v5 = vadd.f32 %v1758_v51, %v695_v61  ;;  %v1124_v9 = vmul.f32 %v1753_v49, %v992_v3 }
  0xff   : > { %v1155_v7 = vadd.f32 %v1123_v60, %v731_v1  ;;  %v732_v8 = vadd.f32 %v1758_v51, %v693_v2 }
 0x100   : > { %v1196_v10 = vadd.f32 %v1770_v0, %v1157_v4  ;;  %v1158_v11 = vadd.f32 %v1126_v6, %v734_v5 }
 0x101   : > { %v1194_v12 = vadd.f32 %v1770_v0, %v1155_v7  ;;  %v1156_v13 = vadd.f32 %v1124_v9, %v732_v8  ;;  %v1461_v14 = vpop.f32.mrb[4].mxu0 }
 0x102   : > { %1228 = vst [vmem:[%s1779_s17 + $0x10] sm:$0xff] %v1196_v10  ;;  %v1197_v15 = vadd.f32 %v1770_v0, %v1158_v11  ;;  %v698_v16 = vmul.f32 %v1461_v14, %v1748_v48  ;;  %v1509_v17 = vpop.f32.mrb[4].mxu1  ;;  %v574_v18 = vpop.f32.mrb[5].mxu0 }
 0x103   : > { %1226 = vst [vmem:[%s1779_s17] sm:$0xff] %v1194_v12  ;;  %v1195_v19 = vadd.f32 %v1770_v0, %v1156_v13  ;;  %v1129_v20 = vmul.f32 %v1509_v17, %v1753_v49  ;;  %v696_v21 = vmul.f32 %v1748_v48, %v574_v18  ;;  %v1005_v22 = vpop.f32.mrb[5].mxu1  ;;  %v1462_v23 = vpop.f32.mrb[6].mxu0 }
 0x104   : > { %1229 = vst [vmem:[%s1779_s17 + $0x18] sm:$0xff] %v1197_v15  ;;  %v737_v24 = vadd.f32 %v1758_v51, %v698_v16  ;;  %v1127_v25 = vmul.f32 %v1753_v49, %v1005_v22  ;;  %v699_v26 = vmul.f32 %v1462_v23, %v1748_v48  ;;  %v1510_v27 = vpop.f32.mrb[6].mxu1  ;;  %v577_v28 = vpop.f32.mrb[7].mxu0 }
 0x105   : > { %1227 = vst [vmem:[%s1779_s17 + $0x8] sm:$0xff] %v1195_v19  ;;  %v735_v29 = vadd.f32 %v1758_v51, %v696_v21  ;;  %v697_v30 = vmul.f32 %v1748_v48, %v577_v28  ;;  %v1008_v31 = vpop.f32.mrb[7].mxu1  ;;  %v1130_v34 = vmul.f32 %v1510_v27, %v1753_v49 }
 0x106   : > { %v1161_v32 = vadd.f32 %v1129_v20, %v737_v24  ;;  %v738_v33 = vadd.f32 %v1758_v51, %v699_v26  ;;  %v1128_v37 = vmul.f32 %v1753_v49, %v1008_v31 }
 0x107   : > { %v1159_v35 = vadd.f32 %v1127_v25, %v735_v29  ;;  %v736_v36 = vadd.f32 %v1758_v51, %v697_v30 }
 0x108   : > { %v1200_v38 = vadd.f32 %v1770_v0, %v1161_v32  ;;  %v1162_v39 = vadd.f32 %v1130_v34, %v738_v33 }
 0x109   : > { %v1198_v40 = vadd.f32 %v1770_v0, %v1159_v35  ;;  %v1160_v41 = vadd.f32 %v1128_v37, %v736_v36  ;;  %v1465_v42 = vpop.f32.mrb[8].mxu0 }
 0x10a   : > { %1232 = vst [vmem:[%s1779_s17 + $0x30] sm:$0xff] %v1200_v38  ;;  %v1201_v43 = vadd.f32 %v1770_v0, %v1162_v39  ;;  %v702_v44 = vmul.f32 %v1465_v42, %v1748_v48  ;;  %v1513_v45 = vpop.f32.mrb[8].mxu1  ;;  %v590_v46 = vpop.f32.mrb[9].mxu0 }
 0x10b   : > { %1230 = vst [vmem:[%s1779_s17 + $0x20] sm:$0xff] %v1198_v40  ;;  %v1199_v47 = vadd.f32 %v1770_v0, %v1160_v41  ;;  %v1133_v50 = vmul.f32 %v1513_v45, %v1753_v49  ;;  %v700_v52 = vmul.f32 %v1748_v48, %v590_v46  ;;  %v1021_v53 = vpop.f32.mrb[9].mxu1  ;;  %v1466_v54 = vpop.f32.mrb[10].mxu0 }
 0x10c   : > { %1233 = vst [vmem:[%s1779_s17 + $0x38] sm:$0xff] %v1201_v43  ;;  %v741_v55 = vadd.f32 %v1758_v51, %v702_v44  ;;  %v1131_v56 = vmul.f32 %v1753_v49, %v1021_v53  ;;  %v703_v57 = vmul.f32 %v1466_v54, %v1748_v48  ;;  %v1514_v58 = vpop.f32.mrb[10].mxu1  ;;  %v593_v59 = vpop.f32.mrb[11].mxu0 }
 0x10d   : > { %1231 = vst [vmem:[%s1779_s17 + $0x28] sm:$0xff] %v1199_v47  ;;  %v739_v60 = vadd.f32 %v1758_v51, %v700_v52  ;;  %v701_v61 = vmul.f32 %v1748_v48, %v593_v59  ;;  %v1024_v62 = vpop.f32.mrb[11].mxu1  ;;  %v1134_v2 = vmul.f32 %v1514_v58, %v1753_v49 }
 0x10e   : > { %v1165_v63 = vadd.f32 %v1133_v50, %v741_v55  ;;  %v742_v1 = vadd.f32 %v1758_v51, %v703_v57  ;;  %v1132_v5 = vmul.f32 %v1753_v49, %v1024_v62 }
 0x10f   : > { %v1163_v3 = vadd.f32 %v1131_v56, %v739_v60  ;;  %v740_v4 = vadd.f32 %v1758_v51, %v701_v61 }
 0x110   : > { %v1204_v6 = vadd.f32 %v1770_v0, %v1165_v63  ;;  %v1166_v7 = vadd.f32 %v1134_v2, %v742_v1 }
 0x111   : > { %v1202_v8 = vadd.f32 %v1770_v0, %v1163_v3  ;;  %v1164_v9 = vadd.f32 %v1132_v5, %v740_v4  ;;  %v1469_v10 = vpop.f32.mrb[12].mxu0 }
 0x112   : > { %1236 = vst [vmem:[%s1779_s17 + $0x50] sm:$0xff] %v1204_v6  ;;  %v1205_v11 = vadd.f32 %v1770_v0, %v1166_v7  ;;  %v706_v12 = vmul.f32 %v1469_v10, %v1748_v48  ;;  %v1517_v13 = vpop.f32.mrb[12].mxu1  ;;  %v606_v14 = vpop.f32.mrb[13].mxu0 }
 0x113   : > { %1234 = vst [vmem:[%s1779_s17 + $0x40] sm:$0xff] %v1202_v8  ;;  %v1203_v15 = vadd.f32 %v1770_v0, %v1164_v9  ;;  %v1137_v16 = vmul.f32 %v1517_v13, %v1753_v49  ;;  %v704_v17 = vmul.f32 %v1748_v48, %v606_v14  ;;  %v1037_v18 = vpop.f32.mrb[13].mxu1  ;;  %v1470_v19 = vpop.f32.mrb[14].mxu0 }
 0x114   : > { %1237 = vst [vmem:[%s1779_s17 + $0x58] sm:$0xff] %v1205_v11  ;;  %v745_v20 = vadd.f32 %v1758_v51, %v706_v12  ;;  %v1135_v21 = vmul.f32 %v1753_v49, %v1037_v18  ;;  %v707_v22 = vmul.f32 %v1470_v19, %v1748_v48  ;;  %v1518_v23 = vpop.f32.mrb[14].mxu1  ;;  %v609_v24 = vpop.f32.mrb[15].mxu0 }
 0x115   : > { %1235 = vst [vmem:[%s1779_s17 + $0x48] sm:$0xff] %v1203_v15  ;;  %v743_v25 = vadd.f32 %v1758_v51, %v704_v17  ;;  %v705_v26 = vmul.f32 %v1748_v48, %v609_v24  ;;  %v1040_v27 = vpop.f32.mrb[15].mxu1  ;;  %v1138_v30 = vmul.f32 %v1518_v23, %v1753_v49 }
 0x116   : > { %v1169_v28 = vadd.f32 %v1137_v16, %v745_v20  ;;  %v746_v29 = vadd.f32 %v1758_v51, %v707_v22  ;;  %v1136_v33 = vmul.f32 %v1753_v49, %v1040_v27 }
 0x117   : > { %v1167_v31 = vadd.f32 %v1135_v21, %v743_v25  ;;  %v744_v32 = vadd.f32 %v1758_v51, %v705_v26 }
 0x118   : > { %v1208_v34 = vadd.f32 %v1770_v0, %v1169_v28  ;;  %v1170_v35 = vadd.f32 %v1138_v30, %v746_v29 }
 0x119   : > { %v1206_v36 = vadd.f32 %v1770_v0, %v1167_v31  ;;  %v1168_v37 = vadd.f32 %v1136_v33, %v744_v32  ;;  %v1473_v38 = vpop.f32.mrb[16].mxu0 }
 0x11a   : > { %1240 = vst [vmem:[%s1779_s17 + $0x70] sm:$0xff] %v1208_v34  ;;  %v1209_v39 = vadd.f32 %v1770_v0, %v1170_v35  ;;  %v710_v40 = vmul.f32 %v1473_v38, %v1748_v48  ;;  %v1521_v41 = vpop.f32.mrb[16].mxu1  ;;  %v622_v42 = vpop.f32.mrb[17].mxu0 }
 0x11b   : > { %1238 = vst [vmem:[%s1779_s17 + $0x60] sm:$0xff] %v1206_v36  ;;  %v1207_v43 = vadd.f32 %v1770_v0, %v1168_v37  ;;  %v1141_v44 = vmul.f32 %v1521_v41, %v1753_v49  ;;  %v708_v45 = vmul.f32 %v1748_v48, %v622_v42  ;;  %v1053_v46 = vpop.f32.mrb[17].mxu1  ;;  %v1474_v47 = vpop.f32.mrb[18].mxu0 }
 0x11c   : > { %1241 = vst [vmem:[%s1779_s17 + $0x78] sm:$0xff] %v1209_v39  ;;  %v749_v50 = vadd.f32 %v1758_v51, %v710_v40  ;;  %v1139_v52 = vmul.f32 %v1753_v49, %v1053_v46  ;;  %v711_v53 = vmul.f32 %v1474_v47, %v1748_v48  ;;  %v1522_v54 = vpop.f32.mrb[18].mxu1  ;;  %v625_v55 = vpop.f32.mrb[19].mxu0 }
 0x11d   : > { %1239 = vst [vmem:[%s1779_s17 + $0x68] sm:$0xff] %v1207_v43  ;;  %v747_v56 = vadd.f32 %v1758_v51, %v708_v45  ;;  %v709_v57 = vmul.f32 %v1748_v48, %v625_v55  ;;  %v1056_v58 = vpop.f32.mrb[19].mxu1  ;;  %v1142_v61 = vmul.f32 %v1522_v54, %v1753_v49 }
 0x11e   : > { %v1173_v59 = vadd.f32 %v1141_v44, %v749_v50  ;;  %v750_v60 = vadd.f32 %v1758_v51, %v711_v53  ;;  %v1140_v1 = vmul.f32 %v1753_v49, %v1056_v58 }
 0x11f   : > { %v1171_v62 = vadd.f32 %v1139_v52, %v747_v56  ;;  %v748_v63 = vadd.f32 %v1758_v51, %v709_v57 }
 0x120   : > { %v1212_v2 = vadd.f32 %v1770_v0, %v1173_v59  ;;  %v1174_v3 = vadd.f32 %v1142_v61, %v750_v60 }
 0x121   : > { %v1210_v4 = vadd.f32 %v1770_v0, %v1171_v62  ;;  %v1172_v5 = vadd.f32 %v1140_v1, %v748_v63  ;;  %v1477_v6 = vpop.f32.mrb[20].mxu0 }
 0x122   : > { %1244 = vst [vmem:[%s1779_s17 + $0x90] sm:$0xff] %v1212_v2  ;;  %v1213_v7 = vadd.f32 %v1770_v0, %v1174_v3  ;;  %v714_v8 = vmul.f32 %v1477_v6, %v1748_v48  ;;  %v1525_v9 = vpop.f32.mrb[20].mxu1  ;;  %v638_v10 = vpop.f32.mrb[21].mxu0 }
 0x123   : > { %1242 = vst [vmem:[%s1779_s17 + $0x80] sm:$0xff] %v1210_v4  ;;  %v1211_v11 = vadd.f32 %v1770_v0, %v1172_v5  ;;  %v1145_v12 = vmul.f32 %v1525_v9, %v1753_v49  ;;  %v712_v13 = vmul.f32 %v1748_v48, %v638_v10  ;;  %v1069_v14 = vpop.f32.mrb[21].mxu1  ;;  %v1478_v15 = vpop.f32.mrb[22].mxu0 }
 0x124   : > { %1245 = vst [vmem:[%s1779_s17 + $0x98] sm:$0xff] %v1213_v7  ;;  %v753_v16 = vadd.f32 %v1758_v51, %v714_v8  ;;  %v1143_v17 = vmul.f32 %v1753_v49, %v1069_v14  ;;  %v715_v18 = vmul.f32 %v1478_v15, %v1748_v48  ;;  %v1526_v19 = vpop.f32.mrb[22].mxu1  ;;  %v641_v20 = vpop.f32.mrb[23].mxu0 }
 0x125   : > { %1243 = vst [vmem:[%s1779_s17 + $0x88] sm:$0xff] %v1211_v11  ;;  %v751_v21 = vadd.f32 %v1758_v51, %v712_v13  ;;  %v713_v22 = vmul.f32 %v1748_v48, %v641_v20  ;;  %v1072_v23 = vpop.f32.mrb[23].mxu1  ;;  %v1146_v26 = vmul.f32 %v1526_v19, %v1753_v49 }
 0x126   : > { %v1177_v24 = vadd.f32 %v1145_v12, %v753_v16  ;;  %v754_v25 = vadd.f32 %v1758_v51, %v715_v18  ;;  %v1144_v29 = vmul.f32 %v1753_v49, %v1072_v23 }
 0x127   : > { %v1175_v27 = vadd.f32 %v1143_v17, %v751_v21  ;;  %v752_v28 = vadd.f32 %v1758_v51, %v713_v22 }
 0x128   : > { %v1216_v30 = vadd.f32 %v1770_v0, %v1177_v24  ;;  %v1178_v31 = vadd.f32 %v1146_v26, %v754_v25 }
 0x129   : > { %v1214_v32 = vadd.f32 %v1770_v0, %v1175_v27  ;;  %v1176_v33 = vadd.f32 %v1144_v29, %v752_v28  ;;  %v1481_v34 = vpop.f32.mrb[24].mxu0 }
 0x12a   : > { %1248 = vst [vmem:[%s1779_s17 + $0xb0] sm:$0xff] %v1216_v30  ;;  %v1217_v35 = vadd.f32 %v1770_v0, %v1178_v31  ;;  %v718_v36 = vmul.f32 %v1481_v34, %v1748_v48  ;;  %v1529_v37 = vpop.f32.mrb[24].mxu1  ;;  %v654_v38 = vpop.f32.mrb[25].mxu0 }
 0x12b   : > { %1246 = vst [vmem:[%s1779_s17 + $0xa0] sm:$0xff] %v1214_v32  ;;  %v1215_v39 = vadd.f32 %v1770_v0, %v1176_v33  ;;  %v1149_v40 = vmul.f32 %v1529_v37, %v1753_v49  ;;  %v716_v41 = vmul.f32 %v1748_v48, %v654_v38  ;;  %v1085_v42 = vpop.f32.mrb[25].mxu1  ;;  %v1482_v43 = vpop.f32.mrb[26].mxu0 }
 0x12c   : > { %1249 = vst [vmem:[%s1779_s17 + $0xb8] sm:$0xff] %v1217_v35  ;;  %v757_v44 = vadd.f32 %v1758_v51, %v718_v36  ;;  %v1147_v45 = vmul.f32 %v1753_v49, %v1085_v42  ;;  %v719_v46 = vmul.f32 %v1482_v43, %v1748_v48  ;;  %v1530_v47 = vpop.f32.mrb[26].mxu1  ;;  %v657_v50 = vpop.f32.mrb[27].mxu0 }
 0x12d   : > { %1247 = vst [vmem:[%s1779_s17 + $0xa8] sm:$0xff] %v1215_v39  ;;  %v755_v52 = vadd.f32 %v1758_v51, %v716_v41  ;;  %v717_v53 = vmul.f32 %v1748_v48, %v657_v50  ;;  %v1088_v54 = vpop.f32.mrb[27].mxu1  ;;  %v1150_v57 = vmul.f32 %v1530_v47, %v1753_v49 }
 0x12e   : > { %v1181_v55 = vadd.f32 %v1149_v40, %v757_v44  ;;  %v758_v56 = vadd.f32 %v1758_v51, %v719_v46  ;;  %v1148_v60 = vmul.f32 %v1753_v49, %v1088_v54 }
 0x12f   : > { %v1179_v58 = vadd.f32 %v1147_v45, %v755_v52  ;;  %v756_v59 = vadd.f32 %v1758_v51, %v717_v53 }
 0x130   : > { %v1220_v61 = vadd.f32 %v1770_v0, %v1181_v55  ;;  %v1182_v62 = vadd.f32 %v1150_v57, %v758_v56 }
 0x131   : > { %v1218_v63 = vadd.f32 %v1770_v0, %v1179_v58  ;;  %v1180_v1 = vadd.f32 %v1148_v60, %v756_v59  ;;  %v1485_v2 = vpop.f32.mrb[28].mxu0 }
 0x132   : > { %1252 = vst [vmem:[%s1779_s17 + $0xd0] sm:$0xff] %v1220_v61  ;;  %v1221_v3 = vadd.f32 %v1770_v0, %v1182_v62  ;;  %v722_v4 = vmul.f32 %v1485_v2, %v1748_v48  ;;  %v1533_v5 = vpop.f32.mrb[28].mxu1  ;;  %v670_v6 = vpop.f32.mrb[29].mxu0 }
 0x133   : > { %1250 = vst [vmem:[%s1779_s17 + $0xc0] sm:$0xff] %v1218_v63  ;;  %v1219_v7 = vadd.f32 %v1770_v0, %v1180_v1  ;;  %v1153_v8 = vmul.f32 %v1533_v5, %v1753_v49  ;;  %v720_v9 = vmul.f32 %v1748_v48, %v670_v6  ;;  %v1101_v10 = vpop.f32.mrb[29].mxu1  ;;  %v1486_v11 = vpop.f32.mrb[30].mxu0 }
 0x134   : > { %1253 = vst [vmem:[%s1779_s17 + $0xd8] sm:$0xff] %v1221_v3  ;;  %v761_v12 = vadd.f32 %v1758_v51, %v722_v4  ;;  %v1151_v13 = vmul.f32 %v1753_v49, %v1101_v10  ;;  %v723_v14 = vmul.f32 %v1486_v11, %v1748_v48  ;;  %v1534_v15 = vpop.f32.mrb[30].mxu1  ;;  %v673_v16 = vpop.f32.mrb[31].mxu0 }
 0x135   : > { %1251 = vst [vmem:[%s1779_s17 + $0xc8] sm:$0xff] %v1219_v7  ;;  %v759_v17 = vadd.f32 %v1758_v51, %v720_v9  ;;  %v721_v18 = vmul.f32 %v1748_v48, %v673_v16  ;;  %v1104_v19 = vpop.f32.mrb[31].mxu1  ;;  %v1154_v22 = vmul.f32 %v1534_v15, %v1753_v49 }
 0x136   : > { %v1185_v20 = vadd.f32 %v1153_v8, %v761_v12  ;;  %v762_v21 = vadd.f32 %v1758_v51, %v723_v14  ;;  %v1152_v25 = vmul.f32 %v1753_v49, %v1104_v19 }
 0x137   : > { %v1183_v23 = vadd.f32 %v1151_v13, %v759_v17  ;;  %v760_v24 = vadd.f32 %v1758_v51, %v721_v18 }
 0x138   : > { %v1224_v26 = vadd.f32 %v1770_v0, %v1185_v20  ;;  %v1186_v27 = vadd.f32 %v1154_v22, %v762_v21 }
 0x139   : > { %v1222_v28 = vadd.f32 %v1770_v0, %v1183_v23  ;;  %v1184_v29 = vadd.f32 %v1152_v25, %v760_v24 }
 0x13a   : > { %1256 = vst [vmem:[%s1779_s17 + $0xf0] sm:$0xff] %v1224_v26  ;;  %v1225_v48 = vadd.f32 %v1770_v0, %v1186_v27 }
 0x13b   : > { %1254 = vst [vmem:[%s1779_s17 + $0xe0] sm:$0xff] %v1222_v28  ;;  %v1223_v30 = vadd.f32 %v1770_v0, %v1184_v29 }
 0x13c   : > { %1257 = vst [vmem:[%s1779_s17 + $0xf8] sm:$0xff] %v1225_v48 }
 0x13d   : > { %1255 = vst [vmem:[%s1779_s17 + $0xe8] sm:$0xff] %v1223_v30 }
 0x13e PF: > { %s18_s27 = sadd.s32 1, %s1597_s27  }
 0x13f   : > { %p15_p4 = scmp.ge.s32.totalorder %s18_s27, 4  }
 0x141   :  { %17 = sbr.rel (!%p15_p4) target bundleno = 1 (0x1), region = 85 }

// kernel: bottleneck_forward.4
= control target key start
LH: loop header
LB: loop body
LE: loop exit
PB: predicated region body
PF: predicated region fallthrough
CT: control target
= control target key end

     0   :  { %s7105_s15 = smov 0   ;;  %s8991_s0 = inlined_call_operand.vmem [shape: bf16[2,18,18,128], index: 0, kind: input, shape index: {}]   ;;  %s8992_s1 = inlined_call_operand.vmem [shape: bf16[1152,128], index: 1, kind: input, shape index: {}]   ;;  %s8993_s2 = inlined_call_operand.vmem [shape: f32[1,128], index: 2, kind: input, shape index: {}]   ;;  %s8994_s3 = inlined_call_operand.vmem [shape: f32[1,128], index: 3, kind: input, shape index: {}]   ;;  %s8995_s4 = inlined_call_operand.vmem [shape: bf16[2,16,16,128], index: 4, kind: output, shape index: {}]  }
   0x1 LB: > { %s5325_s16 = sadd.s32 4294967295, %s7078_s15   ;;  %p5329_p0 = scmp.ge.s32.totalorder %s7078_s15, 1  ;;  %s7078_s15 = sphi %s7105_s15, %s14_s15  }
   0x2   : > { %p162_p1 = scmp.lt.s32.totalorder %s7078_s15, 3 }
   0x4   : > { %p163_p2 = pnand %p5329_p0, %p162_p1 }
   0x6   : > { %166 = sbr.rel (%p163_p2) target bundleno = 591 (0x24f), region = 36 }
   0xd   : > { %v6882_v0 = vld [vmem:[%s8992_s1 + $0x40] sm:$0xff]   ;;  %p188_p3 = scmp.lt.s32.totalorder %s5325_s16, 1  ;;  %v6884_v2 = vld [vmem:[%s8992_s1 + $0x48] sm:$0xff]   ;;  %v6886_v4 = vld [vmem:[%s8992_s1 + $0x50] sm:$0xff]   ;;  %vm279_vm0 = vsmask.f32 3328 }
   0xe   : > { %v6883_v1 = vld [vmem:[%s8992_s1 + $0x100] sm:$0xff]   ;;  %6169 = vmatprep.subr.bf16.mxu1 %v6882_v0  ;;  %v6885_v3 = vld [vmem:[%s8992_s1 + $0x108] sm:$0xff]   ;;  %v6887_v5 = vld [vmem:[%s8992_s1 + $0x110] sm:$0xff]   ;;  %vm280_vm1 = vsmask.f32 7440  ;;  %vm1308_vm3 = vcmask 1042432  }
   0xf   : > { %6361 = vmatprep.subr.bf16.mxu0 %v6883_v1  ;;  %6170 = vmatpush3.bf16.msra.mxu1 %v6882_v0  ;;  %s9063_s16 = smov (!%p188_p3, %s5325_s16), 1  ;;  %v6888_v6 = vld [vmem:[%s8992_s1 + $0x58] sm:$0xff]   ;;  %v6890_v8 = vld [vmem:[%s8992_s1 + $0x60] sm:$0xff]   ;;  %v6892_v10 = vld [vmem:[%s8992_s1 + $0x68] sm:$0xff]   ;;  %vm1309_vm4 = vcmask 1046532  }
  0x10   : > { %6362 = vmatpush3.bf16.msra.mxu0 %v6883_v1  ;;  %6171 = vmatprep.subr.bf16.mxu1 %v6884_v2  ;;  %v6889_v7 = vld [vmem:[%s8992_s1 + $0x118] sm:$0xff]   ;;  %s6873_s7 = smul.u32 216, %s9063_s16  ;;  %v6891_v9 = vld [vmem:[%s8992_s1 + $0x120] sm:$0xff]   ;;  %v6893_v11 = vld [vmem:[%s8992_s1 + $0x128] sm:$0xff]   ;;  %s5825_s22 = sshll.u32 %s9063_s16, 7 }
  0x11   : > { %6363 = vmatprep.subr.bf16.mxu0 %v6885_v3  ;;  %v6894_v25 = vld [vmem:[%s8992_s1 + $0x70] sm:$0xff]   ;;  %v6896_v36 = vld [vmem:[%s8992_s1 + $0x78] sm:$0xff]   ;;  %vm7181_vm2 = vmor %vm279_vm0, %vm280_vm1  ;;  %s8909_s25 = scalar_lea.vmem %s8995_s4, %s5825_s22 }
  0x12   : > { %s7149_s14 = scalar_lea.vmem %s8991_s0, %s6873_s7  ;;  %v6895_v30 = vld [vmem:[%s8992_s1 + $0x130] sm:$0xff]   ;;  %v6897_v51 = vld [vmem:[%s8992_s1 + $0x138] sm:$0xff]   ;;  %vm7427_vm5 = vmor %vm1308_vm3, %vm1309_vm4 }
  0x13   : > { %6172 = vmatpush3.bf16.msra.mxu1 %v6884_v2  ;;  %v199_v12 = vld [vmem:[%s7149_s14] sm:$0xf]  ;;  %v200_v13 = vld [vmem:[%s7149_s14 + $0x4] sm:$0xf]  ;;  %v247_v14 = vld [vmem:[%s7149_s14 + $0x8] sm:$0x1] }
  0x14   : > { %6364 = vmatpush3.bf16.msra.mxu0 %v6885_v3  ;;  %6173 = vmatprep.subr.bf16.mxu1 %v6886_v4  ;;  %v283_v15 = vshrl.u32 %v199_v12, 16  ;;  %v286_v16 = vshll.u32 %v199_v12, 16  ;;  %v292_v17 = vshll.u32 %v200_v13, 16  ;;  %v296_v18 = vshrl.u32 %v200_v13, 16  ;;  %v5477_v20 = vld [vmem:[%s7149_s14 + $0xc] sm:$0xf] }
  0x15   : > { %6365 = vmatprep.subr.bf16.mxu0 %v6887_v5  ;;  %v302_v19 = vshll.u32 %v247_v14, 16  ;;  %v7162_v23 = vld [vmem:[%s7149_s14 + $0x10] sm:$0xf]  ;;  %v7165_v24 = vld [vmem:[%s7149_s14 + $0x14] sm:$0x1]  ;;  %v2179_v29 = vshrl.u32 %v5477_v20, 16 }
  0x16   : > { %v285_v21 = vrot.slane %v283_v15, 4  ;;  %v288_v22 = vrot.slane %v286_v16, 5  ;;  %v294_v26 = vrot.slane %v292_v17, 5  ;;  %v298_v27 = vrot.slane %v296_v18, 4  ;;  %v201_v35 = vld [vmem:[%s7149_s14 + $0xc] sm:$0xf] }
  0x17   : > { %6174 = vmatpush3.bf16.msra.mxu1 %v6886_v4  ;;  %v304_v28 = vrot.slane %v302_v19, 5  ;;  %v2182_v32 = vshll.u32 %v5477_v20, 16  ;;  %v2188_v33 = vshll.u32 %v7162_v23, 16  ;;  %v2192_v34 = vshrl.u32 %v7162_v23, 16  ;;  %v202_v42 = vld [vmem:[%s7149_s14 + $0x10] sm:$0xf] }
  0x18   : > { %6366 = vmatpush3.bf16.msra.mxu0 %v6887_v5  ;;  %6175 = vmatprep.subr.bf16.mxu1 %v6888_v6  ;;  %v289_v31 = vor.u32 %v288_v22, %v285_v21  ;;  %v299_v38 = vor.u32 %v298_v27, %v294_v26  ;;  %v2181_v39 = vrot.slane %v2179_v29, 4  ;;  %v2198_v40 = vshll.u32 %v7165_v24, 16  ;;  %v248_v55 = vld [vmem:[%s7149_s14 + $0x14] sm:$0x1]  ;;  %v5480_v57 = vld [vmem:[%s7149_s14 + $0x18] sm:$0xf] }
  0x19   : > { %6367 = vmatprep.subr.bf16.mxu0 %v6889_v7  ;;  %v2952_v41 = vrot.slane %v7165_v24, 5  ;;  %v2184_v44 = vrot.slane %v2182_v32, 5  ;;  %v2190_v45 = vrot.slane %v2188_v33, 5  ;;  %v2194_v46 = vrot.slane %v2192_v34, 4  ;;  %v7198_v62 = vld [vmem:[%s7149_s14 + $0x1c] sm:$0xf] }
  0x1a   : > { %v290_v43 = vrot.slane %v289_v31, 4  ;;  %v300_v47 = vrot.slane %v299_v38, 4  ;;  %v2200_v48 = vrot.slane %v2198_v40, 5  ;;  %v307_v49 = vshrl.u32 %v201_v35, 16  ;;  %v6898_v3 = vld [vmem:[%s8992_s1] sm:$0xff]  }
  0x1b   : > { %6176 = vmatpush3.bf16.msra.mxu1 %v6888_v6  ;;  %v310_v50 = vshll.u32 %v201_v35, 16  ;;  %v2185_v53 = vor.u32 %v2184_v44, %v2181_v39  ;;  %v2195_v54 = vor.u32 %v2194_v46, %v2190_v45  ;;  %v316_v56 = vshll.u32 %v202_v42, 16  ;;  %v7206_v4 = vld [vmem:[%s8992_s1 + $0x140] sm:$0xff]   ;;  %v203_v21 = vld [vmem:[%s7149_s14 + $0x18] sm:$0xf]  ;;  %v6901_v46 = vld [vmem:[%s8992_s1 + $0x8] sm:$0xff]  }
  0x1c   : > { %6368 = vmatpush3.bf16.msra.mxu0 %v6889_v7  ;;  %6177 = vmatprep.subr.bf16.mxu1 %v6890_v8  ;;  %v295_v52 = vsel %vm7181_vm2, %v290_v43, %v294_v26  ;;  %v305_v58 = vsel %vm7181_vm2, %v300_v47, %v304_v28  ;;  %v309_v59 = vrot.slane %v307_v49, 4  ;;  %v320_v61 = vshrl.u32 %v202_v42, 16  ;;  %v204_v28 = vld [vmem:[%s7149_s14 + $0x1c] sm:$0xf]  ;;  %v249_v33 = vld [vmem:[%s7149_s14 + $0x20] sm:$0x1] }
  0x1d   : > { %6369 = vmatprep.subr.bf16.mxu0 %v6891_v9  ;;  %v312_v60 = vrot.slane %v310_v50, 5  ;;  %v5333_v63 = vcombine.low %v295_v52, %v305_v58  ;;  %v2186_v0 = vrot.slane %v2185_v53, 4  ;;  %v2196_v1 = vrot.slane %v2195_v54, 4  ;;  %v5483_v39 = vld [vmem:[%s7149_s14 + $0x24] sm:$0xf] }
  0x1e   : > { %v318_v2 = vrot.slane %v316_v56, 5  ;;  %v322_v6 = vrot.slane %v320_v61, 4  ;;  %v326_v7 = vshll.u32 %v248_v55, 16  ;;  %v2206_v12 = vshll.u32 %v5480_v57, 16  ;;  %v205_v52 = vld [vmem:[%s7149_s14 + $0x24] sm:$0xf] }
  0x1f   : > { %6178 = vmatpush3.bf16.msra.mxu1 %v6890_v8  ;;  %v313_v5 = vor.u32 %v312_v60, %v309_v59  ;;  %v7209_v8 = vld [vmem:[%s7149_s14 + $0x20] sm:$0x1]  ;;  %6185 = vmatprep.mubr.bf16.mxu1 %v5333_v63  ;;  %v2212_v19 = vshll.u32 %v7198_v62, 16  ;;  %v2216_v20 = vshrl.u32 %v7198_v62, 16  ;;  %v2956_v27 = vrot.slane %v7198_v62, 5  ;;  %v6900_v63 = vld [vmem:[%s8992_s1 + $0x148] sm:$0xff]  }
  0x20   : > { %6370 = vmatpush3.bf16.msra.mxu0 %v6891_v9  ;;  %6179 = vmatprep.subr.bf16.mxu1 %v6892_v10  ;;  %v2191_v9 = vsel %vm7181_vm2, %v2186_v0, %v2190_v45  ;;  %v323_v15 = vor.u32 %v322_v6, %v318_v2  ;;  %v328_v16 = vrot.slane %v326_v7, 5  ;;  %v2208_v18 = vrot.slane %v2206_v12, 5  ;;  %v7234_v45 = vld [vmem:[%s7149_s14 + $0x28] sm:$0xf] }
  0x21   : > { %6371 = vmatprep.subr.bf16.mxu0 %v6893_v11  ;;  %v314_v14 = vrot.slane %v313_v5, 4  ;;  %v2222_v26 = vshll.u32 %v7209_v8, 16  ;;  %v2218_v31 = vrot.slane %v2216_v20, 4  ;;  %v2959_v32 = vrot.slane %v7209_v8, 5  ;;  %v206_v5 = vld [vmem:[%s7149_s14 + $0x28] sm:$0xf] }
  0x22   : > { %v331_v38 = vshrl.u32 %v203_v21, 16  ;;  %v334_v44 = vshll.u32 %v203_v21, 16  ;;  %v344_v49 = vshrl.u32 %v204_v28, 16  ;;  %v350_v50 = vshll.u32 %v249_v33, 16  ;;  %v7265_v33 = vld [vmem:[%s7149_s14 + $0x34] sm:$0xf] }
  0x23   : > { %6180 = vmatpush3.bf16.msra.mxu1 %v6892_v10  ;;  %v2201_v10 = vsel %vm7181_vm2, %v2196_v1, %v2200_v48  ;;  %v319_v22 = vsel %vm7181_vm2, %v314_v14, %v318_v2  ;;  %v2224_v35 = vrot.slane %v2222_v26, 5  ;;  %v340_v48 = vshll.u32 %v204_v28, 16 }
  0x24   : > { %6372 = vmatpush3.bf16.msra.mxu0 %v6893_v11  ;;  %6181 = vmatprep.subr.bf16.mxu1 %v6894_v25  ;;  %v2203_v11 = vshrl.u32 %v5480_v57, 16  ;;  %v5525_v13 = vcombine.low %v2191_v9, %v2201_v10  ;;  %v333_v47 = vrot.slane %v331_v38, 4  ;;  %v336_v55 = vrot.slane %v334_v44, 5 }
  0x25   : > { %6373 = vmatprep.subr.bf16.mxu0 %v6895_v30  ;;  %v2227_v56 = vshrl.u32 %v5483_v39, 16  ;;  %v342_v57 = vrot.slane %v340_v48, 5  ;;  %v346_v58 = vrot.slane %v344_v49, 4  ;;  %v352_v59 = vrot.slane %v350_v50, 5  ;;  %v6903_v48 = vld [vmem:[%s8992_s1 + $0x158] sm:$0xff]  }
  0x26   : > { %v2205_v17 = vrot.slane %v2203_v11, 4  ;;  %6377 = vmatprep.mubr.bf16.mxu0 %v5525_v13  ;;  %v2230_v60 = vshll.u32 %v5483_v39, 16  ;;  %v337_v0 = vor.u32 %v336_v55, %v333_v47  ;;  %v2236_v2 = vshll.u32 %v7234_v45, 16  ;;  %v250_v11 = vld [vmem:[%s7149_s14 + $0x2c] sm:$0x1] }
  0x27   : > { %6182 = vmatpush3.bf16.msra.mxu1 %v6894_v25  ;;  %v324_v25 = vrot.slane %v323_v15, 4  ;;  %v2229_v1 = vrot.slane %v2227_v56, 4  ;;  %v347_v7 = vor.u32 %v346_v58, %v342_v57  ;;  %v2240_v10 = vshrl.u32 %v7234_v45, 16 }
  0x28   : > { %6374 = vmatpush3.bf16.msra.mxu0 %v6895_v30  ;;  %6183 = vmatprep.subr.bf16.mxu1 %v6896_v36  ;;  %v2209_v29 = vor.u32 %v2208_v18, %v2205_v17  ;;  %v2214_v30 = vrot.slane %v2212_v19, 5  ;;  %v2232_v9 = vrot.slane %v2230_v60, 5  ;;  %v338_v12 = vrot.slane %v337_v0, 4  ;;  %v6910_v60 = vld [vmem:[%s8992_s1 + $0x20] sm:$0xff]  }
  0x29   : > { %6375 = vmatprep.subr.bf16.mxu0 %v6897_v51  ;;  %v329_v34 = vsel %vm7181_vm2, %v324_v25, %v328_v16  ;;  %v2238_v13 = vrot.slane %v2236_v2, 5  ;;  %v355_v15 = vshrl.u32 %v205_v52, 16  ;;  %v5486_v16 = vld [vmem:[%s7149_s14 + $0x30] sm:$0xf]  ;;  %v348_v17 = vrot.slane %v347_v7, 4 }
  0x2a   : > { %v5334_v40 = vcombine.low %v319_v22, %v329_v34  ;;  %v2210_v42 = vrot.slane %v2209_v29, 4  ;;  %v2219_v43 = vor.u32 %v2218_v31, %v2214_v30  ;;  %v2233_v18 = vor.u32 %v2232_v9, %v2229_v1  ;;  %v6907_v34 = vld [vmem:[%s8992_s1 + $0x18] sm:$0xff]  }
  0x2b   : > { %6184 = vmatpush3.bf16.msra.mxu1 %v6896_v36  ;;  %v7230_v36 = vrot.slane %v2956_v27, 4  ;;  %v2242_v19 = vrot.slane %v2240_v10, 4  ;;  %v358_v20 = vshll.u32 %v205_v52, 16  ;;  %v343_v21 = vsel %vm7181_vm2, %v338_v12, %v342_v57  ;;  %v251_v2 = vld [vmem:[%s7149_s14 + $0x38] sm:$0x1] }
  0x2c   : > { %6376 = vmatpush3.bf16.msra.mxu0 %v6897_v51  ;;  %6217 = vmatprep.subr.bf16.mxu1 %v6898_v3  ;;  %v7240_v51 = vld [vmem:[%s7149_s14 + $0x2c] sm:$0x1]  ;;  %v2215_v53 = vsel %vm7181_vm2, %v2210_v42, %v2214_v30  ;;  %v2220_v54 = vrot.slane %v2219_v43, 4  ;;  %v357_v25 = vrot.slane %v355_v15, 4  ;;  %v364_v26 = vshll.u32 %v206_v5, 16 }
  0x2d   : > { %6409 = vmatprep.subr.bf16.mxu0 %v7206_v4  ;;  %v2246_v14 = vshll.u32 %v7240_v51, 16  ;;  %v353_v28 = vsel %vm7181_vm2, %v348_v17, %v352_v59  ;;  %v2234_v29 = vrot.slane %v2233_v18, 4  ;;  %v2243_v30 = vor.u32 %v2242_v19, %v2238_v13  ;;  %v208_v59 = vld [vmem:[%s7149_s14 + $0x34] sm:$0xf]  ;;  %v5489_v9 = vld [vmem:[%s7149_s14 + $0x3c] sm:$0xf] }
  0x2e   : > { %6186 = vmatmul.mubr.bf16.vlgmr.msra.gmra.mrb[0].mxu1 %v5334_v40  ;;  %v2225_v61 = vsel %vm7181_vm2, %v2220_v54, %v2224_v35  ;;  %v360_v31 = vrot.slane %v358_v20, 5  ;;  %v5335_v35 = vcombine.low %v343_v21, %v353_v28  ;;  %v366_v38 = vrot.slane %v364_v26, 5  ;;  %v207_v54 = vld [vmem:[%s7149_s14 + $0x30] sm:$0xf]  ;;  %v7299_v19 = vld [vmem:[%s7149_s14 + $0x40] sm:$0xf] }
  0x2f   : > { %6218 = vmatpush3.bf16.msra.mxu1 %v6898_v3  ;;  %v6904_v3 = vld [vmem:[%s8992_s1 + $0x10] sm:$0xff]   ;;  %v5526_v6 = vcombine.low %v2215_v53, %v2225_v61  ;;  %v2248_v22 = vrot.slane %v2246_v14, 5  ;;  %v368_v39 = vshrl.u32 %v206_v5, 16  ;;  %v374_v40 = vshll.u32 %v250_v11, 16  ;;  %v6912_v14 = vld [vmem:[%s8992_s1 + $0x28] sm:$0xff]   ;;  %v6905_v20 = vld [vmem:[%s8992_s1 + $0x160] sm:$0xff]  }
  0x30   : > { %6219 = vmatprep.subr.bf16.mxu1 %v6901_v46  ;;  %v2239_v42 = vsel %vm7181_vm2, %v2234_v29, %v2238_v13  ;;  %v2244_v43 = vrot.slane %v2243_v30, 4  ;;  %v361_v44 = vor.u32 %v360_v31, %v357_v25  ;;  %v2251_v47 = vshrl.u32 %v5486_v16, 16  ;;  %6189 = vmatprep.mubr.bf16.mxu1 %v5335_v35  ;;  %v7307_v28 = vld [vmem:[%s7149_s14 + $0x44] sm:$0x1]  ;;  %v6914_v35 = vld [vmem:[%s8992_s1 + $0x30] sm:$0xff]  }
  0x31   : > { %6378 = vmatmul.mubr.bf16.vlgmr.msra.gmra.mrb[0].mxu0 %v5526_v6  ;;  %v370_v49 = vrot.slane %v368_v39, 4  ;;  %v376_v50 = vrot.slane %v374_v40, 5  ;;  %v2254_v52 = vshll.u32 %v5486_v16, 16  ;;  %v2260_v53 = vshll.u32 %v7265_v33, 16 }
  0x32   : > { %6410 = vmatpush3.bf16.msra.mxu0 %v7206_v4  ;;  %v6902_v4 = vld [vmem:[%s8992_s1 + $0x150] sm:$0xff]   ;;  %v2249_v55 = vsel %vm7181_vm2, %v2244_v43, %v2248_v22  ;;  %v362_v56 = vrot.slane %v361_v44, 4  ;;  %v2253_v57 = vrot.slane %v2251_v47, 4  ;;  %v2264_v58 = vshrl.u32 %v7265_v33, 16 }
  0x33   : > { %6220 = vmatpush3.bf16.msra.mxu1 %v6901_v46  ;;  %6411 = vmatprep.subr.bf16.mxu0 %v6900_v63  ;;  %v7276_v46 = vld [vmem:[%s7149_s14 + $0x38] sm:$0x1]  ;;  %v5527_v61 = vcombine.low %v2239_v42, %v2249_v55  ;;  %v2256_v0 = vrot.slane %v2254_v52, 5  ;;  %v2262_v1 = vrot.slane %v2260_v53, 5  ;;  %v379_v7 = vshrl.u32 %v207_v54, 16 }
  0x34   : > { %6221 = vmatprep.subr.bf16.mxu1 %v6904_v3  ;;  %v367_v5 = vsel %vm7181_vm2, %v362_v56, %v366_v38  ;;  %v2270_v6 = vshll.u32 %v7276_v46, 16  ;;  %v382_v12 = vshll.u32 %v207_v54, 16  ;;  %v388_v13 = vshll.u32 %v208_v59, 16  ;;  %v210_v55 = vld [vmem:[%s7149_s14 + $0x40] sm:$0xf] }
  0x35   : > { %6381 = vmatprep.mubr.bf16.mxu0 %v5527_v61  ;;  %v2257_v11 = vor.u32 %v2256_v0, %v2253_v57  ;;  %v381_v17 = vrot.slane %v379_v7, 4  ;;  %v392_v18 = vshrl.u32 %v208_v59, 16  ;;  %v2275_v40 = vshrl.u32 %v5489_v9, 16 }
  0x36   : > { %6412 = vmatpush3.bf16.msra.mxu0 %v6900_v63  ;;  %v371_v63 = vor.u32 %v370_v49, %v366_v38  ;;  %v2272_v16 = vrot.slane %v2270_v6, 5  ;;  %v384_v25 = vrot.slane %v382_v12, 5  ;;  %v390_v26 = vrot.slane %v388_v13, 5 }
  0x37   : > { %6222 = vmatpush3.bf16.msra.mxu1 %v6904_v3  ;;  %6413 = vmatprep.subr.bf16.mxu0 %v6902_v4  ;;  %v2266_v3 = vrot.slane %v2264_v58, 4  ;;  %v2258_v22 = vrot.slane %v2257_v11, 4  ;;  %v394_v31 = vrot.slane %v392_v18, 4  ;;  %v2278_v42 = vshll.u32 %v5489_v9, 16  ;;  %v5492_v9 = vld [vmem:[%s7149_s14 + $0x48] sm:$0xf] }
  0x38   : > { %6223 = vmatprep.subr.bf16.mxu1 %v6907_v34  ;;  %v372_v10 = vrot.slane %v371_v63, 4  ;;  %v385_v39 = vor.u32 %v384_v25, %v381_v17  ;;  %v2284_v49 = vshll.u32 %v7299_v19, 16  ;;  %v2277_v53 = vrot.slane %v2275_v40, 4  ;;  %v252_v63 = vld [vmem:[%s7149_s14 + $0x44] sm:$0x1] }
  0x39   : > { %v2267_v15 = vor.u32 %v2266_v3, %v2262_v1  ;;  %v2263_v38 = vsel %vm7181_vm2, %v2258_v22, %v2262_v1  ;;  %v395_v44 = vor.u32 %v394_v31, %v390_v26  ;;  %v2280_v54 = vrot.slane %v2278_v42, 5  ;;  %v7340_v22 = vld [vmem:[%s7149_s14 + $0x50] sm:$0x1]  ;;  %v6909_v31 = vld [vmem:[%s8992_s1 + $0x178] sm:$0xff]  }
  0x3a   : > { %6414 = vmatpush3.bf16.msra.mxu0 %v6902_v4  ;;  %v377_v21 = vsel %vm7181_vm2, %v372_v10, %v376_v50  ;;  %v398_v4 = vshll.u32 %v251_v2, 16  ;;  %v386_v52 = vrot.slane %v385_v39, 4  ;;  %v2286_v57 = vrot.slane %v2284_v49, 5  ;;  %v6916_v2 = vld [vmem:[%s8992_s1 + $0x38] sm:$0xff]  }
  0x3b   : > { %6224 = vmatpush3.bf16.msra.mxu1 %v6907_v34  ;;  %6415 = vmatprep.subr.bf16.mxu0 %v6903_v48  ;;  %v5336_v29 = vcombine.low %v367_v5, %v377_v21  ;;  %v2268_v30 = vrot.slane %v2267_v15, 4  ;;  %v209_v34 = vld [vmem:[%s7149_s14 + $0x3c] sm:$0xf]  ;;  %v396_v56 = vrot.slane %v395_v44, 4  ;;  %v2288_v58 = vshrl.u32 %v7299_v19, 16  ;;  %v6908_v15 = vld [vmem:[%s8992_s1 + $0x170] sm:$0xff]  }
  0x3c   : > { %6225 = vmatprep.subr.bf16.mxu1 %v6910_v60  ;;  %v400_v47 = vrot.slane %v398_v4, 5  ;;  %v2294_v59 = vshll.u32 %v7307_v28, 16  ;;  %v2281_v61 = vor.u32 %v2280_v54, %v2277_v53  ;;  %v403_v0 = vshrl.u32 %v209_v34, 16  ;;  %v7351_v4 = vld [vmem:[%s8992_s1 + $0x80] sm:$0xff]   ;;  %v212_v53 = vld [vmem:[%s7149_s14 + $0x4c] sm:$0xf] }
  0x3d   : > { %6190 = vmatmul.mubr.bf16.gmra.mrb[4].mxu1 %v5336_v29  ;;  %v2273_v43 = vsel %vm7181_vm2, %v2268_v30, %v2272_v16  ;;  %v406_v1 = vshll.u32 %v209_v34, 16  ;;  %v2290_v3 = vrot.slane %v2288_v58, 4  ;;  %v412_v7 = vshll.u32 %v210_v55, 16  ;;  %v211_v30 = vld [vmem:[%s7149_s14 + $0x48] sm:$0xf] }
  0x3e   : > { %6416 = vmatpush3.bf16.msra.mxu0 %v6903_v48  ;;  %v5528_v50 = vcombine.low %v2263_v38, %v2273_v43  ;;  %v6906_v48 = vld [vmem:[%s8992_s1 + $0x168] sm:$0xff]   ;;  %v401_v5 = vsel %vm7181_vm2, %v396_v56, %v400_v47  ;;  %v2296_v6 = vrot.slane %v2294_v59, 5  ;;  %v2282_v11 = vrot.slane %v2281_v61, 4  ;;  %v253_v54 = vld [vmem:[%s7149_s14 + $0x50] sm:$0x1] }
  0x3f   : > { %6226 = vmatpush3.bf16.msra.mxu1 %v6910_v60  ;;  %6417 = vmatprep.subr.bf16.mxu0 %v6905_v20  ;;  %v391_v60 = vsel %vm7181_vm2, %v386_v52, %v390_v26  ;;  %v405_v12 = vrot.slane %v403_v0, 4  ;;  %v408_v13 = vrot.slane %v406_v1, 5  ;;  %v2291_v16 = vor.u32 %v2290_v3, %v2286_v57  ;;  %v5495_v58 = vld [vmem:[%s7149_s14 + $0x54] sm:$0xf]  ;;  %v7365_v0 = vld [vmem:[%s7149_s14 + $0x58] sm:$0xf] }
  0x40   : > { %6227 = vmatprep.subr.bf16.mxu1 %v6912_v14  ;;  %6382 = vmatmul.mubr.bf16.gmra.mrb[4].mxu0 %v5528_v50  ;;  %v5337_v10 = vcombine.low %v391_v60, %v401_v5  ;;  %v414_v17 = vrot.slane %v412_v7, 5  ;;  %v416_v18 = vshrl.u32 %v210_v55, 16  ;;  %v422_v21 = vshll.u32 %v252_v63, 16 }
  0x41   : > { %v409_v25 = vor.u32 %v408_v13, %v405_v12  ;;  %v2299_v26 = vshrl.u32 %v5492_v9, 16  ;;  %v2302_v29 = vshll.u32 %v5492_v9, 16  ;;  %v2292_v34 = vrot.slane %v2291_v16, 4 }
  0x42   : > { %6418 = vmatpush3.bf16.msra.mxu0 %v6905_v20  ;;  %6193 = vmatprep.mubr.bf16.mxu1 %v5337_v10  ;;  %v2287_v20 = vsel %vm7181_vm2, %v2282_v11, %v2286_v57  ;;  %v424_v38 = vrot.slane %v422_v21, 5  ;;  %v2318_v52 = vshll.u32 %v7340_v22, 16  ;;  %v427_v61 = vshrl.u32 %v211_v30, 16 }
  0x43   : > { %6228 = vmatpush3.bf16.msra.mxu1 %v6912_v14  ;;  %v7334_v14 = vld [vmem:[%s7149_s14 + $0x4c] sm:$0xf]  ;;  %6419 = vmatprep.subr.bf16.mxu0 %v6906_v48  ;;  %v410_v40 = vrot.slane %v409_v25, 4  ;;  %v2301_v42 = vrot.slane %v2299_v26, 4  ;;  %v2304_v43 = vrot.slane %v2302_v29, 5  ;;  %v2297_v47 = vsel %vm7181_vm2, %v2292_v34, %v2296_v6  ;;  %v7370_v6 = vld [vmem:[%s8992_s1 + $0x180] sm:$0xff]  }
  0x44   : > { %6229 = vmatprep.subr.bf16.mxu1 %v6914_v35  ;;  %v2308_v39 = vshll.u32 %v7334_v14, 16  ;;  %v2312_v44 = vshrl.u32 %v7334_v14, 16  ;;  %v5529_v55 = vcombine.low %v2287_v20, %v2297_v47  ;;  %v2320_v60 = vrot.slane %v2318_v52, 5  ;;  %v7377_v20 = vld [vmem:[%s7149_s14 + $0x5c] sm:$0x1] }
  0x45   : > { %v2305_v56 = vor.u32 %v2304_v43, %v2301_v42  ;;  %v430_v63 = vshll.u32 %v211_v30, 16  ;;  %v440_v3 = vshrl.u32 %v212_v53, 16  ;;  %v429_v9 = vrot.slane %v427_v61, 4  ;;  %v214_v43 = vld [vmem:[%s7149_s14 + $0x58] sm:$0xf] }
  0x46   : > { %6420 = vmatpush3.bf16.msra.mxu0 %v6906_v48  ;;  %v2310_v50 = vrot.slane %v2308_v39, 5  ;;  %v415_v48 = vsel %vm7181_vm2, %v410_v40, %v414_v17  ;;  %v2314_v57 = vrot.slane %v2312_v44, 4  ;;  %6385 = vmatprep.mubr.bf16.mxu0 %v5529_v55  ;;  %v446_v11 = vshll.u32 %v253_v54, 16  ;;  %v5498_v52 = vld [vmem:[%s7149_s14 + $0x60] sm:$0xf] }
  0x47   : > { %6230 = vmatpush3.bf16.msra.mxu1 %v6914_v35  ;;  %v418_v35 = vrot.slane %v416_v18, 4  ;;  %6421 = vmatprep.subr.bf16.mxu0 %v6908_v15  ;;  %v2306_v1 = vrot.slane %v2305_v56, 4  ;;  %v432_v10 = vrot.slane %v430_v63, 5  ;;  %v442_v18 = vrot.slane %v440_v3, 4 }
  0x48   : > { %6231 = vmatprep.subr.bf16.mxu1 %v6916_v2  ;;  %v2315_v5 = vor.u32 %v2314_v57, %v2310_v50  ;;  %v448_v21 = vrot.slane %v446_v11, 5  ;;  %v2323_v25 = vshrl.u32 %v5495_v58, 16  ;;  %v2326_v29 = vshll.u32 %v5495_v58, 16 }
  0x49   : > { %v419_v49 = vor.u32 %v418_v35, %v414_v17  ;;  %v2311_v13 = vsel %vm7181_vm2, %v2306_v1, %v2310_v50  ;;  %v433_v17 = vor.u32 %v432_v10, %v429_v9  ;;  %v2332_v30 = vshll.u32 %v7365_v0, 16  ;;  %v213_v35 = vld [vmem:[%s7149_s14 + $0x54] sm:$0xf]  ;;  %v254_v50 = vld [vmem:[%s7149_s14 + $0x5c] sm:$0x1] }
  0x4a   : > { %6422 = vmatpush3.bf16.msra.mxu0 %v6908_v15  ;;  %v2316_v15 = vrot.slane %v2315_v5, 4  ;;  %v2336_v34 = vshrl.u32 %v7365_v0, 16  ;;  %v2325_v42 = vrot.slane %v2323_v25, 4  ;;  %v451_v55 = vshrl.u32 %v213_v35, 16  ;;  %v7405_v25 = vld [vmem:[%s7149_s14 + $0x60] sm:$0xf] }
  0x4b   : > { %6232 = vmatpush3.bf16.msra.mxu1 %v6916_v2  ;;  %v420_v59 = vrot.slane %v419_v49, 4  ;;  %v436_v2 = vshll.u32 %v212_v53, 16  ;;  %6423 = vmatprep.subr.bf16.mxu0 %v6909_v31  ;;  %v434_v39 = vrot.slane %v433_v17, 4  ;;  %v2334_v44 = vrot.slane %v2332_v30, 5  ;;  %v7401_v17 = vld [vmem:[%s7149_s14 + $0x68] sm:$0x1] }
  0x4c   : > { %6265 = vmatprep.subr.bf16.mxu1 %v7351_v4  ;;  %v2321_v26 = vsel %vm7181_vm2, %v2316_v15, %v2320_v60  ;;  %v2338_v47 = vrot.slane %v2336_v34, 4  ;;  %v2342_v49 = vshll.u32 %v7377_v20, 16  ;;  %v7392_v60 = vld [vmem:[%s7149_s14 + $0x64] sm:$0xf]  ;;  %v453_v63 = vrot.slane %v451_v55, 4 }
  0x4d   : > { %v425_v7 = vsel %vm7181_vm2, %v420_v59, %v424_v38  ;;  %v438_v16 = vrot.slane %v436_v2, 5  ;;  %v5530_v38 = vcombine.low %v2311_v13, %v2321_v26  ;;  %v460_v59 = vshll.u32 %v214_v43, 16 }
  0x4e   : > { %v5338_v12 = vcombine.low %v415_v48, %v425_v7  ;;  %6424 = vmatpush3.bf16.msra.mxu0 %v6909_v31  ;;  %v2328_v31 = vrot.slane %v2326_v29, 5  ;;  %v454_v48 = vshll.u32 %v213_v35, 16  ;;  %v2339_v57 = vor.u32 %v2338_v47, %v2334_v44  ;;  %v7408_v35 = vld [vmem:[%s7149_s14 + $0x64] sm:$0xf] }
  0x4f   : > { %6457 = vmatprep.subr.bf16.mxu0 %v7370_v6  ;;  %v443_v40 = vor.u32 %v442_v18, %v438_v16  ;;  %6386 = vmatmul.mubr.bf16.gmra.mrb[8].mxu0 %v5530_v38  ;;  %v439_v53 = vsel %vm7181_vm2, %v434_v39, %v438_v16  ;;  %v2344_v58 = vrot.slane %v2342_v49, 5  ;;  %v464_v5 = vshrl.u32 %v214_v43, 16  ;;  %v255_v43 = vld [vmem:[%s7149_s14 + $0x68] sm:$0x1] }
  0x50   : > { %6194 = vmatmul.mubr.bf16.gmra.mrb[8].mxu1 %v5338_v12  ;;  %v2329_v56 = vor.u32 %v2328_v31, %v2325_v42  ;;  %v456_v1 = vrot.slane %v454_v48, 5  ;;  %v2340_v7 = vrot.slane %v2339_v57, 4  ;;  %v462_v9 = vrot.slane %v460_v59, 5 }
  0x51   : > { %v444_v54 = vrot.slane %v443_v40, 4  ;;  %v466_v11 = vrot.slane %v464_v5, 4  ;;  %v470_v12 = vshll.u32 %v254_v50, 16  ;;  %v2347_v13 = vshrl.u32 %v5498_v52, 16  ;;  %v5549_v50 = vld [vmem:[%s7149_s14 + $0xc] sm:$0xe] }
  0x52   : > { %v2330_v3 = vrot.slane %v2329_v56, 4  ;;  %v457_v10 = vor.u32 %v456_v1, %v453_v63  ;;  %v2345_v16 = vsel %vm7181_vm2, %v2340_v7, %v2344_v58  ;;  %v2350_v18 = vshll.u32 %v5498_v52, 16  ;;  %v7423_v5 = vld [vmem:[%s7149_s14 + $0x6c] sm:$0xf] }
  0x53   : > { %v449_v61 = vsel %vm7181_vm2, %v444_v54, %v448_v21  ;;  %v2356_v21 = vshll.u32 %v7392_v60, 16  ;;  %v467_v30 = vor.u32 %v466_v11, %v462_v9  ;;  %v472_v34 = vrot.slane %v470_v12, 5 }
  0x54   : > { %v5339_v2 = vcombine.low %v439_v53, %v449_v61  ;;  %v2335_v15 = vsel %vm7181_vm2, %v2330_v3, %v2334_v44  ;;  %v458_v29 = vrot.slane %v457_v10, 4  ;;  %v2349_v38 = vrot.slane %v2347_v13, 4 }
  0x55   : > { %v5531_v26 = vcombine.low %v2335_v15, %v2345_v16  ;;  %v2352_v39 = vrot.slane %v2350_v18, 5  ;;  %v2358_v40 = vrot.slane %v2356_v21, 5  ;;  %v2360_v42 = vshrl.u32 %v7392_v60, 16  ;;  %v7435_v21 = vld [vmem:[%s7149_s14 + $0x70] sm:$0xf] }
  0x56   : > { %6197 = vmatprep.mubr.bf16.mxu1 %v5339_v2  ;;  %v463_v31 = vsel %vm7181_vm2, %v458_v29, %v462_v9  ;;  %v468_v44 = vrot.slane %v467_v30, 4  ;;  %v2366_v47 = vshll.u32 %v7401_v17, 16  ;;  %v475_v49 = vshrl.u32 %v7405_v25, 16  ;;  %v7000_v9 = vld [vmem:[%s7149_s14 + $0xb4] sm:$0xff]  }
  0x57   : > { %6389 = vmatprep.mubr.bf16.mxu0 %v5531_v26  ;;  %v2353_v52 = vor.u32 %v2352_v39, %v2349_v38  ;;  %v2362_v53 = vrot.slane %v2360_v42, 4  ;;  %v478_v54 = vshll.u32 %v7405_v25, 16  ;;  %v484_v55 = vshll.u32 %v7408_v35, 16 }
  0x58   : > { %v473_v48 = vsel %vm7181_vm2, %v468_v44, %v472_v34  ;;  %v2368_v56 = vrot.slane %v2366_v47, 5  ;;  %v477_v57 = vrot.slane %v475_v49, 4  ;;  %v488_v58 = vshrl.u32 %v7408_v35, 16  ;;  %v7446_v47 = vld [vmem:[%s7149_s14 + $0x78] sm:$0xf] }
  0x59   : > { %v5340_v59 = vcombine.low %v463_v31, %v473_v48  ;;  %v2354_v61 = vrot.slane %v2353_v52, 4  ;;  %v2363_v63 = vor.u32 %v2362_v53, %v2358_v40  ;;  %v480_v1 = vrot.slane %v478_v54, 5  ;;  %v7457_v54 = vld [vmem:[%s7149_s14 + $0x7c] sm:$0xf] }
  0x5a   : > { %v486_v2 = vrot.slane %v484_v55, 5  ;;  %v490_v3 = vrot.slane %v488_v58, 4  ;;  %v494_v7 = vshll.u32 %v255_v43, 16  ;;  %v5565_v10 = vrot.slane %v5549_v50, 9  ;;  %v257_v58 = vld [vmem:[%s7149_s14 + $0x80] sm:$0x1] }
  0x5b   : > { %6198 = vmatmul.mubr.bf16.gmra.mrb[12].mxu1 %v5340_v59  ;;  %v2359_v11 = vsel %vm7181_vm2, %v2354_v61, %v2358_v40  ;;  %v2364_v12 = vrot.slane %v2363_v63, 4  ;;  %v481_v13 = vor.u32 %v480_v1, %v477_v57  ;;  %v2949_v15 = vrot.slane %v7162_v23, 5  ;;  %v256_v40 = vld [vmem:[%s7149_s14 + $0x74] sm:$0x1]  ;;  %v5550_v23 = vld [vmem:[%s7149_s14 + $0x18] sm:$0xe] }
  0x5c   : > { %v491_v16 = vor.u32 %v490_v3, %v486_v2  ;;  %v496_v18 = vrot.slane %v494_v7, 5  ;;  %v499_v26 = vshrl.u32 %v7423_v5, 16  ;;  %v502_v29 = vshll.u32 %v7423_v5, 16 }
  0x5d   : > { %v2369_v30 = vsel %vm7181_vm2, %v2364_v12, %v2368_v56  ;;  %v482_v34 = vrot.slane %v481_v13, 4  ;;  %v2950_v38 = vsel %vm7427_vm5, %v5565_v10, %v2949_v15  ;;  %v2951_v39 = vrot.slane %v2949_v15, 4  ;;  %v5551_v13 = vld [vmem:[%s7149_s14 + $0x24] sm:$0xe] }
  0x5e   : > { %v5532_v42 = vcombine.low %v2359_v11, %v2369_v30  ;;  %v492_v43 = vrot.slane %v491_v16, 4  ;;  %v501_v31 = vrot.slane %v499_v26, 4  ;;  %v504_v44 = vrot.slane %v502_v29, 5  ;;  %v7479_v16 = vld [vmem:[%s7149_s14 + $0x84] sm:$0xf]  ;;  %v6913_v29 = vld [vmem:[%s8992_s1 + $0x188] sm:$0xff]  }
  0x5f   : > { %v487_v49 = vsel %vm7181_vm2, %v482_v34, %v486_v2  ;;  %v2953_v50 = vsel %vm7427_vm5, %v2951_v39, %v2952_v41  ;;  %v508_v52 = vshll.u32 %v7435_v21, 16  ;;  %v512_v53 = vshrl.u32 %v7435_v21, 16 }
  0x60   : > { %6390 = vmatmul.mubr.bf16.gmra.mrb[12].mxu0 %v5532_v42  ;;  %v497_v55 = vsel %vm7181_vm2, %v492_v43, %v496_v18  ;;  %v5581_v48 = vcombine.low %v2950_v38, %v2953_v50  ;;  %v505_v56 = vor.u32 %v504_v44, %v501_v31  ;;  %v518_v57 = vshll.u32 %v256_v40, 16  ;;  %v7487_v40 = vld [vmem:[%s7149_s14 + $0x88] sm:$0xf]  ;;  %v258_v31 = vld [vmem:[%s7149_s14 + $0x8c] sm:$0x1] }
  0x61   : > { %v5341_v59 = vcombine.low %v487_v49, %v497_v55  ;;  %v510_v24 = vrot.slane %v508_v52, 5  ;;  %v514_v61 = vrot.slane %v512_v53, 4  ;;  %v5566_v63 = vrot.slane %v5550_v23, 9 }
  0x62   : > { %6425 = vmatprep.mubr.bf16.mxu0 %v5581_v48  ;;  %v506_v41 = vrot.slane %v505_v56, 4  ;;  %v520_v1 = vrot.slane %v518_v57, 5  ;;  %v2960_v2 = vsel %vm7427_vm5, %v7230_v36, %v2959_v32  ;;  %v523_v3 = vshrl.u32 %v7446_v47, 16 }
  0x63   : > { %6201 = vmatprep.mubr.bf16.mxu1 %v5341_v59  ;;  %v515_v7 = vor.u32 %v514_v61, %v510_v24  ;;  %v2957_v10 = vsel %vm7427_vm5, %v5566_v63, %v2956_v27  ;;  %v526_v11 = vshll.u32 %v7446_v47, 16  ;;  %v532_v12 = vshll.u32 %v7457_v54, 16 }
  0x64   : > { %v511_v8 = vsel %vm7181_vm2, %v506_v41, %v510_v24  ;;  %v5582_v15 = vcombine.low %v2957_v10, %v2960_v2  ;;  %v525_v32 = vrot.slane %v523_v3, 4  ;;  %v536_v36 = vshrl.u32 %v7457_v54, 16  ;;  %v7508_v2 = vld [vmem:[%s7149_s14 + $0x90] sm:$0xf]  ;;  %v7511_v3 = vld [vmem:[%s7149_s14 + $0x94] sm:$0xf] }
  0x65   : > { %v516_v62 = vrot.slane %v515_v7, 4  ;;  %v528_v18 = vrot.slane %v526_v11, 5  ;;  %v534_v26 = vrot.slane %v532_v12, 5  ;;  %v542_v27 = vshll.u32 %v257_v58, 16 }
  0x66   : > { %v538_v30 = vrot.slane %v536_v36, 4  ;;  %v5567_v34 = vrot.slane %v5551_v13, 9  ;;  %v2963_v38 = vrot.slane %v7234_v45, 5  ;;  %v2966_v39 = vrot.slane %v7240_v51, 5  ;;  %v5552_v45 = vld [vmem:[%s7149_s14 + $0x30] sm:$0xe] }
  0x67   : > { %v521_v23 = vsel %vm7181_vm2, %v516_v62, %v520_v1  ;;  %v529_v42 = vor.u32 %v528_v18, %v525_v32  ;;  %v544_v43 = vrot.slane %v542_v27, 5  ;;  %v547_v44 = vshrl.u32 %v7479_v16, 16  ;;  %v259_v62 = vld [vmem:[%s7149_s14 + $0x98] sm:$0x1] }
  0x68   : > { %v5342_v49 = vcombine.low %v511_v8, %v521_v23  ;;  %6426 = vmatmul.mubr.bf16.vlgmr.msra.gmra.mrb[0].mxu0 %v5582_v15  ;;  %v539_v50 = vor.u32 %v538_v30, %v534_v26  ;;  %v2964_v52 = vsel %vm7427_vm5, %v5567_v34, %v2963_v38  ;;  %v2965_v53 = vrot.slane %v2963_v38, 4  ;;  %v6917_v30 = vld [vmem:[%s8992_s1 + $0x198] sm:$0xff]  }
  0x69   : > { %6458 = vmatpush3.bf16.msra.mxu0 %v7370_v6  ;;  %v530_v51 = vrot.slane %v529_v42, 4  ;;  %v549_v55 = vrot.slane %v547_v44, 4  ;;  %v550_v48 = vshll.u32 %v7479_v16, 16  ;;  %v556_v56 = vshll.u32 %v7487_v40, 16  ;;  %v6915_v6 = vld [vmem:[%s8992_s1 + $0x190] sm:$0xff]  }
  0x6a   : > { %6202 = vmatmul.mubr.bf16.gmra.mrb[16].mxu1 %v5342_v49  ;;  %v540_v57 = vrot.slane %v539_v50, 4  ;;  %v2967_v58 = vsel %vm7427_vm5, %v2965_v53, %v2966_v39  ;;  %v560_v59 = vshrl.u32 %v7487_v40, 16  ;;  %v566_v24 = vshll.u32 %v258_v31, 16  ;;  %6459 = vmatprep.subr.bf16.mxu0 %v6913_v29  ;;  %v5553_v38 = vld [vmem:[%s7149_s14 + $0x3c] sm:$0xe] }
  0x6b   : > { %v535_v61 = vsel %vm7181_vm2, %v530_v51, %v534_v26  ;;  %v5583_v63 = vcombine.low %v2964_v52, %v2967_v58  ;;  %v552_v41 = vrot.slane %v550_v48, 5  ;;  %v558_v1 = vrot.slane %v556_v56, 5  ;;  %v7529_v31 = vld [vmem:[%s7149_s14 + $0x9c] sm:$0xf]  ;;  %v7538_v48 = vld [vmem:[%s7149_s14 + $0xa0] sm:$0xf] }
  0x6c   : > { %v545_v7 = vsel %vm7181_vm2, %v540_v57, %v544_v43  ;;  %v562_v10 = vrot.slane %v560_v59, 4  ;;  %v568_v11 = vrot.slane %v566_v24, 5  ;;  %v5568_v12 = vrot.slane %v5552_v45, 9  ;;  %v6921_v56 = vld [vmem:[%s8992_s1 + $0x1a0] sm:$0xff]  }
  0x6d   : > { %v5343_v13 = vcombine.low %v535_v61, %v545_v7  ;;  %6429 = vmatprep.mubr.bf16.mxu0 %v5583_v63  ;;  %v553_v8 = vor.u32 %v552_v41, %v549_v55  ;;  %v2970_v15 = vrot.slane %v7265_v33, 5  ;;  %v2973_v32 = vrot.slane %v7276_v46, 5  ;;  %6460 = vmatpush3.bf16.msra.mxu0 %v6913_v29  ;;  %v260_v61 = vld [vmem:[%s7149_s14 + $0xa4] sm:$0x1] }
  0x6e   : > { %v563_v36 = vor.u32 %v562_v10, %v558_v1  ;;  %v571_v18 = vshrl.u32 %v7508_v2, 16  ;;  %v574_v26 = vshll.u32 %v7508_v2, 16  ;;  %v580_v27 = vshll.u32 %v7511_v3, 16  ;;  %6461 = vmatprep.subr.bf16.mxu0 %v6915_v6 }
  0x6f   : > { %6205 = vmatprep.mubr.bf16.mxu1 %v5343_v13  ;;  %v554_v34 = vrot.slane %v553_v8, 4  ;;  %v2971_v33 = vsel %vm7427_vm5, %v5568_v12, %v2970_v15  ;;  %v2972_v46 = vrot.slane %v2970_v15, 4  ;;  %v584_v29 = vshrl.u32 %v7511_v3, 16  ;;  %v5554_v15 = vld [vmem:[%s7149_s14 + $0x48] sm:$0xe] }
  0x70   : > { %v564_v39 = vrot.slane %v563_v36, 4  ;;  %v573_v23 = vrot.slane %v571_v18, 4  ;;  %v576_v42 = vrot.slane %v574_v26, 5  ;;  %v582_v43 = vrot.slane %v580_v27, 5  ;;  %v7563_v27 = vld [vmem:[%s7149_s14 + $0xa8] sm:$0xf] }
  0x71   : > { %v559_v44 = vsel %vm7181_vm2, %v554_v34, %v558_v1  ;;  %v2974_v49 = vsel %vm7427_vm5, %v2972_v46, %v2973_v32  ;;  %v586_v50 = vrot.slane %v584_v29, 4  ;;  %v590_v52 = vshll.u32 %v259_v62, 16  ;;  %6462 = vmatpush3.bf16.msra.mxu0 %v6915_v6  ;;  %v6925_v32 = vld [vmem:[%s8992_s1 + $0x1a8] sm:$0xff]  }
  0x72   : > { %v569_v53 = vsel %vm7181_vm2, %v564_v39, %v568_v11  ;;  %v5584_v45 = vcombine.low %v2971_v33, %v2974_v49  ;;  %v577_v51 = vor.u32 %v576_v42, %v573_v23  ;;  %v5569_v55 = vrot.slane %v5553_v38, 9  ;;  %6463 = vmatprep.subr.bf16.mxu0 %v6917_v30  ;;  %v7566_v29 = vld [vmem:[%s7149_s14 + $0xac] sm:$0xf] }
  0x73   : > { %v5344_v57 = vcombine.low %v559_v44, %v569_v53  ;;  %v587_v58 = vor.u32 %v586_v50, %v582_v43  ;;  %v592_v59 = vrot.slane %v590_v52, 5  ;;  %v2977_v24 = vrot.slane %v7299_v19, 5  ;;  %v5555_v53 = vld [vmem:[%s7149_s14 + $0x54] sm:$0xe] }
  0x74   : > { %6430 = vmatmul.mubr.bf16.gmra.mrb[4].mxu0 %v5584_v45  ;;  %v578_v6 = vrot.slane %v577_v51, 4  ;;  %v2980_v63 = vrot.slane %v7307_v28, 5  ;;  %v595_v41 = vshrl.u32 %v7529_v31, 16  ;;  %v598_v1 = vshll.u32 %v7529_v31, 16  ;;  %v6929_v45 = vld [vmem:[%s8992_s1 + $0x1b0] sm:$0xff]  }
  0x75   : > { %6206 = vmatmul.mubr.bf16.gmra.mrb[20].mxu1 %v5344_v57  ;;  %v588_v7 = vrot.slane %v587_v58, 4  ;;  %v2978_v10 = vsel %vm7427_vm5, %v5569_v55, %v2977_v24  ;;  %v2979_v11 = vrot.slane %v2977_v24, 4  ;;  %v604_v12 = vshll.u32 %v7538_v48, 16  ;;  %6464 = vmatpush3.bf16.msra.mxu0 %v6917_v30 }
  0x76   : > { %v583_v19 = vsel %vm7181_vm2, %v578_v6, %v582_v43  ;;  %v597_v13 = vrot.slane %v595_v41, 4  ;;  %v600_v28 = vrot.slane %v598_v1, 5  ;;  %v608_v8 = vshrl.u32 %v7538_v48, 16  ;;  %6465 = vmatprep.subr.bf16.mxu0 %v6921_v56  ;;  %v261_v43 = vld [vmem:[%s7149_s14 + $0xb0] sm:$0x1] }
  0x77   : > { %v593_v36 = vsel %vm7181_vm2, %v588_v7, %v592_v59  ;;  %v2981_v62 = vsel %vm7427_vm5, %v2979_v11, %v2980_v63  ;;  %v606_v18 = vrot.slane %v604_v12, 5  ;;  %v614_v26 = vshll.u32 %v260_v61, 16  ;;  %v7586_v41 = vld [vmem:[%s7149_s14 + $0xb4] sm:$0xf]  ;;  %v7591_v12 = vld [vmem:[%s7149_s14 + $0xb8] sm:$0xf] }
  0x78   : > { %v5345_v30 = vcombine.low %v583_v19, %v593_v36  ;;  %v5585_v34 = vcombine.low %v2978_v10, %v2981_v62  ;;  %v601_v33 = vor.u32 %v600_v28, %v597_v13  ;;  %v610_v46 = vrot.slane %v608_v8, 4  ;;  %v262_v19 = vld [vmem:[%s7149_s14 + $0xbc] sm:$0x1] }
  0x79   : > { %v616_v38 = vrot.slane %v614_v26, 5  ;;  %v5570_v39 = vrot.slane %v5554_v15, 9  ;;  %v2984_v23 = vrot.slane %v7334_v14, 5  ;;  %v2987_v42 = vrot.slane %v7340_v22, 5  ;;  %6466 = vmatpush3.bf16.msra.mxu0 %v6921_v56  ;;  %v6933_v13 = vld [vmem:[%s8992_s1 + $0x1b8] sm:$0xff]  }
  0x7a   : > { %6209 = vmatprep.mubr.bf16.mxu1 %v5345_v30  ;;  %6433 = vmatprep.mubr.bf16.mxu0 %v5585_v34  ;;  %v602_v44 = vrot.slane %v601_v33, 4  ;;  %v611_v49 = vor.u32 %v610_v46, %v606_v18  ;;  %v619_v50 = vshrl.u32 %v7563_v27, 16  ;;  %v622_v52 = vshll.u32 %v7563_v27, 16  ;;  %v5556_v30 = vld [vmem:[%s7149_s14 + $0x60] sm:$0xe] }
  0x7b   : > { %v2985_v14 = vsel %vm7427_vm5, %v5570_v39, %v2984_v23  ;;  %v2986_v22 = vrot.slane %v2984_v23, 4  ;;  %v628_v51 = vshll.u32 %v7566_v29, 16  ;;  %v632_v55 = vshrl.u32 %v7566_v29, 16  ;;  %6467 = vmatprep.subr.bf16.mxu0 %v6925_v32  ;;  %v5502_v39 = vld [vmem:[%s7149_s14 + $0x70] sm:$0xf] }
  0x7c   : > { %v607_v56 = vsel %vm7181_vm2, %v602_v44, %v606_v18  ;;  %v612_v57 = vrot.slane %v611_v49, 4  ;;  %v621_v58 = vrot.slane %v619_v50, 4  ;;  %v624_v59 = vrot.slane %v622_v52, 5  ;;  %v7613_v44 = vld [vmem:[%s8992_s1 + $0x1c0] sm:$0xff]  }
  0x7d   : > { %v2988_v24 = vsel %vm7427_vm5, %v2986_v22, %v2987_v42  ;;  %v630_v61 = vrot.slane %v628_v51, 5  ;;  %v634_v6 = vrot.slane %v632_v55, 4  ;;  %v638_v63 = vshll.u32 %v261_v43, 16  ;;  %6468 = vmatpush3.bf16.msra.mxu0 %v6925_v32  ;;  %v5557_v43 = vld [vmem:[%s7149_s14 + $0x6c] sm:$0xe] }
  0x7e   : > { %v617_v1 = vsel %vm7181_vm2, %v612_v57, %v616_v38  ;;  %v5586_v7 = vcombine.low %v2985_v14, %v2988_v24  ;;  %v625_v10 = vor.u32 %v624_v59, %v621_v58  ;;  %v5571_v11 = vrot.slane %v5555_v53, 9  ;;  %6469 = vmatprep.subr.bf16.mxu0 %v6929_v45  ;;  %v5503_v55 = vld [vmem:[%s7149_s14 + $0x74] sm:$0x1]  ;;  %v5558_v24 = vld [vmem:[%s7149_s14 + $0x78] sm:$0xe] }
  0x7f   : > { %v5346_v28 = vcombine.low %v607_v56, %v617_v1  ;;  %v635_v8 = vor.u32 %v634_v6, %v630_v61  ;;  %v640_v15 = vrot.slane %v638_v63, 5  ;;  %v2991_v32 = vrot.slane %v7365_v0, 5 }
  0x80   : > { %6434 = vmatmul.mubr.bf16.gmra.mrb[8].mxu0 %v5586_v7  ;;  %v626_v36 = vrot.slane %v625_v10, 4  ;;  %v2994_v62 = vrot.slane %v7377_v20, 5  ;;  %v643_v18 = vshrl.u32 %v7586_v41, 16  ;;  %v646_v26 = vshll.u32 %v7586_v41, 16 }
  0x81   : > { %6210 = vmatmul.mubr.bf16.gmra.mrb[24].mxu1 %v5346_v28  ;;  %v636_v34 = vrot.slane %v635_v8, 4  ;;  %v2992_v33 = vsel %vm7427_vm5, %v5571_v11, %v2991_v32  ;;  %v2993_v46 = vrot.slane %v2991_v32, 4  ;;  %v652_v38 = vshll.u32 %v7591_v12, 16  ;;  %6470 = vmatpush3.bf16.msra.mxu0 %v6929_v45  ;;  %v7626_v11 = vld [vmem:[%s7149_s14 + $0x7c] sm:$0xf] }
  0x82   : > { %v631_v0 = vsel %vm7181_vm2, %v626_v36, %v630_v61  ;;  %v645_v20 = vrot.slane %v643_v18, 4  ;;  %v648_v23 = vrot.slane %v646_v26, 5  ;;  %v656_v42 = vshrl.u32 %v7591_v12, 16  ;;  %6471 = vmatprep.subr.bf16.mxu0 %v6933_v13  ;;  %v7002_v36 = vld [vmem:[%s7149_s14] sm:$0xf] }
  0x83   : > { %v641_v49 = vsel %vm7181_vm2, %v636_v34, %v640_v15  ;;  %v2995_v50 = vsel %vm7427_vm5, %v2993_v46, %v2994_v62  ;;  %v654_v52 = vrot.slane %v652_v38, 5  ;;  %v662_v53 = vshll.u32 %v262_v19, 16  ;;  %v5508_v15 = vld [vmem:[%s7149_s14 + $0x88] sm:$0xf]  ;;  %v7641_v62 = vld [vmem:[%s7149_s14 + $0x4] sm:$0xf] }
  0x84   : > { %v5347_v45 = vcombine.low %v631_v0, %v641_v49  ;;  %v5587_v14 = vcombine.low %v2992_v33, %v2995_v50  ;;  %v649_v22 = vor.u32 %v648_v23, %v645_v20  ;;  %v658_v51 = vrot.slane %v656_v42, 4  ;;  %v5509_v26 = vld [vmem:[%s7149_s14 + $0x8c] sm:$0x1]  ;;  %v5512_v23 = vld [vmem:[%s7149_s14 + $0x98] sm:$0x1] }
  0x85   : > { %v664_v56 = vrot.slane %v662_v53, 5  ;;  %v5572_v57 = vrot.slane %v5556_v30, 9  ;;  %v2998_v58 = vrot.slane %v7392_v60, 5  ;;  %v3001_v59 = vrot.slane %v7401_v17, 5  ;;  %6472 = vmatpush3.bf16.msra.mxu0 %v6933_v13  ;;  %v7629_v17 = vld [vmem:[%s7149_s14 + $0x80] sm:$0x1] }
  0x86   : > { %6213 = vmatprep.mubr.bf16.mxu1 %v5347_v45  ;;  %6437 = vmatprep.mubr.bf16.mxu0 %v5587_v14  ;;  %v650_v61 = vrot.slane %v649_v22, 4  ;;  %v659_v6 = vor.u32 %v658_v51, %v654_v52  ;;  %v5573_v63 = vrot.slane %v5557_v43, 9  ;;  %v3005_v1 = vrot.slane %v5502_v39, 5  ;;  %v5559_v30 = vld [vmem:[%s7149_s14 + $0x84] sm:$0xe] }
  0x87   : > { %v2999_v7 = vsel %vm7427_vm5, %v5572_v57, %v2998_v58  ;;  %v3000_v10 = vrot.slane %v2998_v58, 4  ;;  %v3008_v60 = vrot.slane %v5503_v55, 5  ;;  %6505 = vmatprep.subr.bf16.mxu0 %v7613_v44  ;;  %v5357_v18 = vcombine.low %v7002_v36, %v7641_v62  ;;  %v5511_v39 = vld [vmem:[%s7149_s14 + $0x94] sm:$0xf]  ;;  %v5560_v42 = vld [vmem:[%s7149_s14 + $0x90] sm:$0xe] }
  0x88   : > { %v655_v19 = vsel %vm7181_vm2, %v650_v61, %v654_v52  ;;  %v660_v13 = vrot.slane %v659_v6, 4  ;;  %v3006_v28 = vsel %vm7427_vm5, %v5573_v63, %v3005_v1  ;;  %v3007_v8 = vrot.slane %v3005_v1, 4  ;;  %v5561_v50 = vld [vmem:[%s7149_s14 + $0x9c] sm:$0xe]  ;;  %v5514_v14 = vld [vmem:[%s7149_s14 + $0xa0] sm:$0xf] }
  0x89   : > { %v3002_v32 = vsel %vm7427_vm5, %v3000_v10, %v3001_v59  ;;  %v5574_v38 = vrot.slane %v5558_v24, 9  ;;  %v3012_v43 = vrot.slane %v7626_v11, 5  ;;  %v3015_v49 = vrot.slane %v7629_v17, 5  ;;  %v5515_v22 = vld [vmem:[%s7149_s14 + $0xa4] sm:$0x1] }
  0x8a   : > { %v665_v34 = vsel %vm7181_vm2, %v660_v13, %v664_v56  ;;  %v5588_v33 = vcombine.low %v2999_v7, %v3002_v32  ;;  %v3009_v46 = vsel %vm7427_vm5, %v3007_v8, %v3008_v60  ;;  %v5575_v52 = vrot.slane %v5559_v30, 9  ;;  %v5517_v59 = vld [vmem:[%s7149_s14 + $0xac] sm:$0xf]  ;;  %v7665_v61 = vld [vmem:[%s7149_s14 + $0x10] sm:$0xf] }
  0x8b   : > { %v5348_v0 = vcombine.low %v655_v19, %v665_v34  ;;  %v5589_v20 = vcombine.low %v3006_v28, %v3009_v46  ;;  %v3019_v53 = vrot.slane %v5508_v15, 5  ;;  %v3022_v45 = vrot.slane %v5509_v26, 5  ;;  %v7004_v24 = vld [vmem:[%s7149_s14 + $0xc] sm:$0xf]  ;;  %v7006_v8 = vld [vmem:[%s7149_s14 + $0x18] sm:$0xf] }
  0x8c   : > { %6438 = vmatmul.mubr.bf16.gmra.mrb[12].mxu0 %v5588_v33  ;;  %v3013_v51 = vsel %vm7427_vm5, %v5574_v38, %v3012_v43  ;;  %v3014_v55 = vrot.slane %v3012_v43, 4  ;;  %v3026_v58 = vrot.slane %v5511_v39, 5  ;;  %v5358_v6 = vcombine.low %v7004_v24, %v7665_v61  ;;  %v6924_v19 = vld [vmem:[%s8992_s1 + $0x88] sm:$0xff]   ;;  %v7677_v15 = vld [vmem:[%s7149_s14 + $0x1c] sm:$0xf] }
  0x8d   : > { %6214 = vmatmul.mubr.bf16.gmra.mrb[28].mxu1 %v5348_v0  ;;  %6441 = vmatprep.mubr.bf16.mxu0 %v5589_v20  ;;  %v3020_v56 = vsel %vm7427_vm5, %v5575_v52, %v3019_v53  ;;  %v3021_v57 = vrot.slane %v3019_v53, 4  ;;  %v5576_v1 = vrot.slane %v5560_v42, 9  ;;  %v3029_v7 = vrot.slane %v5512_v23, 5  ;;  %v5518_v30 = vld [vmem:[%s7149_s14 + $0xb0] sm:$0x1] }
  0x8e   : > { %6233 = vmatprep.mubr.bf16.mxu1 %v5357_v18  ;;  %v3016_v63 = vsel %vm7427_vm5, %v3014_v55, %v3015_v49  ;;  %v3028_v13 = vrot.slane %v3026_v58, 4  ;;  %v5577_v28 = vrot.slane %v5561_v50, 9  ;;  %v5359_v32 = vcombine.low %v7006_v8, %v7677_v15  ;;  %v5562_v34 = vld [vmem:[%s7149_s14 + $0xa8] sm:$0xe]  ;;  %v5520_v33 = vld [vmem:[%s7149_s14 + $0xb8] sm:$0xf] }
  0x8f   : > { %v5590_v10 = vcombine.low %v3013_v51, %v3016_v63  ;;  %v3023_v60 = vsel %vm7427_vm5, %v3021_v57, %v3022_v45  ;;  %v3033_v18 = vrot.slane %v5514_v14, 5  ;;  %v3036_v26 = vrot.slane %v5515_v22, 5  ;;  %v5521_v20 = vld [vmem:[%s7149_s14 + $0xbc] sm:$0x1]  ;;  %v5563_v23 = vld [vmem:[%s7149_s14 + $0xb4] sm:$0xe] }
  0x90   : > { %v5591_v36 = vcombine.low %v3020_v56, %v3023_v60  ;;  %v3040_v38 = vrot.slane %v5517_v59, 5  ;;  %v3027_v39 = vsel %vm7427_vm5, %v5576_v1, %v3026_v58  ;;  %v3030_v0 = vsel %vm7427_vm5, %v3028_v13, %v3029_v7  ;;  %v6928_v50 = vld [vmem:[%s8992_s1 + $0x90] sm:$0xff]   ;;  %v5523_v53 = vld [vmem:[%s7149_s14 + $0xc4] sm:$0xf]  ;;  %v7700_v51 = vld [vmem:[%s7149_s14 + $0x28] sm:$0xf] }
  0x91   : > { %v3035_v46 = vrot.slane %v3033_v18, 4  ;;  %v3034_v42 = vsel %vm7427_vm5, %v5577_v28, %v3033_v18  ;;  %v3047_v49 = vrot.slane %v5520_v33, 5  ;;  %v5578_v52 = vrot.slane %v5562_v34, 9  ;;  %v7008_v22 = vld [vmem:[%s7149_s14 + $0x24] sm:$0xf]  ;;  %v6932_v1 = vld [vmem:[%s8992_s1 + $0x98] sm:$0xff]  }
  0x92   : > { %v5592_v45 = vcombine.low %v3027_v39, %v3030_v0  ;;  %v3042_v14 = vrot.slane %v3040_v38, 4  ;;  %v5360_v55 = vcombine.low %v7008_v22, %v7700_v51  ;;  %v7010_v57 = vld [vmem:[%s7149_s14 + $0x30] sm:$0xf]  ;;  %v7705_v58 = vld [vmem:[%s7149_s14 + $0x34] sm:$0xf]  ;;  %v5579_v24 = vrot.slane %v5563_v23, 9 }
  0x93   : > { %v3037_v43 = vsel %vm7427_vm5, %v3035_v46, %v3036_v26  ;;  %v5361_v59 = vcombine.low %v7010_v57, %v7705_v58  ;;  %v3050_v63 = vrot.slane %v5521_v20, 5  ;;  %v5564_v7 = vld [vmem:[%s7149_s14 + $0xc0] sm:$0xe]  ;;  %v3041_v60 = vsel %vm7427_vm5, %v5578_v52, %v3040_v38  ;;  %v5524_v8 = vld [vmem:[%s7149_s14 + $0xc8] sm:$0x1]  ;;  %v6935_v22 = vld [vmem:[%s7149_s14 + $0x18] sm:$0xff]  }
  0x94   : > { %6442 = vmatmul.mubr.bf16.gmra.mrb[16].mxu0 %v5590_v10  ;;  %v5593_v56 = vcombine.low %v3034_v42, %v3037_v43  ;;  %v3054_v10 = vrot.slane %v5523_v53, 5  ;;  %v3048_v13 = vsel %vm7427_vm5, %v5579_v24, %v3047_v49  ;;  %v5580_v18 = vrot.slane %v5564_v7, 9  ;;  %v7012_v26 = vld [vmem:[%s7149_s14 + $0x3c] sm:$0xf]  ;;  %v7014_v39 = vld [vmem:[%s7149_s14 + $0x48] sm:$0xf] }
  0x95   : > { %6234 = vmatmul.mubr.bf16.vlgmr.msra.gmra.mrb[0].mxu1 %v5358_v6  ;;  %6445 = vmatprep.mubr.bf16.mxu0 %v5591_v36  ;;  %v3049_v6 = vrot.slane %v3047_v49, 4  ;;  %v3057_v38 = vrot.slane %v5524_v8, 5  ;;  %v7731_v0 = vld [vmem:[%s7149_s14 + $0x4c] sm:$0xf]  ;;  %v6949_v49 = vld [vmem:[%s8992_s1 + $0xb0] sm:$0xff]   ;;  %v2408_v52 = vshrl.u32 %v7626_v11, 16 }
  0x96   : > { %6266 = vmatpush3.bf16.msra.mxu1 %v7351_v4  ;;  %6237 = vmatprep.mubr.bf16.mxu1 %v5359_v32  ;;  %v3043_v4 = vrot.slane %v5518_v30, 5  ;;  %v6937_v32 = vld [vmem:[%s8992_s1 + $0xa0] sm:$0xff]   ;;  %v3056_v46 = vrot.slane %v3054_v10, 4  ;;  %v5363_v20 = vcombine.low %v7014_v39, %v7731_v0  ;;  %v6943_v23 = vld [vmem:[%s8992_s1 + $0xa8] sm:$0xff]   ;;  %v3055_v42 = vsel %vm7427_vm5, %v5580_v18, %v3054_v10  ;;  %v6941_v18 = vld [vmem:[%s7149_s14 + $0x30] sm:$0xff]  }
  0x97   : > { %6267 = vmatprep.subr.bf16.mxu1 %v6924_v19  ;;  %v3051_v28 = vsel %vm7427_vm5, %v3049_v6, %v3050_v63  ;;  %v7726_v30 = vld [vmem:[%s7149_s14 + $0x40] sm:$0xf]  ;;  %v7759_v57 = vrot.slane %v2408_v52, 4  ;;  %v6938_v6 = vld [vmem:[%s7149_s14 + $0x24] sm:$0xff]   ;;  %v1320_v7 = vrot.slane %v7665_v61, 5  ;;  %v2414_v8 = vshll.u32 %v7629_v17, 16 }
  0x98   : > { %v5362_v34 = vcombine.low %v7012_v26, %v7726_v30  ;;  %v5595_v33 = vcombine.low %v3048_v13, %v3051_v28  ;;  %v3058_v43 = vsel %vm7427_vm5, %v3056_v46, %v3057_v38  ;;  %v1244_v63 = vld [vmem:[%s7149_s14] sm:$0xe]  ;;  %v1245_v10 = vld [vmem:[%s7149_s14 + $0xc] sm:$0xe]  ;;  %v1327_v13 = vrot.slane %v7677_v15, 5 }
  0x99   : > { %v5596_v53 = vcombine.low %v3055_v42, %v3058_v43  ;;  %v1247_v61 = vld [vmem:[%s7149_s14 + $0x24] sm:$0xe]  ;;  %v5368_v15 = vcombine.low %v7479_v16, %v7487_v40  ;;  %v5369_v26 = vcombine.low %v7508_v2, %v7511_v3  ;;  %v5381_v17 = vrot.slane %v1244_v63, 9  ;;  %v7020_v38 = vld [vmem:[%s7149_s14 + $0x20] sm:$0x1]  ;;  %v6950_v2 = vld [vmem:[%s7149_s14 + $0x54] sm:$0xff]  }
  0x9a   : > { %6268 = vmatpush3.bf16.msra.mxu1 %v6924_v19  ;;  %v3044_v19 = vsel %vm7427_vm5, %v3042_v14, %v3043_v4  ;;  %v7748_v14 = vld [vmem:[%s7149_s14 + $0x58] sm:$0xf]  ;;  %v1329_v46 = vrot.slane %v1327_v13, 4  ;;  %v1330_v39 = vrot.slane %v7020_v38, 5  ;;  %v7021_v43 = vld [vmem:[%s7149_s14 + $0x2c] sm:$0x1] }
  0x9b   : > { %6269 = vmatprep.subr.bf16.mxu1 %v6928_v50  ;;  %v5594_v36 = vcombine.low %v3041_v60, %v3044_v19  ;;  %v7774_v60 = vld [vmem:[%s8992_s1 + $0xc0] sm:$0xff]   ;;  %v1246_v19 = vld [vmem:[%s7149_s14 + $0x18] sm:$0xe]  ;;  %v7024_v38 = vld [vmem:[%s7149_s14 + $0x50] sm:$0x1]  ;;  %v1362_v16 = vrot.slane %v7748_v14, 5 }
  0x9c   : > { %6446 = vmatmul.mubr.bf16.gmra.mrb[20].mxu0 %v5592_v45  ;;  %v7016_v45 = vld [vmem:[%s7149_s14 + $0x54] sm:$0xf]  ;;  %v7897_v40 = vld [vmem:[%s7149_s14 + $0x64] sm:$0xf] }
  0x9d   : > { %6238 = vmatmul.mubr.bf16.gmra.mrb[4].mxu1 %v5360_v55  ;;  %6449 = vmatprep.mubr.bf16.mxu0 %v5593_v56  ;;  %v5364_v4 = vcombine.low %v7016_v45, %v7748_v14  ;;  %v5365_v55 = vcombine.low %v7405_v25, %v7408_v35  ;;  %v6955_v56 = vld [vmem:[%s8992_s1 + $0xb8] sm:$0xff]   ;;  %v7019_v25 = vld [vmem:[%s7149_s14 + $0x14] sm:$0x1]  ;;  %v6953_v3 = vld [vmem:[%s7149_s14 + $0x60] sm:$0xff]  }
  0x9e   : > { %6241 = vmatprep.mubr.bf16.mxu1 %v5361_v59  ;;  %6270 = vmatpush3.bf16.msra.mxu1 %v6928_v50  ;;  %v2404_v50 = vshll.u32 %v7626_v11, 16  ;;  %v7762_v59 = vld [vmem:[%s7149_s14 + $0x8] sm:$0x1]  ;;  %v1323_v35 = vrot.slane %v7019_v25, 5 }
  0x9f   : > { %6271 = vmatprep.subr.bf16.mxu1 %v6932_v1  ;;  %v1316_v24 = vrot.slane %v7762_v59, 5 }
  0xa0   : > { %v7757_v11 = vrot.slane %v2404_v50, 5 }
  0xa2   : > { %6272 = vmatpush3.bf16.msra.mxu1 %v6932_v1  ;;  %v1313_v1 = vrot.slane %v7641_v62, 5  ;;  %v5366_v62 = vcombine.low %v7423_v5, %v7435_v21  ;;  %v5382_v21 = vrot.slane %v1245_v10, 9  ;;  %v5661_v10 = vld [vmem:[%s7149_s14 + $0x18] sm:$0xf] }
  0xa3   : > { %6273 = vmatprep.subr.bf16.mxu1 %v6937_v32 }
  0xa4   : > { %6450 = vmatmul.mubr.bf16.gmra.mrb[24].mxu0 %v5594_v36  ;;  %v5367_v36 = vcombine.low %v7446_v47, %v7457_v54  ;;  %v1315_v5 = vrot.slane %v1313_v1, 4  ;;  %v6945_v47 = vld [vmem:[%s8992_s1 + $0x1c8] sm:$0xff]   ;;  %v5383_v54 = vrot.slane %v1246_v19, 9  ;;  %v7817_v59 = vsel %vm7427_vm5, %v5381_v17, %v1313_v1  ;;  %v5662_v19 = vld [vmem:[%s7149_s14 + $0x1c] sm:$0xf] }
  0xa5   : > { %6242 = vmatmul.mubr.bf16.gmra.mrb[8].mxu1 %v5362_v34  ;;  %6453 = vmatprep.mubr.bf16.mxu0 %v5595_v33  ;;  %v1341_v34 = vrot.slane %v7705_v58, 5  ;;  %v1322_v33 = vrot.slane %v1320_v7, 4  ;;  %v5384_v58 = vrot.slane %v1247_v61, 9  ;;  %v1355_v1 = vrot.slane %v7731_v0, 5  ;;  %v6947_v0 = vld [vmem:[%s7149_s14 + $0x48] sm:$0xff]  }
  0xa6   : > { %6245 = vmatprep.mubr.bf16.mxu1 %v5363_v20  ;;  %6274 = vmatpush3.bf16.msra.mxu1 %v6937_v32  ;;  %v1334_v32 = vrot.slane %v7700_v51, 5  ;;  %v1248_v51 = vld [vmem:[%s7149_s14 + $0x30] sm:$0xe]  ;;  %v5370_v20 = vcombine.low %v7529_v31, %v7538_v48  ;;  %v7825_v25 = vsel %vm7427_vm5, %v1315_v5, %v1316_v24  ;;  %v7833_v63 = vsel %vm7427_vm5, %v5383_v54, %v1327_v13  ;;  %v1250_v13 = vld [vmem:[%s7149_s14 + $0x48] sm:$0xe] }
  0xa7   : > { %6275 = vmatprep.subr.bf16.mxu1 %v6943_v23  ;;  %v5385_v50 = vrot.slane %v1248_v51, 9  ;;  %v1343_v52 = vrot.slane %v1341_v34, 4  ;;  %v3815_v5 = vshrl.u32 %v5661_v10, 16  ;;  %v3828_v51 = vshrl.u32 %v5662_v19, 16  ;;  %v6956_v48 = vld [vmem:[%s7149_s14 + $0x6c] sm:$0xff]  }
  0xa8   : > { %v1336_v42 = vrot.slane %v1334_v32, 4  ;;  %v7845_v24 = vsel %vm7427_vm5, %v5384_v58, %v1334_v32  ;;  %v7023_v32 = vld [vmem:[%s7149_s14 + $0x44] sm:$0x1]  ;;  %v5387_v54 = vrot.slane %v1250_v13, 9  ;;  %v5665_v13 = vld [vmem:[%s7149_s14 + $0x28] sm:$0xf] }
  0xa9   : > { %v7855_v61 = vsel %vm7427_vm5, %v5385_v50, %v1341_v34  ;;  %v1351_v17 = vrot.slane %v7023_v32, 5  ;;  %v5663_v50 = vld [vmem:[%s7149_s14 + $0x20] sm:$0x1]  ;;  %v1252_v32 = vld [vmem:[%s7149_s14 + $0x60] sm:$0xe] }
  0xaa   : > { %6276 = vmatpush3.bf16.msra.mxu1 %v6943_v23  ;;  %v5371_v23 = vcombine.low %v7563_v27, %v7566_v29 }
  0xab   : > { %6277 = vmatprep.subr.bf16.mxu1 %v6949_v49 }
  0xac   : > { %6454 = vmatmul.mubr.bf16.gmra.mrb[28].mxu0 %v5596_v53  ;;  %v7022_v53 = vld [vmem:[%s7149_s14 + $0x38] sm:$0x1] }
  0xad   : > { %6246 = vmatmul.mubr.bf16.gmra.mrb[12].mxu1 %v5364_v4  ;;  %6473 = vmatprep.mubr.bf16.mxu0 %v6935_v22  ;;  %v1344_v45 = vrot.slane %v7022_v53, 5  ;;  %v1249_v4 = vld [vmem:[%s7149_s14 + $0x3c] sm:$0xe]  ;;  %v1348_v22 = vrot.slane %v7726_v30, 5  ;;  %v7821_v30 = vsel %vm7427_vm5, %v5382_v21, %v1320_v7  ;;  %v3818_v21 = vshll.u32 %v5661_v10, 16  ;;  %v6961_v53 = vld [vmem:[%s8992_s1 + $0x1e0] sm:$0xff]  }
  0xae   : > { %6249 = vmatprep.mubr.bf16.mxu1 %v5365_v55  ;;  %6278 = vmatpush3.bf16.msra.mxu1 %v6949_v49  ;;  %v1337_v49 = vrot.slane %v7021_v43, 5  ;;  %v7808_v55 = vrot.slane %v2414_v8, 5  ;;  %v6944_v7 = vld [vmem:[%s7149_s14 + $0x3c] sm:$0xff]   ;;  %v7841_v8 = vsel %vm7427_vm5, %v1329_v46, %v1330_v39  ;;  %v1357_v46 = vrot.slane %v1355_v1, 4  ;;  %v5667_v43 = vld [vmem:[%s7149_s14 + $0x30] sm:$0xf] }
  0xaf   : > { %6279 = vmatprep.subr.bf16.mxu1 %v6955_v56  ;;  %v1358_v39 = vrot.slane %v7024_v38, 5  ;;  %v3817_v10 = vrot.slane %v3815_v5, 4 }
  0xb0   : > { %9014 = vst [vmem:[#allocation2_spill] sm:$0xff] %v7808_v55 }
  0xb2   : > { %6280 = vmatpush3.bf16.msra.mxu1 %v6955_v56  ;;  %v6951_v56 = vld [vmem:[%s8992_s1 + $0x1d0] sm:$0xff]  }
  0xb3   : > { %6313 = vmatprep.subr.bf16.mxu1 %v7774_v60 }
  0xb4   : > { %6474 = vmatmul.mubr.bf16.vlgmr.msra.gmra.mrb[0].mxu0 %v6938_v6  ;;  %v7829_v6 = vsel %vm7427_vm5, %v1322_v33, %v1323_v35  ;;  %v7849_v35 = vsel %vm7427_vm5, %v1336_v42, %v1337_v49  ;;  %v3824_v33 = vshll.u32 %v5662_v19, 16  ;;  %v3820_v19 = vrot.slane %v3818_v21, 5  ;;  %v1253_v21 = vld [vmem:[%s7149_s14 + $0x6c] sm:$0xe] }
  0xb5   : > { %6250 = vmatmul.mubr.bf16.gmra.mrb[16].mxu1 %v5366_v62  ;;  %6506 = vmatpush3.bf16.msra.mxu0 %v7613_v44  ;;  %v5386_v62 = vrot.slane %v1249_v4, 9  ;;  %v5390_v58 = vrot.slane %v1253_v21, 9 }
  0xb6   : > { %6253 = vmatprep.mubr.bf16.mxu1 %v5367_v36  ;;  %6477 = vmatprep.mubr.bf16.mxu0 %v6941_v18  ;;  %v7859_v36 = vsel %vm7427_vm5, %v1343_v52, %v1344_v45  ;;  %v1350_v18 = vrot.slane %v1348_v22, 4  ;;  %v5664_v52 = vld [vmem:[%s7149_s14 + $0x24] sm:$0xf]  ;;  %v3852_v45 = vshrl.u32 %v5665_v13, 16 }
  0xb7   : > { %6507 = vmatprep.subr.bf16.mxu0 %v6945_v47  ;;  %v7876_v49 = vsel %vm7427_vm5, %v5386_v62, %v1348_v22  ;;  %v7893_v22 = vld [vmem:[%s7149_s14 + $0x54] sm:$0xe]  ;;  %v3830_v62 = vrot.slane %v3828_v51, 4  ;;  %v3839_v38 = vshrl.u32 %v5664_v52, 16  ;;  %v3842_v28 = vshll.u32 %v5664_v52, 16 }
  0xb8   : > { %v7890_v4 = vsel %vm7427_vm5, %v1350_v18, %v1351_v17  ;;  %v3834_v17 = vshll.u32 %v5663_v50, 16  ;;  %v5388_v5 = vrot.slane %v7893_v22, 9  ;;  %v6965_v50 = vld [vmem:[%s8992_s1 + $0x1e8] sm:$0xff]   ;;  %v1364_v52 = vrot.slane %v1362_v16, 4 }
  0xb9   : > { %6508 = vmatpush3.bf16.msra.mxu0 %v6945_v47  ;;  %v6957_v47 = vld [vmem:[%s8992_s1 + $0x1d8] sm:$0xff]   ;;  %v3821_v22 = vor.u32 %v3820_v19, %v3817_v10  ;;  %v3841_v34 = vrot.slane %v3839_v38, 4  ;;  %v3844_v44 = vrot.slane %v3842_v28, 5  ;;  %v7029_v10 = vld [vmem:[%s7149_s14 + $0x74] sm:$0x1]  ;;  %v3854_v28 = vrot.slane %v3852_v45, 4 }
  0xba   : > { %6509 = vmatprep.subr.bf16.mxu0 %v6951_v56  ;;  %v7931_v42 = vrot.slane %v3834_v17, 5  ;;  %v1379_v19 = vrot.slane %v7029_v10, 5  ;;  %v3863_v38 = vshrl.u32 %v5667_v43, 16  ;;  %v7956_v27 = vsel %vm7427_vm5, %v5388_v5, %v1362_v16 }
  0xbb   : > { %v3822_v21 = vrot.slane %v3821_v22, 4 }
  0xbc   : > { %6478 = vmatmul.mubr.bf16.gmra.mrb[4].mxu0 %v6944_v7  ;;  %v7903_v7 = vrot.slane %v3824_v33, 5  ;;  %v7027_v33 = vld [vmem:[%s7149_s14 + $0x70] sm:$0xf] }
  0xbd   : > { %6254 = vmatmul.mubr.bf16.gmra.mrb[20].mxu1 %v5368_v15  ;;  %6481 = vmatprep.mubr.bf16.mxu0 %v6947_v0  ;;  %v1369_v15 = vrot.slane %v7897_v40, 5  ;;  %v7026_v0 = vld [vmem:[%s7149_s14 + $0x5c] sm:$0x1]  ;;  %v1376_v51 = vrot.slane %v7027_v33, 5 }
  0xbe   : > { %6257 = vmatprep.mubr.bf16.mxu1 %v5369_v26  ;;  %6510 = vmatpush3.bf16.msra.mxu0 %v6951_v56  ;;  %v1365_v18 = vrot.slane %v7026_v0, 5  ;;  %v7912_v26 = vsel %vm7427_vm5, %v5387_v54, %v1355_v1  ;;  %v7916_v56 = vsel %vm7427_vm5, %v1357_v46, %v1358_v39  ;;  %v7028_v1 = vld [vmem:[%s7149_s14 + $0x68] sm:$0x1]  ;;  %v3848_v0 = vshll.u32 %v5665_v13, 16  ;;  %v6973_v40 = vld [vmem:[%s8992_s1 + $0x1f8] sm:$0xff]  }
  0xbf   : > { %6511 = vmatprep.subr.bf16.mxu0 %v6957_v47  ;;  %v1372_v54 = vrot.slane %v7028_v1, 5  ;;  %v5389_v46 = vrot.slane %v1252_v32, 9  ;;  %v1371_v39 = vrot.slane %v1369_v15, 4  ;;  %v3831_v33 = vor.u32 %v3830_v62, %v7903_v7  ;;  %v5668_v1 = vld [vmem:[%s7149_s14 + $0x34] sm:$0xf] }
  0xc0   : > { %v1378_v32 = vrot.slane %v1376_v51, 4  ;;  %v5666_v62 = vld [vmem:[%s7149_s14 + $0x2c] sm:$0x1]  ;;  %v7943_v17 = vrot.slane %v3848_v0, 5  ;;  %v3872_v13 = vshll.u32 %v5668_v1, 16  ;;  %v3876_v31 = vshrl.u32 %v5668_v1, 16 }
  0xc1   : > { %v3832_v10 = vrot.slane %v3831_v33, 4  ;;  %v7960_v29 = vsel %vm7427_vm5, %v1364_v52, %v1365_v18  ;;  %v7967_v45 = vsel %vm7427_vm5, %v5389_v46, %v1369_v15  ;;  %v7971_v14 = vsel %vm7427_vm5, %v1371_v39, %v1372_v54  ;;  %v1254_v18 = vld [vmem:[%s7149_s14 + $0x78] sm:$0xe] }
  0xc2   : > { %6512 = vmatpush3.bf16.msra.mxu0 %v6957_v47  ;;  %v7975_v16 = vsel %vm7427_vm5, %v5390_v58, %v1376_v51  ;;  %v7985_v15 = vsel %vm7427_vm5, %v1378_v32, %v1379_v19  ;;  %v3855_v5 = vor.u32 %v3854_v28, %v7943_v17  ;;  %v3865_v52 = vrot.slane %v3863_v38, 4  ;;  %v5670_v58 = vld [vmem:[%s7149_s14 + $0x3c] sm:$0xf]  ;;  %v5671_v51 = vld [vmem:[%s7149_s14 + $0x40] sm:$0xf] }
  0xc3   : > { %6513 = vmatprep.subr.bf16.mxu0 %v6961_v53  ;;  %v3827_v0 = vsel %vm7181_vm2, %v3822_v21, %v7903_v7  ;;  %v3837_v46 = vsel %vm7181_vm2, %v3832_v10, %v7931_v42  ;;  %v7996_v39 = vrot.slane %v3872_v13, 5  ;;  %v3878_v22 = vrot.slane %v3876_v31, 4  ;;  %v7031_v19 = vld [vmem:[%s7149_s14 + $0x80] sm:$0x1]  ;;  %v8155_v47 = vld [vmem:[%s7149_s14 + $0x68] sm:$0x1] }
  0xc4   : > { %6482 = vmatmul.mubr.bf16.gmra.mrb[8].mxu0 %v6950_v2  ;;  %v3866_v2 = vshll.u32 %v5667_v43, 16  ;;  %v3858_v43 = vshll.u32 %v5666_v62, 16  ;;  %v5391_v32 = vrot.slane %v1254_v18, 9  ;;  %v1255_v62 = vld [vmem:[%s7149_s14 + $0x84] sm:$0xe]  ;;  %v3887_v28 = vshrl.u32 %v5670_v58, 16 }
  0xc5   : > { %6258 = vmatmul.mubr.bf16.gmra.mrb[24].mxu1 %v5370_v20  ;;  %6485 = vmatprep.mubr.bf16.mxu0 %v6953_v3  ;;  %v6969_v20 = vld [vmem:[%s8992_s1 + $0x1f0] sm:$0xff]   ;;  %v7030_v3 = vld [vmem:[%s7149_s14 + $0x7c] sm:$0xf]  ;;  %v3890_v7 = vshll.u32 %v5670_v58, 16  ;;  %v3896_v38 = vshll.u32 %v5671_v51, 16  ;;  %v9015_v42 = vcombine.low %v7586_v41, %v7591_v12  ;;  %v8007_v13 = vrot.slane %v3855_v5, 4 }
  0xc6   : > { %6261 = vmatprep.mubr.bf16.mxu1 %v5371_v23  ;;  %6514 = vmatpush3.bf16.msra.mxu0 %v6961_v53  ;;  %v3845_v23 = vor.u32 %v3844_v44, %v3841_v34  ;;  %v6958_v53 = vld [vmem:[%s7149_s14 + $0x78] sm:$0xff]   ;;  %v1383_v44 = vrot.slane %v7030_v3, 5  ;;  %v3868_v54 = vrot.slane %v3866_v2, 5  ;;  %v8000_v1 = vrot.slane %v3858_v43, 5  ;;  %v8012_v21 = vld [vmem:[%s8992_s1 + $0x200] sm:$0xff]   ;;  %9023 = vst [vmem:[#allocation5_spill] sm:$0xff] %v8155_v47 }
  0xc7   : > { %6515 = vmatprep.subr.bf16.mxu0 %v6965_v50  ;;  %v5669_v34 = vld [vmem:[%s7149_s14 + $0x38] sm:$0x1]  ;;  %v3900_v2 = vshrl.u32 %v5671_v51, 16  ;;  %v6960_v43 = vld [vmem:[%s7149_s14 + $0x84] sm:$0xff]   ;;  %v3879_v12 = vor.u32 %v3878_v22, %v7996_v39  ;;  %v3892_v58 = vrot.slane %v3890_v7, 5  ;;  %v8034_v51 = vrot.slane %v3896_v38, 5 }
  0xc8   : > { %v7998_v33 = vrot.slane %v3845_v23, 4  ;;  %v1385_v10 = vrot.slane %v1383_v44, 4  ;;  %v3869_v31 = vor.u32 %v3868_v54, %v3865_v52  ;;  %v9016_v23 = vcombine.low %v7817_v59, %v7825_v25  ;;  %v7032_v18 = vld [vmem:[%s7149_s14 + $0x88] sm:$0xf]  ;;  %v5672_v5 = vld [vmem:[%s7149_s14 + $0x44] sm:$0x1] }
  0xc9   : > { %v1390_v3 = vrot.slane %v7032_v18, 5  ;;  %v8025_v59 = vcombine.low %v3827_v0, %v3837_v46  ;;  %v5673_v52 = vld [vmem:[%s7149_s14 + $0x48] sm:$0xf]  ;;  %v3889_v54 = vrot.slane %v3887_v28, 4  ;;  %v3902_v22 = vrot.slane %v3900_v2, 4 }
  0xca   : > { %6516 = vmatpush3.bf16.msra.mxu0 %v6965_v50  ;;  %v1386_v50 = vrot.slane %v7031_v19, 5  ;;  %v6962_v19 = vld [vmem:[%s7149_s14 + $0x90] sm:$0xff]   ;;  %v3851_v0 = vsel %vm7181_vm2, %v7998_v33, %v7943_v17  ;;  %v3870_v46 = vrot.slane %v3869_v31, 4  ;;  %v3861_v28 = vsel %vm7181_vm2, %v8007_v13, %v8000_v1  ;;  %v8056_v33 = vld [vmem:[%s7149_s14 + $0x58] sm:$0xf]  ;;  %v6963_v31 = vld [vmem:[%s8992_s1 + $0xc8] sm:$0xff]  }
  0xcb   : > { %6517 = vmatprep.subr.bf16.mxu0 %v6969_v20  ;;  %v3880_v38 = vrot.slane %v3879_v12, 4  ;;  %v1392_v2 = vrot.slane %v1390_v3, 4  ;;  %v5676_v17 = vld [vmem:[%s7149_s14 + $0x54] sm:$0xf]  ;;  %v3906_v1 = vshll.u32 %v5672_v5, 16  ;;  %v3911_v13 = vshrl.u32 %v5673_v52, 16 }
  0xcc   : > { %6486 = vmatmul.mubr.bf16.gmra.mrb[12].mxu0 %v6956_v48  ;;  %v3882_v48 = vshll.u32 %v5669_v34, 16  ;;  %v8052_v7 = vsel %vm7427_vm5, %v1385_v10, %v1386_v50  ;;  %v3914_v50 = vshll.u32 %v5673_v52, 16  ;;  %v3893_v10 = vor.u32 %v3892_v58, %v3889_v54  ;;  %v6964_v54 = vld [vmem:[%s7149_s14 + $0x9c] sm:$0xff]   ;;  %v7038_v41 = vld [vmem:[%s7149_s14 + $0xac] sm:$0xf] }
  0xcd   : > { %6262 = vmatmul.mubr.bf16.gmra.mrb[28].mxu1 %v9015_v42  ;;  %6489 = vmatprep.mubr.bf16.mxu0 %v6958_v53  ;;  %v5392_v53 = vrot.slane %v1255_v62, 9  ;;  %v7033_v42 = vld [vmem:[%s7149_s14 + $0x8c] sm:$0x1]  ;;  %v3944_v5 = vshll.u32 %v8056_v33, 16  ;;  %v9018_v52 = vcombine.low %v7833_v63, %v7841_v8  ;;  %v8092_v63 = vld [vmem:[%s7149_s14 + $0x50] sm:$0x1] }
  0xce   : > { %6281 = vmatprep.mubr.bf16.mxu1 %v9016_v23  ;;  %6518 = vmatpush3.bf16.msra.mxu0 %v6969_v20  ;;  %v8031_v20 = vsel %vm7427_vm5, %v5391_v32, %v1383_v44  ;;  %v3884_v62 = vrot.slane %v3882_v48, 5  ;;  %v1393_v23 = vrot.slane %v7033_v42, 5  ;;  %v1256_v44 = vld [vmem:[%s7149_s14 + $0x90] sm:$0xe]  ;;  %v8044_v32 = vld [vmem:[%s7149_s14 + $0x4c] sm:$0xf]  ;;  %v3903_v48 = vor.u32 %v3902_v22, %v8034_v51 }
  0xcf   : > { %6519 = vmatprep.subr.bf16.mxu0 %v6973_v40  ;;  %v3920_v12 = vshll.u32 %v8044_v32, 16  ;;  %v3924_v18 = vshrl.u32 %v8044_v32, 16  ;;  %v9017_v42 = vcombine.low %v7821_v30, %v7829_v6  ;;  %v6967_v30 = vld [vmem:[%s8992_s1 + $0xd0] sm:$0xff]   ;;  %v3875_v6 = vsel %vm7181_vm2, %v3870_v46, %v7996_v39  ;;  %v6966_v8 = vld [vmem:[%s7149_s14 + $0xa8] sm:$0xff]   ;;  %v8099_v39 = vld [vmem:[%s7149_s14 + $0x5c] sm:$0x1] }
  0xd0   : > { %v3885_v58 = vsel %vm7181_vm2, %v3880_v38, %v3884_v62  ;;  %v5393_v22 = vrot.slane %v1256_v44, 9  ;;  %v3916_v25 = vrot.slane %v3914_v50, 5  ;;  %9019 = vst [vmem:[#allocation3_spill] sm:$0xff] %v8099_v39  ;;  %v3894_v46 = vrot.slane %v3893_v10, 4 }
  0xd1   : > { %v3904_v62 = vrot.slane %v3903_v48, 4  ;;  %v8101_v38 = vrot.slane %v3920_v12, 5  ;;  %v8103_v34 = vrot.slane %v3944_v5, 5  ;;  %v8108_v50 = vcombine.low %v3851_v0, %v3861_v28  ;;  %v5679_v28 = vld [vmem:[%s7149_s14 + $0x60] sm:$0xf] }
  0xd2   : > { %6520 = vmatpush3.bf16.msra.mxu0 %v6973_v40  ;;  %v8064_v40 = vsel %vm7427_vm5, %v5392_v53, %v1390_v3  ;;  %v3935_v53 = vshrl.u32 %v5676_v17, 16  ;;  %v3938_v3 = vshll.u32 %v5676_v17, 16  ;;  %v7034_v17 = vld [vmem:[%s7149_s14 + $0x94] sm:$0xf]  ;;  %v8112_v48 = vcombine.low %v3875_v6, %v3885_v58 }
  0xd3   : > { %6553 = vmatprep.subr.bf16.mxu0 %v8012_v21  ;;  %v3930_v0 = vshll.u32 %v8092_v63, 16  ;;  %v3899_v6 = vsel %vm7181_vm2, %v3894_v46, %v8034_v51  ;;  %v9022_v46 = vcombine.low %v7855_v61, %v7859_v36 }
  0xd4   : > { %6490 = vmatmul.mubr.bf16.gmra.mrb[16].mxu0 %v6960_v43  ;;  %v3948_v43 = vshrl.u32 %v8056_v33, 16  ;;  %v3937_v44 = vrot.slane %v3935_v53, 4  ;;  %v7035_v53 = vld [vmem:[%s7149_s14 + $0x98] sm:$0x1] }
  0xd5   : > { %6282 = vmatmul.mubr.bf16.vlgmr.msra.gmra.mrb[0].mxu1 %v9017_v42  ;;  %6493 = vmatprep.mubr.bf16.mxu0 %v6962_v19  ;;  %v8095_v19 = vrot.slane %v3906_v1, 5  ;;  %v1397_v42 = vrot.slane %v7034_v17, 5  ;;  %v7036_v17 = vld [vmem:[%s7149_s14 + $0xa0] sm:$0xf]  ;;  %v3932_v36 = vrot.slane %v3930_v0, 5 }
  0xd6   : > { %6314 = vmatpush3.bf16.msra.mxu1 %v7774_v60  ;;  %6285 = vmatprep.mubr.bf16.mxu1 %v9018_v52  ;;  %v8089_v60 = vsel %vm7427_vm5, %v1392_v2, %v1393_v23  ;;  %v3913_v52 = vrot.slane %v3911_v13, 4  ;;  %v3926_v23 = vrot.slane %v3924_v18, 4  ;;  %v3940_v2 = vrot.slane %v3938_v3, 5  ;;  %v6971_v13 = vld [vmem:[%s8992_s1 + $0xd8] sm:$0xff]  }
  0xd7   : > { %6315 = vmatprep.subr.bf16.mxu1 %v6963_v31  ;;  %v3950_v1 = vrot.slane %v3948_v43, 4  ;;  %v1257_v18 = vld [vmem:[%s7149_s14 + $0x9c] sm:$0xe]  ;;  %v1400_v3 = vrot.slane %v7035_v53, 5  ;;  %v8125_v43 = vld [vmem:[%s7149_s14 + $0x64] sm:$0xf] }
  0xd8   : > { %v3917_v5 = vor.u32 %v3916_v25, %v3913_v52  ;;  %9020 = vst [vmem:[#allocation4_spill] sm:$0xff] %v8125_v43  ;;  %v3927_v58 = vor.u32 %v3926_v23, %v8101_v38  ;;  %v1404_v12 = vrot.slane %v7036_v17, 5  ;;  %v9021_v25 = vcombine.low %v7845_v24, %v7849_v35  ;;  %v6968_v23 = vld [vmem:[%s7149_s14 + $0xb4] sm:$0xff]   ;;  %v6974_v24 = vld [vmem:[%s8992_s1 + $0xe0] sm:$0xff]   ;;  %v5682_v17 = vld [vmem:[%s7149_s14 + $0x6c] sm:$0xf] }
  0xd9   : > { %v1399_v52 = vrot.slane %v1397_v42, 4  ;;  %v3941_v53 = vor.u32 %v3940_v2, %v3937_v44  ;;  %v3951_v51 = vor.u32 %v3950_v1, %v8103_v34  ;;  %v3959_v35 = vshrl.u32 %v5679_v28, 16  ;;  %v7037_v2 = vld [vmem:[%s7149_s14 + $0xa4] sm:$0x1] }
  0xda   : > { %6316 = vmatpush3.bf16.msra.mxu1 %v6963_v31  ;;  %v8119_v31 = vsel %vm7427_vm5, %v5393_v22, %v1397_v42  ;;  %v3954_v22 = vshll.u32 %v8099_v39, 16  ;;  %v3972_v42 = vshrl.u32 %v8125_v43, 16  ;;  %v3918_v61 = vrot.slane %v3917_v5, 4  ;;  %v8294_v39 = vld [vmem:[%s7149_s14 + $0x98] sm:$0x1] }
  0xdb   : > { %6317 = vmatprep.subr.bf16.mxu1 %v6967_v30  ;;  %v5394_v44 = vrot.slane %v1257_v18, 9  ;;  %v1407_v1 = vrot.slane %v7037_v2, 5  ;;  %v3942_v5 = vrot.slane %v3941_v53, 4  ;;  %v3952_v18 = vrot.slane %v3951_v51, 4  ;;  %9036 = vst [vmem:[#allocation14_spill] sm:$0xff] %v8294_v39 }
  0xdc   : > { %6494 = vmatmul.mubr.bf16.gmra.mrb[20].mxu0 %v6964_v54  ;;  %v3909_v54 = vsel %vm7181_vm2, %v3904_v62, %v8095_v19  ;;  %v3968_v19 = vshll.u32 %v8125_v43, 16  ;;  %v6970_v62 = vld [vmem:[%s7149_s14 + $0xc0] sm:$0xff]   ;;  %v3956_v10 = vrot.slane %v3954_v22, 5  ;;  %v8161_v43 = vsel %vm7427_vm5, %v1399_v52, %v1400_v3 }
  0xdd   : > { %6286 = vmatmul.mubr.bf16.gmra.mrb[4].mxu1 %v9021_v25  ;;  %6497 = vmatprep.mubr.bf16.mxu0 %v6966_v8  ;;  %v3962_v8 = vshll.u32 %v5679_v28, 16  ;;  %v3928_v25 = vrot.slane %v3927_v58, 4  ;;  %v1411_v28 = vrot.slane %v7038_v41, 5  ;;  %v8157_v55 = vcombine.low %v3899_v6, %v3909_v54  ;;  %v6976_v41 = vld [vmem:[%s8992_s1 + $0xe8] sm:$0xff]  }
  0xde   : > { %6289 = vmatprep.mubr.bf16.mxu1 %v9022_v46  ;;  %6318 = vmatpush3.bf16.msra.mxu1 %v6967_v30  ;;  %v1258_v30 = vld [vmem:[%s7149_s14 + $0xa8] sm:$0xe]  ;;  %v1406_v46 = vrot.slane %v1404_v12, 4  ;;  %v3961_v0 = vrot.slane %v3959_v35, 4  ;;  %v8163_v58 = vrot.slane %v3968_v19, 5  ;;  %v3974_v22 = vrot.slane %v3972_v42, 4 }
  0xdf   : > { %6319 = vmatprep.subr.bf16.mxu1 %v6971_v13  ;;  %v3964_v2 = vrot.slane %v3962_v8, 5  ;;  %v3923_v3 = vsel %vm7181_vm2, %v3918_v61, %v8101_v38  ;;  %v8173_v6 = vsel %vm7427_vm5, %v5394_v44, %v1404_v12  ;;  %v3983_v54 = vshrl.u32 %v5682_v17, 16  ;;  %v7039_v38 = vld [vmem:[%s7149_s14 + $0xb0] sm:$0x1]  ;;  %v1259_v19 = vld [vmem:[%s7149_s14 + $0xb4] sm:$0xe] }
  0xe0   : > { %v3986_v52 = vshll.u32 %v5682_v17, 16  ;;  %v3933_v53 = vsel %vm7181_vm2, %v3928_v25, %v3932_v36  ;;  %v8182_v51 = vsel %vm7427_vm5, %v1406_v46, %v1407_v1  ;;  %v5395_v35 = vrot.slane %v1258_v30, 9  ;;  %v8204_v30 = vld [vmem:[%s7149_s14 + $0x74] sm:$0x1]  ;;  %v7040_v25 = vld [vmem:[%s7149_s14 + $0xb8] sm:$0xf] }
  0xe1   : > { %v1414_v8 = vrot.slane %v7039_v38, 5  ;;  %v9025_v12 = vcombine.low %v7876_v49, %v7890_v4  ;;  %v3947_v42 = vsel %vm7181_vm2, %v3942_v5, %v8103_v34  ;;  %v3957_v61 = vsel %vm7181_vm2, %v3952_v18, %v3956_v10  ;;  %v6972_v4 = vld [vmem:[%s7149_s14 + $0xcc] sm:$0xff]   ;;  %9027 = vst [vmem:[#allocation7_spill] sm:$0xff] %v8204_v30  ;;  %v5688_v38 = vld [vmem:[%s7149_s14 + $0x84] sm:$0xf] }
  0xe2   : > { %6320 = vmatpush3.bf16.msra.mxu1 %v6971_v13  ;;  %v8176_v13 = vld [vmem:[%s7149_s14 + $0x70] sm:$0xf]  ;;  %v1413_v36 = vrot.slane %v1411_v28, 4  ;;  %v3978_v44 = vshll.u32 %v8155_v47, 16  ;;  %v9026_v49 = vcombine.low %v7912_v26, %v7916_v56  ;;  %v3975_v1 = vor.u32 %v3974_v22, %v8163_v58  ;;  %v8221_v22 = vld [vmem:[%s7149_s14 + $0x7c] sm:$0xf] }
  0xe3   : > { %6321 = vmatprep.subr.bf16.mxu1 %v6974_v24  ;;  %9024 = vst [vmem:[#allocation6_spill] sm:$0xff] %v8176_v13  ;;  %v3992_v34 = vshll.u32 %v8176_v13, 16  ;;  %v3996_v10 = vshrl.u32 %v8176_v13, 16  ;;  %v5396_v17 = vrot.slane %v1259_v19, 9  ;;  %v1418_v46 = vrot.slane %v7040_v25, 5  ;;  %9028 = vst [vmem:[#allocation8_spill] sm:$0xff] %v8221_v22 }
  0xe4   : > { %6498 = vmatmul.mubr.bf16.gmra.mrb[24].mxu0 %v6968_v23  ;;  %v6978_v23 = vld [vmem:[%s8992_s1 + $0xf0] sm:$0xff]   ;;  %v3985_v26 = vrot.slane %v3983_v54, 4  ;;  %v3988_v56 = vrot.slane %v3986_v52, 5  ;;  %v8212_v18 = vcombine.low %v3923_v3, %v3933_v53  ;;  %v8224_v19 = vcombine.low %v3947_v42, %v3957_v61  ;;  %v7041_v3 = vld [vmem:[%s7149_s14 + $0xbc] sm:$0x1] }
  0xe5   : > { %6290 = vmatmul.mubr.bf16.gmra.mrb[8].mxu1 %v9025_v12  ;;  %6501 = vmatprep.mubr.bf16.mxu0 %v6970_v62  ;;  %v3965_v62 = vor.u32 %v3964_v2, %v3961_v0  ;;  %v8218_v2 = vsel %vm7427_vm5, %v5395_v35, %v1411_v28  ;;  %v8228_v54 = vsel %vm7427_vm5, %v1413_v36, %v1414_v8  ;;  %v8230_v52 = vrot.slane %v3978_v44, 5  ;;  %v6980_v12 = vld [vmem:[%s8992_s1 + $0xf8] sm:$0xff]   ;;  %v8237_v28 = vld [vmem:[%s7149_s14 + $0x88] sm:$0xf] }
  0xe6   : > { %6293 = vmatprep.mubr.bf16.mxu1 %v9026_v49  ;;  %6322 = vmatpush3.bf16.msra.mxu1 %v6974_v24  ;;  %v5685_v24 = vld [vmem:[%s7149_s14 + $0x78] sm:$0xf]  ;;  %v1421_v53 = vrot.slane %v7041_v3, 5  ;;  %9029 = vst [vmem:[#allocation9_spill] sm:$0xff] %v8237_v28  ;;  %v8241_v42 = vrot.slane %v3975_v1, 4  ;;  %v8243_v61 = vrot.slane %v3992_v34, 5  ;;  %v8247_v36 = vsel %vm7427_vm5, %v5396_v17, %v1418_v46 }
  0xe7   : > { %6323 = vmatprep.subr.bf16.mxu1 %v6976_v41  ;;  %v8239_v35 = vrot.slane %v3965_v62, 4  ;;  %v3998_v8 = vrot.slane %v3996_v10, 4  ;;  %v1420_v44 = vrot.slane %v1418_v46, 4  ;;  %v3989_v49 = vor.u32 %v3988_v56, %v3985_v26  ;;  %v5691_v3 = vld [vmem:[%s7149_s14 + $0x90] sm:$0xf] }
  0xe8   : > { %v4002_v25 = vshll.u32 %v8204_v30, 16  ;;  %v4010_v0 = vshll.u32 %v5685_v24, 16  ;;  %v4016_v62 = vshll.u32 %v8221_v22, 16  ;;  %v4020_v1 = vshrl.u32 %v8221_v22, 16  ;;  %v8254_v34 = vld [vmem:[%s7149_s14 + $0x94] sm:$0xf] }
  0xe9   : > { %9030 = vst [vmem:[#allocation10_spill] sm:$0xff] %v8254_v34  ;;  %v9031_v10 = vcombine.low %v7956_v27, %v7960_v29  ;;  %v4031_v17 = vshrl.u32 %v5688_v38, 16  ;;  %v4034_v46 = vshll.u32 %v5688_v38, 16  ;;  %v4044_v26 = vshrl.u32 %v8237_v28, 16  ;;  %v5694_v38 = vld [vmem:[%s7149_s14 + $0x9c] sm:$0xf] }
  0xea   : > { %6324 = vmatpush3.bf16.msra.mxu1 %v6976_v41  ;;  %v4007_v41 = vshrl.u32 %v5685_v24, 16  ;;  %v9032_v56 = vcombine.low %v7967_v45, %v7971_v14  ;;  %v3999_v29 = vor.u32 %v3998_v8, %v8243_v61  ;;  %v4058_v24 = vshll.u32 %v5691_v3, 16  ;;  %v8276_v45 = vld [vmem:[%s7149_s14 + $0x80] sm:$0x1] }
  0xeb   : > { %6325 = vmatprep.subr.bf16.mxu1 %v6978_v23  ;;  %v8273_v5 = vrot.slane %v4002_v25, 5  ;;  %9033 = vst [vmem:[#allocation11_spill] sm:$0xff] %v8276_v45  ;;  %v4064_v14 = vshll.u32 %v8254_v34, 16  ;;  %v4012_v27 = vrot.slane %v4010_v0, 5  ;;  %v4022_v8 = vrot.slane %v4020_v1, 4 }
  0xec   : > { %6502 = vmatmul.mubr.bf16.gmra.mrb[28].mxu0 %v6972_v4  ;;  %v4040_v4 = vshll.u32 %v8237_v28, 16  ;;  %v8280_v28 = vrot.slane %v4016_v62, 5  ;;  %v8286_v22 = vld [vmem:[%s7149_s14 + $0xa0] sm:$0xf]  ;;  %v4033_v25 = vrot.slane %v4031_v17, 4  ;;  %v4036_v30 = vrot.slane %v4034_v46, 5 }
  0xed   : > { %6294 = vmatmul.mubr.bf16.gmra.mrb[12].mxu1 %v9031_v10  ;;  %6521 = vmatprep.mubr.bf16.mxu0 %v8025_v59  ;;  %v4055_v59 = vshrl.u32 %v5691_v3, 16  ;;  %v8271_v10 = vrot.slane %v3989_v49, 4  ;;  %v8283_v3 = vld [vmem:[%s7149_s14 + $0x8c] sm:$0x1]  ;;  %9035 = vst [vmem:[#allocation13_spill] sm:$0xff] %v8286_v22  ;;  %v4046_v47 = vrot.slane %v4044_v26, 4  ;;  %v8303_v62 = vsel %vm7427_vm5, %v1420_v44, %v1421_v53 }
  0xee   : > { %6297 = vmatprep.mubr.bf16.mxu1 %v9032_v56  ;;  %6326 = vmatpush3.bf16.msra.mxu1 %v6978_v23  ;;  %v4068_v23 = vshrl.u32 %v8254_v34, 16  ;;  %v4009_v56 = vrot.slane %v4007_v41, 4  ;;  %9034 = vst [vmem:[#allocation12_spill] sm:$0xff] %v8283_v3  ;;  %v6977_v49 = vld [vmem:[%s8992_s1 + $0x208] sm:$0xff]   ;;  %v8291_v13 = vrot.slane %v4040_v4, 5  ;;  %v4060_v34 = vrot.slane %v4058_v24, 5 }
  0xef   : > { %6327 = vmatprep.subr.bf16.mxu1 %v6980_v12  ;;  %v5697_v41 = vld [vmem:[%s7149_s14 + $0xa8] sm:$0xf]  ;;  %v4057_v1 = vrot.slane %v4055_v59, 4  ;;  %v8308_v17 = vld [vmem:[%s8992_s1 + $0x100] sm:$0xff]   ;;  %v8311_v46 = vrot.slane %v4064_v14, 5  ;;  %v4079_v26 = vshrl.u32 %v5694_v38, 16  ;;  %v9038_v24 = vcombine.low %v7975_v16, %v7985_v15 }
  0xf0   : > { %9037 = vst [vmem:[#allocation15_spill] sm:$0xff] %v8308_v17  ;;  %v4070_v4 = vrot.slane %v4068_v23, 4  ;;  %v4082_v0 = vshll.u32 %v5694_v38, 16  ;;  %v8314_v53 = vrot.slane %v3999_v29, 4  ;;  %v4088_v44 = vshll.u32 %v8286_v22, 16  ;;  %v6979_v16 = vld [vmem:[%s8992_s1 + $0x210] sm:$0xff]  }
  0xf1   : > { %v4092_v59 = vshrl.u32 %v8286_v22, 16  ;;  %v4013_v14 = vor.u32 %v4012_v27, %v4009_v56  ;;  %v4023_v38 = vor.u32 %v4022_v8, %v8280_v28  ;;  %v4037_v23 = vor.u32 %v4036_v30, %v4033_v25  ;;  %v8326_v29 = vld [vmem:[%s7149_s14 + $0xac] sm:$0xf]  ;;  %v8339_v25 = vld [vmem:[%s7149_s14 + $0xa4] sm:$0x1] }
  0xf2   : > { %6328 = vmatpush3.bf16.msra.mxu1 %v6980_v12  ;;  %v4026_v12 = vshll.u32 %v8276_v45, 16  ;;  %9039 = vst [vmem:[#allocation16_spill] sm:$0xff] %v8326_v29  ;;  %v4047_v15 = vor.u32 %v4046_v47, %v8291_v13  ;;  %v4103_v27 = vshrl.u32 %v5697_v41, 16  ;;  %v4106_v30 = vshll.u32 %v5697_v41, 16 }
  0xf3   : > { %6601 = vmatprep.subr.bf16.mxu1 %v8308_v17  ;;  %v9040_v17 = vcombine.low %v8031_v20, %v8052_v7  ;;  %v4061_v56 = vor.u32 %v4060_v34, %v4057_v1  ;;  %v4071_v8 = vor.u32 %v4070_v4, %v8311_v46  ;;  %v4081_v20 = vrot.slane %v4079_v26, 4 }
  0xf4   : > { %6522 = vmatmul.mubr.bf16.vlgmr.msra.gmra.mrb[0].mxu0 %v8108_v50  ;;  %v4050_v50 = vshll.u32 %v8283_v3, 16  ;;  %v4084_v7 = vrot.slane %v4082_v0, 5  ;;  %v4116_v22 = vshrl.u32 %v8326_v29, 16  ;;  %v4014_v47 = vrot.slane %v4013_v14, 4  ;;  %v6981_v0 = vld [vmem:[%s8992_s1 + $0x218] sm:$0xff]  }
  0xf5   : > { %6298 = vmatmul.mubr.bf16.gmra.mrb[16].mxu1 %v9038_v24  ;;  %6554 = vmatpush3.bf16.msra.mxu0 %v8012_v21  ;;  %v4074_v21 = vshll.u32 %v8294_v39, 16  ;;  %v4112_v24 = vshll.u32 %v8326_v29, 16  ;;  %v4024_v39 = vrot.slane %v4023_v38, 4  ;;  %v4028_v3 = vrot.slane %v4026_v12, 5 }
  0xf6   : > { %6301 = vmatprep.mubr.bf16.mxu1 %v9040_v17  ;;  %6525 = vmatprep.mubr.bf16.mxu0 %v8112_v48  ;;  %v8341_v17 = vrot.slane %v4088_v44, 5  ;;  %v4094_v48 = vrot.slane %v4092_v59, 4  ;;  %v4052_v41 = vrot.slane %v4050_v50, 5  ;;  %v4038_v34 = vrot.slane %v4037_v23, 4 }
  0xf7   : > { %6555 = vmatprep.subr.bf16.mxu0 %v6977_v49  ;;  %v4048_v1 = vrot.slane %v4047_v15, 4  ;;  %v4105_v4 = vrot.slane %v4103_v27, 4  ;;  %v4108_v45 = vrot.slane %v4106_v30, 5  ;;  %v4062_v26 = vrot.slane %v4061_v56, 4  ;;  %v8407_v27 = vld [vmem:[%s7149_s14 + $0xbc] sm:$0x1] }
  0xf8   : > { %v4076_v44 = vrot.slane %v4074_v21, 5  ;;  %v4085_v59 = vor.u32 %v4084_v7, %v4081_v20  ;;  %v4098_v29 = vshll.u32 %v8339_v25, 16  ;;  %v4095_v12 = vor.u32 %v4094_v48, %v8341_v17  ;;  %v8374_v21 = vld [vmem:[%s7149_s14 + $0xb0] sm:$0x1] }
  0xf9   : > { %6556 = vmatpush3.bf16.msra.mxu0 %v6977_v49  ;;  %v4072_v49 = vrot.slane %v4071_v8, 4  ;;  %v8351_v14 = vrot.slane %v4112_v24, 5  ;;  %v4118_v38 = vrot.slane %v4116_v22, 4  ;;  %v9041_v23 = vor.u32 %v7759_v57, %v7757_v11 }
  0xfa   : > { %6557 = vmatprep.subr.bf16.mxu0 %v6979_v16  ;;  %v9042_v15 = vcombine.low %v8064_v40, %v8089_v60  ;;  %v4005_v22 = vsel %vm7181_vm2, %v8314_v53, %v8273_v5  ;;  %v4019_v57 = vsel %vm7181_vm2, %v4014_v47, %v8280_v28  ;;  %v9043_v40 = vcombine.low %v8119_v31, %v8161_v43  ;;  %v6984_v31 = vld [vmem:[%s8992_s1 + $0x220] sm:$0xff]  }
  0xfb   : > { %v8356_v50 = vrot.slane %v9041_v23, 4  ;;  %v4029_v60 = vsel %vm7181_vm2, %v4024_v39, %v4028_v3  ;;  %v4109_v5 = vor.u32 %v4108_v45, %v4105_v4  ;;  %v4053_v28 = vsel %vm7181_vm2, %v4048_v1, %v4052_v41  ;;  %v5737_v41 = vld [vmem:[%s7149_s14 + $0x48] sm:$0xe] }
  0xfc   : > { %6526 = vmatmul.mubr.bf16.gmra.mrb[4].mxu0 %v8157_v55  ;;  %v3995_v55 = vsel %vm7181_vm2, %v8271_v10, %v8243_v61  ;;  %v5700_v61 = vld [vmem:[%s7149_s14 + $0xb4] sm:$0xf]  ;;  %v8386_v10 = vld [vmem:[%s7149_s14 + $0xb8] sm:$0xf]  ;;  %v4067_v39 = vsel %vm7181_vm2, %v4062_v26, %v8311_v46  ;;  %v8396_v43 = vrot.slane %v4085_v59, 4  ;;  %v8398_v3 = vrot.slane %v4098_v29, 5 }
  0xfd   : > { %6302 = vmatmul.mubr.bf16.gmra.mrb[20].mxu1 %v9042_v15  ;;  %6529 = vmatprep.mubr.bf16.mxu0 %v8212_v18  ;;  %v4043_v18 = vsel %vm7181_vm2, %v4038_v34, %v8291_v13  ;;  %v4077_v13 = vsel %vm7181_vm2, %v4072_v49, %v4076_v44  ;;  %v8402_v45 = vrot.slane %v4095_v12, 4  ;;  %v4119_v53 = vor.u32 %v4118_v38, %v8351_v14  ;;  %v5738_v26 = vld [vmem:[%s7149_s14 + $0x54] sm:$0xe] }
  0xfe   : > { %6305 = vmatprep.mubr.bf16.mxu1 %v9043_v40  ;;  %6558 = vmatpush3.bf16.msra.mxu0 %v6979_v16  ;;  %v4122_v16 = vshll.u32 %v8374_v21, 16  ;;  %v9044_v46 = vsel %vm7181_vm2, %v8241_v42, %v8230_v52  ;;  %v9045_v29 = vsel %vm7181_vm2, %v8239_v35, %v8163_v58  ;;  %v4127_v56 = vshrl.u32 %v5700_v61, 16 }
  0xff   : > { %6559 = vmatprep.subr.bf16.mxu0 %v6981_v0  ;;  %v5715_v30 = vcombine.low %v9045_v29, %v9044_v46  ;;  %v4130_v8 = vshll.u32 %v5700_v61, 16  ;;  %v4136_v20 = vshll.u32 %v8386_v10, 16  ;;  %v5411_v7 = vcombine.low %v8218_v2, %v8228_v54  ;;  %v6987_v2 = vld [vmem:[%s8992_s1 + $0x228] sm:$0xff]   ;;  %v5703_v54 = vld [vmem:[%s7149_s14 + $0xc0] sm:$0xf]  ;;  %v9049_v29 = vld [vmem:[#allocation5_spill] sm:$0xff] }
 0x100   : > { %v5412_v48 = vcombine.low %v8247_v36, %v8303_v62  ;;  %v5716_v24 = vcombine.low %v3995_v55, %v4005_v22  ;;  %v8424_v52 = vrot.slane %v4109_v5, 4  ;;  %v5717_v42 = vcombine.low %v4019_v57, %v4029_v60 }
 0x101   : > { %v8426_v58 = vcombine.low %v4043_v18, %v4053_v28  ;;  %v8428_v35 = vcombine.low %v4067_v39, %v4077_v13  ;;  %v4091_v47 = vsel %vm7181_vm2, %v8396_v43, %v8341_v17  ;;  %v4101_v34 = vsel %vm7181_vm2, %v8402_v45, %v8398_v3  ;;  %v5740_v28 = vld [vmem:[%s7149_s14 + $0x6c] sm:$0xe] }
 0x102   : > { %6560 = vmatpush3.bf16.msra.mxu0 %v6981_v0  ;;  %v8444_v1 = vrot.slane %v4119_v53, 4  ;;  %v8446_v4 = vrot.slane %v4122_v16, 5  ;;  %v4140_v0 = vshrl.u32 %v8386_v10, 16  ;;  %v9046_v44 = vcombine.low %v8173_v6, %v8182_v51  ;;  %v6990_v6 = vld [vmem:[%s8992_s1 + $0x230] sm:$0xff]   ;;  %v8468_v51 = vld [vmem:[%s7149_s14 + $0xc4] sm:$0xf] }
 0x103   : > { %6561 = vmatprep.subr.bf16.mxu0 %v6984_v31  ;;  %v8453_v59 = vrot.slane %v4127_v56, 4  ;;  %v8457_v49 = vrot.slane %v4136_v20, 5  ;;  %v4146_v12 = vshll.u32 %v8407_v27, 16  ;;  %v4115_v38 = vsel %vm7181_vm2, %v8424_v52, %v8351_v14  ;;  %v5739_v14 = vld [vmem:[%s7149_s14 + $0x60] sm:$0xe]  ;;  %v9047_v39 = vld [vmem:[#allocation3_spill] sm:$0xff] }
 0x104   : > { %6530 = vmatmul.mubr.bf16.gmra.mrb[8].mxu0 %v8224_v19  ;;  %v8455_v19 = vrot.slane %v4130_v8, 5  ;;  %v4151_v23 = vshrl.u32 %v5703_v54, 16  ;;  %v5753_v15 = vrot.slane %v5737_v41, 9  ;;  %v4613_v55 = vrot.slane %v8044_v32, 5  ;;  %v6982_v13 = vld [vmem:[%s7149_s14 + $0xc] sm:$0xff]   ;;  %v6993_v56 = vld [vmem:[%s8992_s1 + $0x238] sm:$0xff]  }
 0x105   : > { %6306 = vmatmul.mubr.bf16.gmra.mrb[24].mxu1 %v9046_v44  ;;  %6533 = vmatprep.mubr.bf16.mxu0 %v5715_v30  ;;  %v4154_v22 = vshll.u32 %v5703_v54, 16  ;;  %v4616_v57 = vrot.slane %v8092_v63, 5  ;;  %v5754_v40 = vrot.slane %v5738_v26, 9  ;;  %v4620_v60 = vrot.slane %v8056_v33, 5  ;;  %v9048_v16 = vld [vmem:[#allocation4_spill] sm:$0xff]  ;;  %v9050_v52 = vld [vmem:[#allocation6_spill] sm:$0xff] }
 0x106   : > { %6309 = vmatprep.mubr.bf16.mxu1 %v5411_v7  ;;  %6562 = vmatpush3.bf16.msra.mxu0 %v6984_v31  ;;  %v4125_v18 = vsel %vm7181_vm2, %v8444_v1, %v8446_v4  ;;  %v8478_v5 = vrot.slane %v4140_v0, 4  ;;  %v8482_v61 = vsel %vm7427_vm5, %v5753_v15, %v4613_v55  ;;  %v4615_v32 = vrot.slane %v4613_v55, 4  ;;  %v9051_v4 = vld [vmem:[#allocation7_spill] sm:$0xff] }
 0x107   : > { %6563 = vmatprep.subr.bf16.mxu0 %v6987_v2  ;;  %v4160_v31 = vshll.u32 %v8468_v51, 16  ;;  %v8488_v63 = vsel %vm7427_vm5, %v5754_v40, %v4620_v60  ;;  %v4622_v33 = vrot.slane %v4620_v60, 4  ;;  %v4623_v3 = vrot.slane %v9047_v39, 5  ;;  %v8519_v26 = vld [vmem:[%s7149_s14 + $0xc8] sm:$0x1]  ;;  %v6983_v40 = vld [vmem:[%s7149_s14 + $0x18] sm:$0xff]  }
 0x108   : > { %v8494_v45 = vsel %vm7427_vm5, %v4615_v32, %v4616_v57  ;;  %v5755_v53 = vrot.slane %v5739_v14, 9  ;;  %v4627_v46 = vrot.slane %v9048_v16, 5  ;;  %v4630_v30 = vrot.slane %v9049_v29, 5  ;;  %v6985_v39 = vld [vmem:[%s7149_s14 + $0x24] sm:$0xff]  }
 0x109   : > { %v5769_v8 = vcombine.low %v8482_v61, %v8494_v45  ;;  %v8505_v20 = vsel %vm7427_vm5, %v4622_v33, %v4623_v3  ;;  %v5756_v7 = vrot.slane %v5740_v28, 9  ;;  %v4637_v0 = vrot.slane %v9051_v4, 5  ;;  %v9053_v28 = vld [vmem:[#allocation11_spill] sm:$0xff]  ;;  %v5510_v61 = vld [vmem:[%s7149_s14 + $0x90] sm:$0xf] }
 0x10a   : > { %6564 = vmatpush3.bf16.msra.mxu0 %v6987_v2  ;;  %v4634_v2 = vrot.slane %v9050_v52, 5  ;;  %v5770_v54 = vcombine.low %v8488_v63, %v8505_v20  ;;  %v8512_v41 = vsel %vm7427_vm5, %v5755_v53, %v4627_v46  ;;  %v4629_v1 = vrot.slane %v4627_v46, 4  ;;  %v9054_v53 = vld [vmem:[#allocation2_spill] sm:$0xff]  ;;  %v6999_v45 = vld [vmem:[%s7149_s14 + $0xa8] sm:$0xff]  }
 0x10b   : > { %6565 = vmatprep.subr.bf16.mxu0 %v6990_v6  ;;  %v8521_v44 = vrot.slane %v4151_v23, 4  ;;  %v8534_v36 = vcombine.low %v4091_v47, %v4101_v34  ;;  %v4133_v62 = vor.u32 %v8455_v19, %v8453_v59  ;;  %v5741_v23 = vld [vmem:[%s7149_s14 + $0x78] sm:$0xe]  ;;  %v8546_v57 = vrot.slane %v4146_v12, 5  ;;  %v5706_v12 = vld [vmem:[%s7149_s14 + $0xcc] sm:$0xf] }
 0x10c   : > { %6534 = vmatmul.mubr.bf16.gmra.mrb[12].mxu0 %v5716_v24  ;;  %v8523_v24 = vrot.slane %v4154_v22, 5  ;;  %v8527_v15 = vsel %vm7427_vm5, %v5756_v7, %v4634_v2  ;;  %v4636_v55 = vrot.slane %v4634_v2, 4  ;;  %v8544_v22 = vcombine.low %v4115_v38, %v4125_v18  ;;  %v5504_v47 = vld [vmem:[%s7149_s14 + $0x78] sm:$0xf]  ;;  %v9052_v18 = vld [vmem:[#allocation8_spill] sm:$0xff] }
 0x10d   : > { %6310 = vmatmul.mubr.bf16.gmra.mrb[28].mxu1 %v5412_v48  ;;  %6537 = vmatprep.mubr.bf16.mxu0 %v5717_v42  ;;  %v4164_v48 = vshrl.u32 %v8468_v51, 16  ;;  %v8541_v42 = vsel %vm7427_vm5, %v4629_v1, %v4630_v30  ;;  %v4143_v34 = vor.u32 %v8478_v5, %v8457_v49  ;;  %v8557_v59 = vrot.slane %v4160_v31, 5  ;;  %v8571_v31 = vld [vmem:[%s7149_s14 + $0xd0] sm:$0xf]  ;;  %v9055_v1 = vld [vmem:[#allocation9_spill] sm:$0xff] }
 0x10e   : > { %6329 = vmatprep.mubr.bf16.mxu1 %v6982_v13  ;;  %6566 = vmatpush3.bf16.msra.mxu0 %v6990_v6  ;;  %v5771_v17 = vcombine.low %v8512_v41, %v8541_v42  ;;  %v8552_v43 = vsel %vm7427_vm5, %v4636_v55, %v4637_v0  ;;  %v4170_v19 = vshll.u32 %v8519_v26, 16  ;;  %v5742_v6 = vld [vmem:[%s7149_s14 + $0x84] sm:$0xe]  ;;  %v4157_v60 = vor.u32 %v8523_v24, %v8521_v44  ;;  %v9056_v24 = vld [vmem:[#allocation12_spill] sm:$0xff]  ;;  %v7063_v63 = vld [vmem:[%s7149_s14 + $0x8c] sm:$0x1] }
 0x10f   : > { %6567 = vmatprep.subr.bf16.mxu0 %v6993_v56  ;;  %v5772_v38 = vcombine.low %v8527_v15, %v8552_v43  ;;  %v5757_v14 = vrot.slane %v5741_v23, 9  ;;  %v4641_v32 = vrot.slane %v9052_v18, 5  ;;  %v4644_v33 = vrot.slane %v9053_v28, 5 }
 0x110   : > { %v4166_v5 = vrot.slane %v4164_v48, 4  ;;  %v2395_v3 = vshrl.u32 %v5504_v47, 16  ;;  %v2398_v13 = vshll.u32 %v5504_v47, 16  ;;  %v2417_v16 = vsel %vm7181_vm2, %v8356_v50, %v9054_v53 }
 0x111   : > { %v4175_v46 = vshrl.u32 %v5706_v12, 16  ;;  %v8579_v29 = vsel %vm7427_vm5, %v5757_v14, %v4641_v32  ;;  %v4643_v30 = vrot.slane %v4641_v32, 4  ;;  %v5758_v7 = vrot.slane %v5742_v6, 9  ;;  %v7043_v6 = vld [vmem:[%s8992_s1 + $0x108] sm:$0xff]  }
 0x112   : > { %6568 = vmatpush3.bf16.msra.mxu0 %v6993_v56  ;;  %v4178_v52 = vshll.u32 %v5706_v12, 16  ;;  %v2397_v2 = vrot.slane %v2395_v3, 4  ;;  %v2400_v56 = vrot.slane %v2398_v13, 5  ;;  %v4648_v4 = vrot.slane %v9055_v1, 5  ;;  %v5743_v12 = vld [vmem:[%s7149_s14 + $0x90] sm:$0xe] }
 0x113   : > { %v4184_v50 = vshll.u32 %v8571_v31, 16  ;;  %v4188_v0 = vshrl.u32 %v8571_v31, 16  ;;  %v8588_v44 = vsel %vm7427_vm5, %v4643_v30, %v4644_v33  ;;  %v4651_v55 = vrot.slane %v9056_v24, 5  ;;  %v6986_v3 = vld [vmem:[%s7149_s14 + $0x30] sm:$0xff]  }
 0x114   : > { %6538 = vmatmul.mubr.bf16.gmra.mrb[16].mxu0 %v8426_v58  ;;  %v9057_v58 = vld [vmem:[#allocation15_spill] sm:$0xff]  ;;  %v4167_v48 = vor.u32 %v4166_v5, %v8557_v59  ;;  %v2401_v23 = vor.u32 %v2400_v56, %v2397_v2  ;;  %v4650_v47 = vrot.slane %v4648_v4, 4  ;;  %v4144_v14 = vrot.slane %v4143_v34, 4  ;;  %v8609_v13 = vld [vmem:[%s7149_s14 + $0xd4] sm:$0x1]  ;;  %v9058_v2 = vld [vmem:[#allocation10_spill] sm:$0xff] }
 0x115   : > { %6330 = vmatmul.mubr.bf16.vlgmr.msra.gmra.mrb[0].mxu1 %v6983_v40  ;;  %6541 = vmatprep.mubr.bf16.mxu0 %v8428_v35  ;;  %v5773_v35 = vcombine.low %v8579_v29, %v8588_v44  ;;  %v4134_v40 = vrot.slane %v4133_v62, 4  ;;  %v4172_v18 = vrot.slane %v4170_v19, 5  ;;  %v8601_v32 = vsel %vm7427_vm5, %v5758_v7, %v4648_v4  ;;  %v6988_v19 = vld [vmem:[%s7149_s14 + $0x3c] sm:$0xff]   ;;  %v7044_v1 = vld [vmem:[%s8992_s1 + $0x110] sm:$0xff]  }
 0x116   : > { %6609 = vmatpush3.bf16.msra.mxu1 %v9057_v58  ;;  %6333 = vmatprep.mubr.bf16.mxu1 %v6985_v39  ;;  %v4177_v28 = vrot.slane %v4175_v46, 4  ;;  %v4180_v33 = vrot.slane %v4178_v52, 5  ;;  %v2402_v39 = vrot.slane %v2401_v23, 4  ;;  %v8605_v5 = vsel %vm7427_vm5, %v4650_v47, %v4651_v55  ;;  %v7045_v47 = vld [vmem:[%s7149_s14 + $0x1c] sm:$0xf] }
 0x117   : > { %6602 = vmatprep.subr.bf16.mxu1 %v7043_v6  ;;  %v8611_v53 = vrot.slane %v4184_v50, 5  ;;  %v4190_v30 = vrot.slane %v4188_v0, 4  ;;  %v5774_v62 = vcombine.low %v8601_v32, %v8605_v5  ;;  %v5759_v34 = vrot.slane %v5743_v12, 9 }
 0x118   : > { %v4158_v7 = vrot.slane %v4157_v60, 4  ;;  %v4168_v46 = vrot.slane %v4167_v48, 4  ;;  %v2407_v52 = vsel %vm7181_vm2, %v2402_v39, %v7757_v11  ;;  %v4655_v56 = vrot.slane %v9058_v2, 5  ;;  %v9059_v11 = vld [vmem:[#allocation14_spill] sm:$0xff]  ;;  %v6989_v39 = vld [vmem:[%s7149_s14 + $0x48] sm:$0xff]  }
 0x119   : > { %v4139_v4 = vsel %vm7181_vm2, %v4134_v40, %v8457_v49  ;;  %v4149_v60 = vsel %vm7181_vm2, %v4144_v14, %v8546_v57  ;;  %v8629_v50 = vcombine.low %v2407_v52, %v2417_v16  ;;  %v4658_v0 = vrot.slane %v9059_v11, 5  ;;  %v5733_v57 = vld [vmem:[%s7149_s14 + $0x18] sm:$0xe]  ;;  %v5744_v16 = vld [vmem:[%s7149_s14 + $0x9c] sm:$0xe] }
 0x11a   : > { %6610 = vmatpush3.bf16.msra.mxu1 %v7043_v6  ;;  %v4181_v24 = vor.u32 %v4180_v33, %v4177_v28  ;;  %v4194_v55 = vshll.u32 %v8609_v13, 16  ;;  %v8636_v58 = vsel %vm7427_vm5, %v5759_v34, %v4655_v56  ;;  %v4657_v48 = vrot.slane %v4655_v56, 4  ;;  %v7046_v40 = vld [vmem:[%s8992_s1 + $0x118] sm:$0xff]   ;;  %v7047_v2 = vld [vmem:[%s7149_s14 + $0x20] sm:$0x1] }
 0x11b   : > { %6603 = vmatprep.subr.bf16.mxu1 %v7044_v1  ;;  %v4191_v49 = vor.u32 %v4190_v30, %v8611_v53  ;;  %v4173_v23 = vsel %vm7181_vm2, %v4168_v46, %v4172_v18  ;;  %v4585_v12 = vrot.slane %v7045_v47, 5  ;;  %v5722_v6 = vcombine.low %v4139_v4, %v4149_v60  ;;  %v9060_v34 = vld [vmem:[#allocation13_spill] sm:$0xff]  ;;  %v5745_v11 = vld [vmem:[%s7149_s14 + $0xa8] sm:$0xe] }
 0x11c   : > { %6542 = vmatmul.mubr.bf16.gmra.mrb[20].mxu0 %v8534_v36  ;;  %v4163_v36 = vsel %vm7181_vm2, %v4158_v7, %v8557_v59  ;;  %v4182_v14 = vrot.slane %v4181_v24, 4  ;;  %v4196_v28 = vrot.slane %v4194_v55, 5  ;;  %v5749_v18 = vrot.slane %v5733_v57, 9  ;;  %v6991_v46 = vld [vmem:[%s7149_s14 + $0x54] sm:$0xff]   ;;  %v5734_v55 = vld [vmem:[%s7149_s14 + $0x24] sm:$0xe] }
 0x11d   : > { %6334 = vmatmul.mubr.bf16.gmra.mrb[4].mxu1 %v6986_v3  ;;  %6545 = vmatprep.mubr.bf16.mxu0 %v8544_v22  ;;  %v8650_v22 = vsel %vm7427_vm5, %v4657_v48, %v4658_v0  ;;  %v5760_v33 = vrot.slane %v5744_v16, 9  ;;  %v5723_v3 = vcombine.low %v4163_v36, %v4173_v23  ;;  %v4192_v30 = vrot.slane %v4191_v49, 4  ;;  %v7049_v48 = vld [vmem:[%s7149_s14 + $0x28] sm:$0xf]  ;;  %v7050_v36 = vld [vmem:[%s7149_s14 + $0x34] sm:$0xf] }
 0x11e   : > { %6337 = vmatprep.mubr.bf16.mxu1 %v6988_v19  ;;  %6611 = vmatpush3.bf16.msra.mxu1 %v7044_v1  ;;  %v5775_v59 = vcombine.low %v8636_v58, %v8650_v22  ;;  %v4662_v19 = vrot.slane %v9060_v34, 5  ;;  %v4665_v7 = vrot.slane %v8339_v25, 5  ;;  %v4587_v52 = vrot.slane %v4585_v12, 4  ;;  %v7048_v1 = vld [vmem:[%s8992_s1 + $0x120] sm:$0xff]  }
 0x11f   : > { %6604 = vmatprep.subr.bf16.mxu1 %v7046_v40  ;;  %v4588_v56 = vrot.slane %v7047_v2, 5  ;;  %v4586_v25 = vsel %vm7427_vm5, %v5749_v18, %v4585_v12  ;;  %v4187_v0 = vsel %vm7181_vm2, %v4182_v14, %v8611_v53  ;;  %v4197_v24 = vsel %vm7181_vm2, %v4192_v30, %v4196_v28  ;;  %v5735_v12 = vld [vmem:[%s7149_s14 + $0x30] sm:$0xe]  ;;  %v6992_v30 = vld [vmem:[%s7149_s14 + $0x60] sm:$0xff]  }
 0x120   : > { %v8667_v4 = vsel %vm7427_vm5, %v5760_v33, %v4662_v19  ;;  %v4664_v60 = vrot.slane %v4662_v19, 4  ;;  %v4592_v49 = vrot.slane %v7049_v48, 5  ;;  %v4599_v23 = vrot.slane %v7050_v36, 5  ;;  %v7052_v33 = vld [vmem:[%s7149_s14 + $0x2c] sm:$0x1] }
 0x121   : > { %v4589_v16 = vsel %vm7427_vm5, %v4587_v52, %v4588_v56  ;;  %v5761_v47 = vrot.slane %v5745_v11, 9  ;;  %v5724_v28 = vcombine.low %v4187_v0, %v4197_v24  ;;  %v5750_v18 = vrot.slane %v5734_v55, 9  ;;  %v6994_v52 = vld [vmem:[%s7149_s14 + $0x6c] sm:$0xff]   ;;  %v5746_v11 = vld [vmem:[%s7149_s14 + $0xb4] sm:$0xe] }
 0x122   : > { %6612 = vmatpush3.bf16.msra.mxu1 %v7046_v40  ;;  %v8681_v57 = vsel %vm7427_vm5, %v4664_v60, %v4665_v7  ;;  %v9061_v40 = vld [vmem:[#allocation16_spill] sm:$0xff]  ;;  %v5765_v34 = vcombine.low %v4586_v25, %v4589_v16  ;;  %v4594_v19 = vrot.slane %v4592_v49, 4  ;;  %v5751_v2 = vrot.slane %v5735_v12, 9  ;;  %v5736_v0 = vld [vmem:[%s7149_s14 + $0x3c] sm:$0xe] }
 0x123   : > { %6605 = vmatprep.subr.bf16.mxu1 %v7048_v1  ;;  %v5776_v53 = vcombine.low %v8667_v4, %v8681_v57  ;;  %v4669_v14 = vrot.slane %v9061_v40, 5  ;;  %v4601_v56 = vrot.slane %v4599_v23, 4  ;;  %v7054_v24 = vld [vmem:[%s7149_s14 + $0x40] sm:$0xf]  ;;  %v4593_v48 = vsel %vm7427_vm5, %v5750_v18, %v4592_v49  ;;  %v7056_v18 = vld [vmem:[%s7149_s14 + $0x44] sm:$0x1] }
 0x124   : > { %6546 = vmatmul.mubr.bf16.gmra.mrb[24].mxu0 %v5722_v6  ;;  %v7051_v6 = vld [vmem:[%s8992_s1 + $0x128] sm:$0xff]   ;;  %v4606_v55 = vrot.slane %v7054_v24, 5  ;;  %v4676_v12 = vrot.slane %v8386_v10, 5  ;;  %v4600_v49 = vsel %vm7427_vm5, %v5751_v2, %v4599_v23  ;;  %v7057_v10 = vld [vmem:[%s8992_s1 + $0x138] sm:$0xff]   ;;  %v5747_v23 = vld [vmem:[%s7149_s14 + $0xc0] sm:$0xe] }
 0x125   : > { %6338 = vmatmul.mubr.bf16.gmra.mrb[8].mxu1 %v6989_v39  ;;  %6549 = vmatprep.mubr.bf16.mxu0 %v5723_v3  ;;  %v4595_v39 = vrot.slane %v7052_v33, 5  ;;  %v4672_v3 = vrot.slane %v8374_v21, 5  ;;  %v8698_v7 = vsel %vm7427_vm5, %v5761_v47, %v4669_v14  ;;  %v7055_v21 = vld [vmem:[%s8992_s1 + $0x130] sm:$0xff]   ;;  %v5762_v47 = vrot.slane %v5746_v11, 9 }
 0x126   : > { %6341 = vmatprep.mubr.bf16.mxu1 %v6991_v46  ;;  %6613 = vmatpush3.bf16.msra.mxu1 %v7048_v1  ;;  %v4671_v46 = vrot.slane %v4669_v14, 4  ;;  %v7053_v1 = vld [vmem:[%s7149_s14 + $0x38] sm:$0x1]  ;;  %v5752_v14 = vrot.slane %v5736_v0, 9  ;;  %v4609_v33 = vrot.slane %v7056_v18, 5  ;;  %v4683_v11 = vrot.slane %v8468_v51, 5 }
 0x127   : > { %6606 = vmatprep.subr.bf16.mxu1 %v7051_v6  ;;  %v4602_v60 = vrot.slane %v7053_v1, 5  ;;  %v4596_v36 = vsel %vm7427_vm5, %v4594_v19, %v4595_v39  ;;  %v4678_v39 = vrot.slane %v4676_v12, 4  ;;  %v5501_v19 = vld [vmem:[%s7149_s14 + $0x6c] sm:$0xf]  ;;  %v6997_v18 = vld [vmem:[%s7149_s14 + $0x90] sm:$0xff]   ;;  %v2438_v20 = vshll.u32 %v7063_v63, 16 }
 0x128   : > { %v8710_v25 = vsel %vm7427_vm5, %v4671_v46, %v4672_v3  ;;  %v5766_v3 = vcombine.low %v4593_v48, %v4596_v36  ;;  %v4607_v1 = vsel %vm7427_vm5, %v5752_v14, %v4606_v55  ;;  %v2371_v0 = vshrl.u32 %v5501_v19, 16  ;;  %v5748_v51 = vld [vmem:[%s7149_s14 + $0xcc] sm:$0xe] }
 0x129   : > { %v5777_v16 = vcombine.low %v8698_v7, %v8710_v25  ;;  %v4603_v40 = vsel %vm7427_vm5, %v4601_v56, %v4602_v60  ;;  %v5763_v56 = vrot.slane %v5747_v23, 9  ;;  %v2374_v24 = vshll.u32 %v5501_v19, 16 }
 0x12a   : > { %6614 = vmatpush3.bf16.msra.mxu1 %v7051_v6  ;;  %v4679_v6 = vrot.slane %v8407_v27, 5  ;;  %v8730_v27 = vsel %vm7427_vm5, %v5762_v47, %v4676_v12  ;;  %v4686_v36 = vrot.slane %v8519_v26, 5  ;;  %v4685_v12 = vrot.slane %v4683_v11, 4 }
 0x12b   : > { %6607 = vmatprep.subr.bf16.mxu1 %v7055_v21  ;;  %v2376_v26 = vrot.slane %v2374_v24, 5  ;;  %v4693_v23 = vrot.slane %v8609_v13, 5 }
 0x12c   : > { %6550 = vmatmul.mubr.bf16.gmra.mrb[28].mxu0 %v5724_v28  ;;  %v4608_v28 = vrot.slane %v4606_v55, 4  ;;  %v8737_v46 = vsel %vm7427_vm5, %v4678_v39, %v4679_v6  ;;  %v8751_v55 = vsel %vm7427_vm5, %v5763_v56, %v4683_v11  ;;  %v4690_v39 = vrot.slane %v8571_v31, 5  ;;  %v7059_v56 = vld [vmem:[%s7149_s14 + $0x74] sm:$0x1] }
 0x12d   : > { %6342 = vmatmul.mubr.bf16.gmra.mrb[12].mxu1 %v6992_v30  ;;  %6569 = vmatprep.mubr.bf16.mxu0 %v5765_v34  ;;  %v6995_v30 = vld [vmem:[%s7149_s14 + $0x78] sm:$0xff]   ;;  %v5767_v34 = vcombine.low %v4600_v49, %v4603_v40  ;;  %v5778_v2 = vcombine.low %v8730_v27, %v8737_v46  ;;  %v8756_v49 = vsel %vm7427_vm5, %v4685_v12, %v4686_v36  ;;  %v2373_v40 = vrot.slane %v2371_v0, 4  ;;  %v7060_v0 = vld [vmem:[%s7149_s14 + $0x88] sm:$0xf] }
 0x12e   : > { %6345 = vmatprep.mubr.bf16.mxu1 %v6994_v52  ;;  %6615 = vmatpush3.bf16.msra.mxu1 %v7055_v21  ;;  %v6996_v52 = vld [vmem:[%s7149_s14 + $0x84] sm:$0xff]   ;;  %v4610_v60 = vsel %vm7427_vm5, %v4608_v28, %v4609_v33  ;;  %v7058_v21 = vld [vmem:[%s7149_s14 + $0x70] sm:$0xf]  ;;  %v5779_v28 = vcombine.low %v8751_v55, %v8756_v49  ;;  %v4692_v19 = vrot.slane %v4690_v39, 4  ;;  %v2428_v24 = vshll.u32 %v7060_v0, 16 }
 0x12f   : > { %6608 = vmatprep.subr.bf16.mxu1 %v7057_v10  ;;  %v2380_v48 = vshll.u32 %v7058_v21, 16  ;;  %v2384_v47 = vshrl.u32 %v7058_v21, 16  ;;  %v5768_v6 = vcombine.low %v4607_v1, %v4610_v60  ;;  %v2390_v1 = vshll.u32 %v7059_v56, 16 }
 0x130   : > { %v8778_v11 = vsel %vm7427_vm5, %v4692_v19, %v4693_v23  ;;  %v2432_v21 = vshrl.u32 %v7060_v0, 16  ;;  %v7062_v19 = vld [vmem:[%s7149_s14 + $0xa0] sm:$0xf] }
 0x131   : > { %v8758_v14 = vrot.slane %v2380_v48, 5  ;;  %v2386_v33 = vrot.slane %v2384_v47, 4  ;;  %v2480_v56 = vshrl.u32 %v7062_v19, 16 }
 0x132   : > { %6616 = vmatpush3.bf16.msra.mxu1 %v7057_v10  ;;  %v5764_v10 = vrot.slane %v5748_v51, 9 }
 0x133   : > { %v2387_v31 = vor.u32 %v2386_v33, %v8758_v14  ;;  %v2446_v33 = vshll.u32 %v5510_v61, 16 }
 0x134   : > { %6570 = vmatmul.mubr.bf16.vlgmr.msra.gmra.mrb[0].mxu0 %v5766_v3  ;;  %v6998_v3 = vld [vmem:[%s7149_s14 + $0x9c] sm:$0xff]  }
 0x135   : > { %6346 = vmatmul.mubr.bf16.gmra.mrb[16].mxu1 %v6995_v30  ;;  %6573 = vmatprep.mubr.bf16.mxu0 %v5767_v34  ;;  %v5507_v30 = vld [vmem:[%s7149_s14 + $0x84] sm:$0xf]  ;;  %v8769_v34 = vsel %vm7427_vm5, %v5764_v10, %v4690_v39  ;;  %v2388_v47 = vrot.slane %v2387_v31, 4  ;;  %v7061_v10 = vld [vmem:[%s7149_s14 + $0x94] sm:$0xf]  ;;  %v2448_v0 = vrot.slane %v2446_v33, 5 }
 0x136   : > { %6349 = vmatprep.mubr.bf16.mxu1 %v6996_v52  ;;  %v2377_v52 = vor.u32 %v2376_v26, %v2373_v40  ;;  %v2419_v13 = vshrl.u32 %v5507_v30, 16  ;;  %v2422_v60 = vshll.u32 %v5507_v30, 16  ;;  %v5780_v48 = vcombine.low %v8769_v34, %v8778_v11 }
 0x137   : > { %v8787_v40 = vrot.slane %v2428_v24, 5  ;;  %v2434_v26 = vrot.slane %v2432_v21, 4  ;;  %v2452_v39 = vshll.u32 %v7061_v10, 16  ;;  %v2456_v23 = vshrl.u32 %v7061_v10, 16  ;;  %v7065_v10 = vld [vmem:[%s7149_s14 + $0xa4] sm:$0x1] }
 0x138   : > { %v2378_v36 = vrot.slane %v2377_v52, 4  ;;  %v2421_v12 = vrot.slane %v2419_v13, 4  ;;  %v2424_v51 = vrot.slane %v2422_v60, 5  ;;  %v2476_v52 = vshll.u32 %v7062_v19, 16  ;;  %v7066_v19 = vld [vmem:[%s7149_s14 + $0xac] sm:$0xf] }
 0x139   : > { %v2435_v13 = vor.u32 %v2434_v26, %v8787_v40  ;;  %v8804_v41 = vrot.slane %v2452_v39, 5  ;;  %v2458_v42 = vrot.slane %v2456_v23, 4  ;;  %v2482_v21 = vrot.slane %v2480_v56, 4  ;;  %v5519_v23 = vld [vmem:[%s7149_s14 + $0xb4] sm:$0xf] }
 0x13a   : > { %v2486_v39 = vshll.u32 %v7065_v10, 16  ;;  %v2504_v15 = vshrl.u32 %v7066_v19, 16  ;;  %v2518_v63 = vshll.u32 %v5519_v23, 16 }
 0x13b   : > { %v2459_v26 = vor.u32 %v2458_v42, %v8804_v41 }
 0x13c   : > { %6574 = vmatmul.mubr.bf16.gmra.mrb[4].mxu0 %v5768_v6  ;;  %v5513_v6 = vld [vmem:[%s7149_s14 + $0x9c] sm:$0xf] }
 0x13d   : > { %6350 = vmatmul.mubr.bf16.gmra.mrb[20].mxu1 %v6997_v18  ;;  %6577 = vmatprep.mubr.bf16.mxu0 %v5769_v8  ;;  %v2392_v8 = vrot.slane %v2390_v1, 5  ;;  %v2443_v18 = vshrl.u32 %v5510_v61, 16  ;;  %v2470_v30 = vshll.u32 %v5513_v6, 16  ;;  %v2383_v1 = vsel %vm7181_vm2, %v2378_v36, %v8758_v14  ;;  %v7001_v61 = vld [vmem:[%s7149_s14 + $0xc0] sm:$0xff]  }
 0x13e   : > { %6353 = vmatprep.mubr.bf16.mxu1 %v6998_v3  ;;  %v2467_v3 = vshrl.u32 %v5513_v6, 16  ;;  %v8806_v14 = vrot.slane %v2476_v52, 5  ;;  %v2500_v52 = vshll.u32 %v7066_v19, 16 }
 0x13f   : > { %v2393_v31 = vsel %vm7181_vm2, %v2388_v47, %v2392_v8  ;;  %v2445_v60 = vrot.slane %v2443_v18, 4  ;;  %v2472_v24 = vrot.slane %v2470_v30, 5  ;;  %v2440_v8 = vrot.slane %v2438_v20, 5  ;;  %v7067_v20 = vld [vmem:[%s7149_s14 + $0xb8] sm:$0xf] }
 0x140   : > { %v2436_v47 = vrot.slane %v2435_v13, 4  ;;  %v2483_v33 = vor.u32 %v2482_v21, %v8806_v14  ;;  %v2524_v29 = vshll.u32 %v7067_v20, 16  ;;  %v2528_v44 = vshrl.u32 %v7067_v20, 16 }
 0x142   : > { %v2484_v13 = vrot.slane %v2483_v33, 4 }
 0x144   : > { %6578 = vmatmul.mubr.bf16.gmra.mrb[8].mxu0 %v5770_v54  ;;  %v2425_v54 = vor.u32 %v2424_v51, %v2421_v12  ;;  %v2449_v12 = vor.u32 %v2448_v0, %v2445_v60  ;;  %v7064_v51 = vld [vmem:[%s7149_s14 + $0x98] sm:$0x1]  ;;  %v2488_v60 = vrot.slane %v2486_v39, 5 }
 0x145   : > { %6354 = vmatmul.mubr.bf16.gmra.mrb[24].mxu1 %v6999_v45  ;;  %6581 = vmatprep.mubr.bf16.mxu0 %v5771_v17  ;;  %v2469_v17 = vrot.slane %v2467_v3, 4  ;;  %v5533_v45 = vcombine.low %v2383_v1, %v2393_v31  ;;  %v2462_v6 = vshll.u32 %v7064_v51, 16  ;;  %v2515_v31 = vshrl.u32 %v5519_v23, 16 }
 0x146   : > { %6357 = vmatprep.mubr.bf16.mxu1 %v7000_v9  ;;  %v2426_v36 = vrot.slane %v2425_v54, 4  ;;  %v5516_v9 = vld [vmem:[%s7149_s14 + $0xa8] sm:$0xf]  ;;  %v2450_v56 = vrot.slane %v2449_v12, 4  ;;  %v2489_v32 = vsel %vm7181_vm2, %v2484_v13, %v2488_v60 }
 0x147   : > { %v2473_v18 = vor.u32 %v2472_v24, %v2469_v17  ;;  %v2491_v3 = vshrl.u32 %v5516_v9, 16  ;;  %v2494_v30 = vshll.u32 %v5516_v9, 16  ;;  %v2464_v1 = vrot.slane %v2462_v6, 5 }
 0x148   : > { %v2431_v43 = vsel %vm7181_vm2, %v2426_v36, %v8787_v40  ;;  %v2502_v17 = vrot.slane %v2500_v52, 5  ;;  %v2506_v24 = vrot.slane %v2504_v15, 4  ;;  %v2517_v21 = vrot.slane %v2515_v31, 4  ;;  %v5522_v36 = vld [vmem:[%s7149_s14 + $0xc0] sm:$0xf] }
 0x149   : > { %v2474_v54 = vrot.slane %v2473_v18, 4  ;;  %v2493_v0 = vrot.slane %v2491_v3, 4  ;;  %v2496_v42 = vrot.slane %v2494_v30, 5  ;;  %v2539_v9 = vshrl.u32 %v5522_v36, 16  ;;  %v7069_v18 = vld [vmem:[%s7149_s14 + $0xc4] sm:$0xf] }
 0x14a   : > { %v2548_v33 = vshll.u32 %v7069_v18, 16 }
 0x14b   : > { %v2479_v51 = vsel %vm7181_vm2, %v2474_v54, %v8806_v14  ;;  %v2497_v5 = vor.u32 %v2496_v42, %v2493_v0  ;;  %v2552_v14 = vshrl.u32 %v7069_v18, 16  ;;  %v2541_v19 = vrot.slane %v2539_v9, 4 }
 0x14c   : > { %6582 = vmatmul.mubr.bf16.gmra.mrb[12].mxu0 %v5772_v38  ;;  %v2441_v38 = vsel %vm7181_vm2, %v2436_v47, %v2440_v8  ;;  %v2530_v8 = vrot.slane %v2528_v44, 4  ;;  %v2455_v47 = vsel %vm7181_vm2, %v2450_v56, %v8804_v41  ;;  %v7068_v41 = vld [vmem:[%s7149_s14 + $0xb0] sm:$0x1]  ;;  %v5537_v58 = vcombine.low %v2479_v51, %v2489_v32  ;;  %v7071_v44 = vld [vmem:[%s7149_s14 + $0xc8] sm:$0x1] }
 0x14d   : > { %6358 = vmatmul.mubr.bf16.gmra.mrb[28].mxu1 %v7001_v61  ;;  %6585 = vmatprep.mubr.bf16.mxu0 %v5773_v35  ;;  %v2460_v35 = vrot.slane %v2459_v26, 4  ;;  %v5535_v40 = vcombine.low %v2431_v43, %v2441_v38  ;;  %v2520_v61 = vrot.slane %v2518_v63, 5  ;;  %v2510_v6 = vshll.u32 %v7068_v41, 16 }
 0x14e   : > { %6393 = vmatprep.mubr.bf16.mxu1 %v5533_v45  ;;  %v2526_v45 = vrot.slane %v2524_v29, 5  ;;  %v2542_v26 = vshll.u32 %v5522_v36, 16  ;;  %v2498_v22 = vrot.slane %v2497_v5, 4  ;;  %v2550_v15 = vrot.slane %v2548_v33, 5 }
 0x14f   : > { %v2465_v12 = vsel %vm7181_vm2, %v2460_v35, %v2464_v1  ;;  %v2521_v10 = vor.u32 %v2520_v61, %v2517_v21  ;;  %v2512_v30 = vrot.slane %v2510_v6, 5  ;;  %v2554_v43 = vrot.slane %v2552_v14, 4 }
 0x150   : > { %v2531_v39 = vor.u32 %v2530_v8, %v2526_v45  ;;  %v5536_v3 = vcombine.low %v2455_v47, %v2465_v12  ;;  %v2544_v52 = vrot.slane %v2542_v26, 5  ;;  %v2503_v31 = vsel %vm7181_vm2, %v2498_v22, %v2502_v17  ;;  %v8890_v8 = vld [vmem:[%s8993_s2] ss:$0 sm:$0xff] }
 0x151   : > { %v2522_v38 = vrot.slane %v2521_v10, 4  ;;  %v2555_v29 = vor.u32 %v2554_v43, %v2550_v15  ;;  %v2558_v35 = vshll.u32 %v7071_v44, 16  ;;  %v8895_v12 = vld [vmem:[%s8994_s3] ss:$0 sm:$0xff] }
 0x152   : > { %v2532_v56 = vrot.slane %v2531_v39, 4  ;;  %v2545_v20 = vor.u32 %v2544_v52, %v2541_v19 }
 0x153   : > { %v2527_v4 = vsel %vm7181_vm2, %v2522_v38, %v2526_v45  ;;  %v2560_v54 = vrot.slane %v2558_v35, 5 }
 0x154   : > { %6586 = vmatmul.mubr.bf16.gmra.mrb[16].mxu0 %v5774_v62  ;;  %v2507_v62 = vor.u32 %v2506_v24, %v2502_v17  ;;  %v2546_v25 = vrot.slane %v2545_v20, 4 }
 0x155   : > { %6394 = vmatmul.mubr.bf16.vlgmr.msra.gmra.mrb[16].mxu1 %v8629_v50  ;;  %6589 = vmatprep.mubr.bf16.mxu0 %v5775_v59  ;;  %v7070_v50 = vld [vmem:[%s7149_s14 + $0xbc] sm:$0x1] }
 0x156   : > { %6397 = vmatprep.mubr.bf16.mxu1 %v5535_v40  ;;  %v2534_v23 = vshll.u32 %v7070_v50, 16  ;;  %v2508_v59 = vrot.slane %v2507_v62, 4  ;;  %v2551_v13 = vsel %vm7181_vm2, %v2546_v25, %v2550_v15 }
 0x158   : > { %v2536_v1 = vrot.slane %v2534_v23, 5  ;;  %v2513_v63 = vsel %vm7181_vm2, %v2508_v59, %v2512_v30 }
 0x15a   : > { %v2537_v57 = vsel %vm7181_vm2, %v2532_v56, %v2536_v1 }
 0x15b   : > { %v5539_v7 = vcombine.low %v2527_v4, %v2537_v57 }
 0x15c   : > { %6590 = vmatmul.mubr.bf16.gmra.mrb[20].mxu0 %v5776_v53  ;;  %v5538_v53 = vcombine.low %v2503_v31, %v2513_v63 }
 0x15d   : > { %6398 = vmatmul.mubr.bf16.gmra.mrb[20].mxu1 %v5536_v3  ;;  %6593 = vmatprep.mubr.bf16.mxu0 %v5777_v16  ;;  %v2556_v16 = vrot.slane %v2555_v29, 4 }
 0x15e   : > { %6401 = vmatprep.mubr.bf16.mxu1 %v5537_v58 }
 0x15f   : > { %v2561_v60 = vsel %vm7181_vm2, %v2556_v16, %v2560_v54 }
 0x160   : > { %v5540_v0 = vcombine.low %v2551_v13, %v2561_v60 }
 0x164   : > { %6594 = vmatmul.mubr.bf16.gmra.mrb[24].mxu0 %v5778_v2 }
 0x165   : > { %6402 = vmatmul.mubr.bf16.gmra.mrb[24].mxu1 %v5538_v53  ;;  %6597 = vmatprep.mubr.bf16.mxu0 %v5779_v28 }
 0x166   : > { %6405 = vmatprep.mubr.bf16.mxu1 %v5539_v7 }
 0x16c   : > { %6598 = vmatmul.mubr.bf16.gmra.mrb[28].mxu0 %v5780_v48 }
 0x16d   : > { %6406 = vmatmul.mubr.bf16.gmra.mrb[28].mxu1 %v5540_v0 }
 0x1e8   : > { %v6331_v27 = vpop.f32.mrb[0].mxu1 }
 0x1e9   : > { %v1955_v46 = vpop.f32.mrb[1].mxu1 }
 0x1ea   : > { %v6332_v2 = vpop.f32.mrb[2].mxu1 }
 0x1eb   : > { %v1958_v42 = vpop.f32.mrb[3].mxu1 }
 0x1f0   : > { %v6335_v17 = vpop.f32.mrb[4].mxu1 }
 0x1f1   : > { %v1971_v55 = vpop.f32.mrb[5].mxu1 }
 0x1f2   : > { %v6336_v49 = vpop.f32.mrb[6].mxu1 }
 0x1f3   : > { %v1974_v28 = vpop.f32.mrb[7].mxu1 }
 0x1f8   : > { %v6339_v24 = vpop.f32.mrb[8].mxu1 }
 0x1f9   : > { %v1987_v40 = vpop.f32.mrb[9].mxu1 }
 0x1fa   : > { %v6340_v21 = vpop.f32.mrb[10].mxu1 }
 0x1fb   : > { %v8877_v61 = vpop.f32.mrb[11].mxu1 }
 0x200   : > { %v8879_v37 = vpop.f32.mrb[12].mxu1 }
 0x201   : > { %v8881_v45 = vpop.f32.mrb[13].mxu1 }
 0x202   : > { %v8883_v34 = vpop.f32.mrb[14].mxu1 }
 0x203   : > { %v8885_v11 = vpop.f32.mrb[15].mxu1 }
 0x207   : > { %v6571_v48 = vpop.f32.mrb[0].mxu0 }
 0x208   : > { %v6617_v36 = vadd.f32 %v6571_v48, %v6331_v27  ;;  %v4841_v47 = vpop.f32.mrb[1].mxu0 }
 0x209   : > { %v6618_v51 = vadd.f32 %v4841_v47, %v1955_v46  ;;  %v6572_v32 = vpop.f32.mrb[2].mxu0 }
 0x20a   : > { %v5009_v5 = vmul.f32 %v6617_v36, %v8890_v8  ;;  %v6619_v62 = vadd.f32 %v6572_v32, %v6332_v2  ;;  %v4844_v41 = vpop.f32.mrb[3].mxu0 }
 0x20b   : > { %v5007_v6 = vmul.f32 %v6618_v51, %v8890_v8  ;;  %v6620_v9 = vadd.f32 %v4844_v41, %v1958_v42 }
 0x20c   : > { %v5048_v26 = vadd.f32 %v8895_v12, %v5009_v5  ;;  %v5010_v18 = vmul.f32 %v6619_v62, %v8890_v8 }
 0x20d   : > { %v5046_v33 = vadd.f32 %v8895_v12, %v5007_v6  ;;  %v5008_v14 = vmul.f32 %v6620_v9, %v8890_v8 }
 0x20e   : > { %v5049_v10 = vadd.f32 %v8895_v12, %v5010_v18  ;;  %v5080_v23 = vmax.f32 %v5048_v26, 0.0 }
 0x20f   : > { %v5047_v39 = vadd.f32 %v8895_v12, %v5008_v14  ;;  %v6575_v50 = vpop.f32.mrb[4].mxu0  ;;  %v5078_v59 = vmax.f32 %v5046_v33, 0.0 }
 0x210   : > { %v5081_v3 = vmax.f32 %v5049_v10, 0.0  ;;  %v6621_v58 = vadd.f32 %v6575_v50, %v6335_v17  ;;  %v4857_v22 = vpop.f32.mrb[5].mxu0 }
 0x211   : > { %v5079_v30 = vmax.f32 %v5047_v39, 0.0  ;;  %v6622_v19 = vadd.f32 %v4857_v22, %v1971_v55  ;;  %v6576_v52 = vpop.f32.mrb[6].mxu0 }
 0x212   : > { %v5866_v15 = vpack.c.bf16 %v5081_v3, %v5080_v23  ;;  %v5013_v43 = vmul.f32 %v6621_v58, %v8890_v8  ;;  %v6623_v38 = vadd.f32 %v6576_v52, %v6336_v49  ;;  %v4860_v56 = vpop.f32.mrb[7].mxu0 }
 0x213   : > { %v5861_v1 = vpack.c.bf16 %v5079_v30, %v5078_v59  ;;  %v5011_v31 = vmul.f32 %v6622_v19, %v8890_v8  ;;  %v6624_v63 = vadd.f32 %v4860_v56, %v1974_v28 }
 0x214   : > { %5938 = vst [vmem:[%s8909_s25 + $0x8] sm:$0xff] %v5866_v15   ;;  %v5052_v20 = vadd.f32 %v8895_v12, %v5013_v43  ;;  %v5014_v29 = vmul.f32 %v6623_v38, %v8890_v8 }
 0x215   : > { %5862 = vst [vmem:[%s8909_s25] sm:$0xff] %v5861_v1   ;;  %v5050_v44 = vadd.f32 %v8895_v12, %v5011_v31  ;;  %v5012_v35 = vmul.f32 %v6624_v63, %v8890_v8 }
 0x216   : > { %v5053_v4 = vadd.f32 %v8895_v12, %v5014_v29  ;;  %v5084_v7 = vmax.f32 %v5052_v20, 0.0 }
 0x217   : > { %v5051_v57 = vadd.f32 %v8895_v12, %v5012_v35  ;;  %v6579_v53 = vpop.f32.mrb[8].mxu0  ;;  %v5082_v13 = vmax.f32 %v5050_v44, 0.0 }
 0x218   : > { %v5085_v25 = vmax.f32 %v5053_v4, 0.0  ;;  %v6625_v16 = vadd.f32 %v6579_v53, %v6339_v24  ;;  %v4873_v54 = vpop.f32.mrb[9].mxu0 }
 0x219   : > { %v5083_v60 = vmax.f32 %v5051_v57, 0.0  ;;  %v6626_v0 = vadd.f32 %v4873_v54, %v1987_v40  ;;  %v6580_v27 = vpop.f32.mrb[10].mxu0 }
 0x21a   : > { %v5876_v46 = vpack.c.bf16 %v5085_v25, %v5084_v7  ;;  %v5017_v2 = vmul.f32 %v6625_v16, %v8890_v8  ;;  %v6627_v42 = vadd.f32 %v6580_v27, %v6340_v21  ;;  %v4876_v17 = vpop.f32.mrb[11].mxu0 }
 0x21b   : > { %v5871_v55 = vpack.c.bf16 %v5083_v60, %v5082_v13  ;;  %v5015_v49 = vmul.f32 %v6626_v0, %v8890_v8  ;;  %v6628_v28 = vadd.f32 %v4876_v17, %v8877_v61 }
 0x21c   : > { %5940 = vst [vmem:[%s8909_s25 + $0x18] sm:$0xff] %v5876_v46   ;;  %v5056_v48 = vadd.f32 %v8895_v12, %v5017_v2  ;;  %v5018_v24 = vmul.f32 %v6627_v42, %v8890_v8 }
 0x21d   : > { %5939 = vst [vmem:[%s8909_s25 + $0x10] sm:$0xff] %v5871_v55   ;;  %v5054_v36 = vadd.f32 %v8895_v12, %v5015_v49  ;;  %v5016_v40 = vmul.f32 %v6628_v28, %v8890_v8 }
 0x21e   : > { %v5057_v47 = vadd.f32 %v8895_v12, %v5018_v24  ;;  %v5088_v32 = vmax.f32 %v5056_v48, 0.0 }
 0x21f   : > { %v5055_v21 = vadd.f32 %v8895_v12, %v5016_v40  ;;  %v6583_v51 = vpop.f32.mrb[12].mxu0  ;;  %v5086_v41 = vmax.f32 %v5054_v36, 0.0 }
 0x220   : > { %v5089_v5 = vmax.f32 %v5057_v47, 0.0  ;;  %v6629_v61 = vadd.f32 %v6583_v51, %v8879_v37  ;;  %v4889_v62 = vpop.f32.mrb[13].mxu0 }
 0x221   : > { %v5087_v6 = vmax.f32 %v5055_v21, 0.0  ;;  %v6630_v9 = vadd.f32 %v4889_v62, %v8881_v45  ;;  %v6584_v26 = vpop.f32.mrb[14].mxu0 }
 0x222   : > { %v5886_v18 = vpack.c.bf16 %v5089_v5, %v5088_v32  ;;  %v5021_v33 = vmul.f32 %v6629_v61, %v8890_v8  ;;  %v6631_v14 = vadd.f32 %v6584_v26, %v8883_v34  ;;  %v4892_v10 = vpop.f32.mrb[15].mxu0 }
 0x223   : > { %v5881_v39 = vpack.c.bf16 %v5087_v6, %v5086_v41  ;;  %v5019_v50 = vmul.f32 %v6630_v9, %v8890_v8  ;;  %v6632_v23 = vadd.f32 %v4892_v10, %v8885_v11 }
 0x224   : > { %5942 = vst [vmem:[%s8909_s25 + $0x28] sm:$0xff] %v5886_v18   ;;  %v5060_v37 = vadd.f32 %v8895_v12, %v5021_v33  ;;  %v5022_v3 = vmul.f32 %v6631_v14, %v8890_v8 }
 0x225   : > { %5941 = vst [vmem:[%s8909_s25 + $0x20] sm:$0xff] %v5881_v39   ;;  %v5058_v45 = vadd.f32 %v8895_v12, %v5019_v50  ;;  %v5020_v58 = vmul.f32 %v6632_v23, %v8890_v8 }
 0x226   : > { %v5061_v22 = vadd.f32 %v8895_v12, %v5022_v3  ;;  %v5092_v30 = vmax.f32 %v5060_v37, 0.0 }
 0x227   : > { %v5059_v34 = vadd.f32 %v8895_v12, %v5020_v58  ;;  %v6587_v59 = vpop.f32.mrb[16].mxu0  ;;  %v5090_v15 = vmax.f32 %v5058_v45, 0.0 }
 0x228   : > { %v5093_v19 = vmax.f32 %v5061_v22, 0.0  ;;  %v6395_v52 = vpop.f32.mrb[16].mxu1  ;;  %v4905_v11 = vpop.f32.mrb[17].mxu0 }
 0x229   : > { %v5091_v43 = vmax.f32 %v5059_v34, 0.0  ;;  %v6633_v38 = vadd.f32 %v6587_v59, %v6395_v52  ;;  %v2772_v56 = vpop.f32.mrb[17].mxu1  ;;  %v6588_v1 = vpop.f32.mrb[18].mxu0 }
 0x22a   : > { %v5896_v31 = vpack.c.bf16 %v5093_v19, %v5092_v30  ;;  %v6634_v63 = vadd.f32 %v4905_v11, %v2772_v56  ;;  %v6396_v20 = vpop.f32.mrb[18].mxu1  ;;  %v4908_v29 = vpop.f32.mrb[19].mxu0 }
 0x22b   : > { %v5891_v44 = vpack.c.bf16 %v5091_v43, %v5090_v15  ;;  %v5025_v35 = vmul.f32 %v6633_v38, %v8890_v8  ;;  %v6635_v4 = vadd.f32 %v6588_v1, %v6396_v20  ;;  %v2775_v57 = vpop.f32.mrb[19].mxu1 }
 0x22c   : > { %5944 = vst [vmem:[%s8909_s25 + $0x38] sm:$0xff] %v5896_v31   ;;  %v5023_v53 = vmul.f32 %v6634_v63, %v8890_v8  ;;  %v6636_v7 = vadd.f32 %v4908_v29, %v2775_v57 }
 0x22d   : > { %5943 = vst [vmem:[%s8909_s25 + $0x30] sm:$0xff] %v5891_v44   ;;  %v5064_v25 = vadd.f32 %v8895_v12, %v5025_v35  ;;  %v5026_v16 = vmul.f32 %v6635_v4, %v8890_v8 }
 0x22e   : > { %v5062_v54 = vadd.f32 %v8895_v12, %v5023_v53  ;;  %v5024_v13 = vmul.f32 %v6636_v7, %v8890_v8 }
 0x22f   : > { %v5065_v60 = vadd.f32 %v8895_v12, %v5026_v16  ;;  %v6591_v0 = vpop.f32.mrb[20].mxu0  ;;  %v5096_v42 = vmax.f32 %v5064_v25, 0.0 }
 0x230   : > { %v5063_v27 = vadd.f32 %v8895_v12, %v5024_v13  ;;  %v6399_v46 = vpop.f32.mrb[20].mxu1  ;;  %v4921_v2 = vpop.f32.mrb[21].mxu0  ;;  %v5094_v48 = vmax.f32 %v5062_v54, 0.0 }
 0x231   : > { %v5097_v17 = vmax.f32 %v5065_v60, 0.0  ;;  %v6637_v55 = vadd.f32 %v6591_v0, %v6399_v46  ;;  %v2788_v49 = vpop.f32.mrb[21].mxu1  ;;  %v6592_v28 = vpop.f32.mrb[22].mxu0 }
 0x232   : > { %v5095_v24 = vmax.f32 %v5063_v27, 0.0  ;;  %v6638_v36 = vadd.f32 %v4921_v2, %v2788_v49  ;;  %v6400_v40 = vpop.f32.mrb[22].mxu1  ;;  %v4924_v47 = vpop.f32.mrb[23].mxu0 }
 0x233   : > { %v5906_v21 = vpack.c.bf16 %v5097_v17, %v5096_v42  ;;  %v5029_v51 = vmul.f32 %v6637_v55, %v8890_v8  ;;  %v6639_v32 = vadd.f32 %v6592_v28, %v6400_v40  ;;  %v2791_v5 = vpop.f32.mrb[23].mxu1 }
 0x234   : > { %v5901_v61 = vpack.c.bf16 %v5095_v24, %v5094_v48  ;;  %v5027_v62 = vmul.f32 %v6638_v36, %v8890_v8  ;;  %v6640_v41 = vadd.f32 %v4924_v47, %v2791_v5 }
 0x235   : > { %5946 = vst [vmem:[%s8909_s25 + $0x48] sm:$0xff] %v5906_v21   ;;  %v5068_v6 = vadd.f32 %v8895_v12, %v5029_v51  ;;  %v5030_v9 = vmul.f32 %v6639_v32, %v8890_v8 }
 0x236   : > { %5945 = vst [vmem:[%s8909_s25 + $0x40] sm:$0xff] %v5901_v61   ;;  %v5066_v26 = vadd.f32 %v8895_v12, %v5027_v62  ;;  %v5028_v18 = vmul.f32 %v6640_v41, %v8890_v8 }
 0x237   : > { %v5069_v33 = vadd.f32 %v8895_v12, %v5030_v9  ;;  %v6595_v14 = vpop.f32.mrb[24].mxu0  ;;  %v5100_v23 = vmax.f32 %v5068_v6, 0.0 }
 0x238   : > { %v5067_v10 = vadd.f32 %v8895_v12, %v5028_v18  ;;  %v6403_v39 = vpop.f32.mrb[24].mxu1  ;;  %v4937_v50 = vpop.f32.mrb[25].mxu0  ;;  %v5098_v22 = vmax.f32 %v5066_v26, 0.0 }
 0x239   : > { %v5101_v37 = vmax.f32 %v5069_v33, 0.0  ;;  %v6641_v3 = vadd.f32 %v6595_v14, %v6403_v39  ;;  %v2804_v45 = vpop.f32.mrb[25].mxu1  ;;  %v6596_v58 = vpop.f32.mrb[26].mxu0 }
 0x23a   : > { %v5099_v34 = vmax.f32 %v5067_v10, 0.0  ;;  %v6642_v59 = vadd.f32 %v4937_v50, %v2804_v45  ;;  %v6404_v30 = vpop.f32.mrb[26].mxu1  ;;  %v4940_v19 = vpop.f32.mrb[27].mxu0 }
 0x23b   : > { %v5916_v52 = vpack.c.bf16 %v5101_v37, %v5100_v23  ;;  %v5033_v11 = vmul.f32 %v6641_v3, %v8890_v8  ;;  %v6643_v15 = vadd.f32 %v6596_v58, %v6404_v30  ;;  %v2807_v43 = vpop.f32.mrb[27].mxu1 }
 0x23c   : > { %v5911_v38 = vpack.c.bf16 %v5099_v34, %v5098_v22  ;;  %v5031_v56 = vmul.f32 %v6642_v59, %v8890_v8  ;;  %v6644_v1 = vadd.f32 %v4940_v19, %v2807_v43 }
 0x23d   : > { %5948 = vst [vmem:[%s8909_s25 + $0x58] sm:$0xff] %v5916_v52   ;;  %v5072_v31 = vadd.f32 %v8895_v12, %v5033_v11  ;;  %v5034_v63 = vmul.f32 %v6643_v15, %v8890_v8 }
 0x23e   : > { %5947 = vst [vmem:[%s8909_s25 + $0x50] sm:$0xff] %v5911_v38   ;;  %v5070_v20 = vadd.f32 %v8895_v12, %v5031_v56  ;;  %v5032_v29 = vmul.f32 %v6644_v1, %v8890_v8 }
 0x23f   : > { %v5073_v44 = vadd.f32 %v8895_v12, %v5034_v63  ;;  %v6599_v35 = vpop.f32.mrb[28].mxu0  ;;  %v5104_v7 = vmax.f32 %v5072_v31, 0.0 }
 0x240   : > { %v5071_v4 = vadd.f32 %v8895_v12, %v5032_v29  ;;  %v6407_v57 = vpop.f32.mrb[28].mxu1  ;;  %v4953_v53 = vpop.f32.mrb[29].mxu0  ;;  %v5102_v60 = vmax.f32 %v5070_v20, 0.0 }
 0x241   : > { %v5105_v25 = vmax.f32 %v5073_v44, 0.0  ;;  %v6645_v16 = vadd.f32 %v6599_v35, %v6407_v57  ;;  %v2820_v54 = vpop.f32.mrb[29].mxu1  ;;  %v6600_v13 = vpop.f32.mrb[30].mxu0 }
 0x242   : > { %v5103_v0 = vmax.f32 %v5071_v4, 0.0  ;;  %v6646_v27 = vadd.f32 %v4953_v53, %v2820_v54  ;;  %v6408_v46 = vpop.f32.mrb[30].mxu1  ;;  %v4956_v2 = vpop.f32.mrb[31].mxu0 }
 0x243   : > { %v5926_v42 = vpack.c.bf16 %v5105_v25, %v5104_v7  ;;  %v5037_v17 = vmul.f32 %v6645_v16, %v8890_v8  ;;  %v6647_v55 = vadd.f32 %v6600_v13, %v6408_v46  ;;  %v2823_v49 = vpop.f32.mrb[31].mxu1 }
 0x244   : > { %v5921_v28 = vpack.c.bf16 %v5103_v0, %v5102_v60  ;;  %v5035_v48 = vmul.f32 %v6646_v27, %v8890_v8  ;;  %v6648_v24 = vadd.f32 %v4956_v2, %v2823_v49 }
 0x245   : > { %5950 = vst [vmem:[%s8909_s25 + $0x68] sm:$0xff] %v5926_v42   ;;  %v5076_v36 = vadd.f32 %v8895_v12, %v5037_v17  ;;  %v5038_v40 = vmul.f32 %v6647_v55, %v8890_v8 }
 0x246   : > { %5949 = vst [vmem:[%s8909_s25 + $0x60] sm:$0xff] %v5921_v28   ;;  %v5074_v47 = vadd.f32 %v8895_v12, %v5035_v48  ;;  %v5036_v21 = vmul.f32 %v6648_v24, %v8890_v8 }
 0x247   : > { %v5077_v51 = vadd.f32 %v8895_v12, %v5038_v40  ;;  %v5108_v5 = vmax.f32 %v5076_v36, 0.0 }
 0x248   : > { %v5075_v32 = vadd.f32 %v8895_v12, %v5036_v21  ;;  %v5106_v62 = vmax.f32 %v5074_v47, 0.0 }
 0x249   : > { %v5109_v61 = vmax.f32 %v5077_v51, 0.0 }
 0x24a   : > { %v5107_v41 = vmax.f32 %v5075_v32, 0.0 }
 0x24b   : > { %v5936_v6 = vpack.c.bf16 %v5109_v61, %v5108_v5 }
 0x24c   : > { %v5931_v9 = vpack.c.bf16 %v5107_v41, %v5106_v62 }
 0x24d   : > { %5952 = vst [vmem:[%s8909_s25 + $0x78] sm:$0xff] %v5936_v6  }
 0x24e   : > { %5951 = vst [vmem:[%s8909_s25 + $0x70] sm:$0xff] %v5931_v9  }
 0x24f PF: > { %s14_s15 = sadd.s32 1, %s7078_s15  }
 0x250   : > { %p11_p4 = scmp.ge.s32.totalorder %s14_s15, 4  }
 0x252   :  { %13 = sbr.rel (!%p11_p4) target bundleno = 1 (0x1), region = 68 }

</bundles_post_ra>
